<compile_context>
chip_gen: v7x
topology: tpu7x:2x2x1
jax: 0.10.0
libtpu: 0.0.40
codegen_flags: <defaults>
</compile_context>

<pallas_src>
import functools

import jax
import jax.numpy as jnp
from jax.experimental import pallas as pl
from jax.experimental.pallas import tpu as pltpu

IN_DIM = 28 * 28          # 784
HID_PAD = 128             # hidden feature dims (4..128) padded to 128 lanes

# (in_features, out_features) per layer, PyTorch module order.
LAYER_DIMS = [
    (784, 128), (128, 64), (64, 32), (32, 16), (16, 8), (8, 4),      # encoder
    (4, 8), (8, 16), (16, 32), (32, 64), (64, 128), (128, 784),       # decoder
]
NUM_LAYERS = len(LAYER_DIMS)
BOTTLENECK_LAYER = 5      # encoder's last Linear has no ReLU
NUM_INNER = NUM_LAYERS - 2  # layers 1..10, all (<=128 -> <=128)


def ae_kernel(x_ref, w_first_ref, w_inner_ref, w_last_ref, b_inner_ref, b_last_ref, o_ref):
    # Layer 0: 784 -> 128, ReLU.  bf16 MXU matmul, f32 accumulation / elementwise.
    h = jnp.dot(x_ref[...].astype(jnp.bfloat16), w_first_ref[...],
                preferred_element_type=jnp.float32) + b_inner_ref[0:1, :]
    h = jnp.maximum(h, 0.0)

    # Layers 1..10: padded (128 -> 128).  Padded lanes stay exactly 0 through the chain.
    for j in range(NUM_INNER):
        layer = j + 1
        hm = jnp.dot(h.astype(jnp.bfloat16), w_inner_ref[j],
                     preferred_element_type=jnp.float32) + b_inner_ref[layer:layer + 1, :]
        if layer == BOTTLENECK_LAYER:
            h = hm                       # encoder bottleneck: plain Linear
        else:
            h = jnp.maximum(hm, 0.0)     # ReLU

    # Layer 11: 128 -> 784, Sigmoid.  Unpadded, lane-dense-ish direct store to (tb, 784).
    hm = jnp.dot(h.astype(jnp.bfloat16), w_last_ref[...],
                 preferred_element_type=jnp.float32) + b_last_ref[...]
    o_ref[...] = jax.nn.sigmoid(hm)


@functools.partial(jax.jit, static_argnames=("tb",))
def autoencoder_v2(x, w_first, w_inner, w_last, b_inner, b_last, *, tb=512):
    """x: (B, 784) f32.  w_first (784,128) bf16, w_inner (10,128,128) bf16, w_last (128,784) bf16,
    b_inner (11,128) f32, b_last (1,784) f32.  Returns (B, 784) f32."""
    B, D = x.shape
    assert D == IN_DIM

    if B <= tb:
        tb_eff, Bp, xp = B, B, x                    # single full-batch block
    elif B % tb == 0:
        tb_eff, Bp, xp = tb, B, x                   # no padding, no extra HBM pass
    else:
        tb_eff = tb
        Bp = pl.cdiv(B, tb) * tb
        xp = jnp.zeros((Bp, D), x.dtype).at[:B].set(x)

    grid = (Bp // tb_eff,)

    out = pl.pallas_call(
        ae_kernel,
        out_shape=jax.ShapeDtypeStruct((Bp, IN_DIM), jnp.float32),
        grid_spec=pltpu.PrefetchScalarGridSpec(
            num_scalar_prefetch=0,
            grid=grid,
            in_specs=[
                pl.BlockSpec((tb_eff, IN_DIM), lambda i: (i, 0)),          # x
                pl.BlockSpec(w_first.shape, lambda i: (0, 0)),             # (784,128) bf16
                pl.BlockSpec(w_inner.shape, lambda i: (0, 0, 0)),          # (10,128,128) bf16
                pl.BlockSpec(w_last.shape, lambda i: (0, 0)),              # (128,784) bf16
                pl.BlockSpec(b_inner.shape, lambda i: (0, 0)),             # (11,128) f32
                pl.BlockSpec(b_last.shape, lambda i: (0, 0)),              # (1,784) f32
            ],
            out_specs=pl.BlockSpec((tb_eff, IN_DIM), lambda i: (i, 0)),
        ),
        compiler_params=pltpu.CompilerParams(
            dimension_semantics=("parallel",),       # batch tiles independent -> megacore sharding
            vmem_limit_bytes=48 * 1024 * 1024,       # allows tb up to ~1024 on all generations
        ),
    )(xp, w_first, w_inner, w_last, b_inner, b_last)

    if Bp != B:
        out = out[:B]
    return out


def init_params(key):
    """PyTorch-Linear-style init (U(-1/sqrt(fan_in), 1/sqrt(fan_in))), packed + padded.

    Returns (w_first, w_inner, w_last, b_inner, b_last) for the kernel plus the raw unpadded
    f32 (weights, biases) lists for the JAX references.
    """
    raw_w, raw_b = [], []
    for fin, fout in LAYER_DIMS:
        key, kw, kb = jax.random.split(key, 3)
        bound = 1.0 / (fin ** 0.5)
        raw_w.append(jax.random.uniform(kw, (fin, fout), jnp.float32, -bound, bound))
        raw_b.append(jax.random.uniform(kb, (fout,), jnp.float32, -bound, bound))

    # Layer 0: (784, 128) -> bf16, no padding needed.
    w_first = raw_w[0].astype(jnp.bfloat16)
    # Layers 1..10: zero-pad each to (128, 128), stack -> (10, 128, 128) bf16.
    w_inner = jnp.stack([
        jnp.zeros((HID_PAD, HID_PAD), jnp.float32)
        .at[:LAYER_DIMS[l][0], :LAYER_DIMS[l][1]].set(raw_w[l])
        for l in range(1, NUM_LAYERS - 1)
    ]).astype(jnp.bfloat16)
    # Layer 11: (128, 784) -> bf16.
    w_last = raw_w[-1].astype(jnp.bfloat16)

    # Biases of layers 0..10 zero-padded to 128 lanes -> (11, 128) f32; last bias (1, 784) f32.
    b_inner = jnp.stack([
        jnp.zeros((HID_PAD,), jnp.float32).at[:LAYER_DIMS[l][1]].set(raw_b[l])
        for l in range(NUM_LAYERS - 1)
    ])
    b_last = raw_b[-1].reshape(1, IN_DIM)

    return (w_first, w_inner, w_last, b_inner, b_last), raw_w, raw_b


def reference_forward_f32(x, raw_w, raw_b):
    """Exact f32 forward of the original PyTorch module."""
    h = x
    for i in range(NUM_LAYERS - 1):
        h = h @ raw_w[i] + raw_b[i]
        if i != BOTTLENECK_LAYER:
            h = jnp.maximum(h, 0.0)
    h = h @ raw_w[-1] + raw_b[-1]
    return jax.nn.sigmoid(h)


def reference_forward_bf16(x, raw_w, raw_b):
    """Numerics-matched reference: bf16 dot inputs, f32 accumulation / elementwise."""
    h = x
    for i in range(NUM_LAYERS):
        h = jnp.dot(h.astype(jnp.bfloat16), raw_w[i].astype(jnp.bfloat16),
                    preferred_element_type=jnp.float32) + raw_b[i]
        if i == NUM_LAYERS - 1:
            h = jax.nn.sigmoid(h)
        elif i != BOTTLENECK_LAYER:
            h = jnp.maximum(h, 0.0)
    return h


if __name__ == "__main__":
    key = jax.random.PRNGKey(0)
    key, kx, kp = jax.random.split(key, 3)

    B = 256                                                   # small demo batch
    x = jax.random.uniform(kx, (B, IN_DIM), jnp.float32)      # MNIST-like flat input in [0, 1]

    params, raw_w, raw_b = init_params(kp)

    out = autoencoder_v2(x, *params, tb=128)                  # grid=(2,) -> both v7x TCs busy
    out = jax.block_until_ready(out)
    assert out.shape == (B, IN_DIM)

    # Correctness vs. numerics-matched bf16 reference (tight).
    ref_bf16 = reference_forward_bf16(x, raw_w, raw_b)
    assert jnp.allclose(out, ref_bf16, atol=1e-3, rtol=1e-3), "mismatch vs. bf16 JAX reference"

    # Semantics vs. the original f32 module (loose: bf16 weights through 12 layers).
    ref_f32 = reference_forward_f32(x, raw_w, raw_b)
    assert jnp.allclose(out, ref_f32, atol=1e-1), "mismatch vs. f32 JAX reference"

    print("KERNEL_OK")
</pallas_src>

<mosaic_0001>
module attributes {stable_mosaic.version = 11 : i64} {
  func.func @ae_kernel(%arg0: i32, %arg1: memref<128x784xf32, #tpu.memory_space<vmem>>, %arg2: memref<784x128xbf16, #tpu.memory_space<vmem>>, %arg3: memref<10x128x128xbf16, #tpu.memory_space<vmem>>, %arg4: memref<128x784xbf16, #tpu.memory_space<vmem>>, %arg5: memref<11x128xf32, #tpu.memory_space<vmem>>, %arg6: memref<1x784xf32, #tpu.memory_space<vmem>>, %arg7: memref<128x784xf32, #tpu.memory_space<vmem>>) attributes {dimension_semantics = [#tpu.dimension_semantics<parallel>], iteration_bounds = array<i64: 2>, scalar_prefetch = 0 : i64, scratch_operands = 0 : i64, tpu.core_type = #tpu.core_type<tc>, window_params = [{transform_indices = @transform_0, window_bounds = array<i64: 128, 784>}, {pipeline_mode = #tpu.pipeline_mode<synchronous>, transform_indices = @transform_1, window_bounds = array<i64: 784, 128>}, {pipeline_mode = #tpu.pipeline_mode<synchronous>, transform_indices = @transform_2, window_bounds = array<i64: 10, 128, 128>}, {pipeline_mode = #tpu.pipeline_mode<synchronous>, transform_indices = @transform_3, window_bounds = array<i64: 128, 784>}, {pipeline_mode = #tpu.pipeline_mode<synchronous>, transform_indices = @transform_4, window_bounds = array<i64: 11, 128>}, {pipeline_mode = #tpu.pipeline_mode<synchronous>, transform_indices = @transform_5, window_bounds = array<i64: 1, 784>}, {transform_indices = @transform_6, window_bounds = array<i64: 128, 784>}]} {
    %c0 = arith.constant 0 : index
    %c0_0 = arith.constant 0 : index
    %0 = vector.load %arg1[%c0, %c0_0] : memref<128x784xf32, #tpu.memory_space<vmem>>, vector<128x784xf32>
    %1 = arith.truncf %0 : vector<128x784xf32> to vector<128x784xbf16>
    %c0_1 = arith.constant 0 : index
    %c0_2 = arith.constant 0 : index
    %2 = vector.load %arg2[%c0_1, %c0_2] : memref<784x128xbf16, #tpu.memory_space<vmem>>, vector<784x128xbf16>
    %cst = arith.constant dense<0.000000e+00> : vector<128x128xf32>
    %3 = tpu.matmul %1, %2, %cst {dimension_numbers = #tpu.dot_dimension_numbers<[1], [0], [0], [1], [0, 0, 1, 1], [], []>} : vector<128x784xbf16>, vector<784x128xbf16>, vector<128x128xf32> -> vector<128x128xf32>
    %c0_3 = arith.constant 0 : index
    %c0_4 = arith.constant 0 : index
    %4 = vector.load %arg5[%c0_3, %c0_4] : memref<11x128xf32, #tpu.memory_space<vmem>>, vector<1x128xf32>
    %5 = vector.broadcast %4 : vector<1x128xf32> to vector<128x128xf32>
    %6 = arith.addf %3, %5 : vector<128x128xf32>
    %cst_5 = arith.constant 0.000000e+00 : f32
    %7 = vector.broadcast %cst_5 : f32 to vector<128x128xf32>
    %8 = arith.maximumf %6, %7 : vector<128x128xf32>
    %9 = arith.truncf %8 : vector<128x128xf32> to vector<128x128xbf16>
    %c0_6 = arith.constant 0 : index
    %c0_7 = arith.constant 0 : index
    %c0_8 = arith.constant 0 : index
    %10 = vector.load %arg3[%c0_6, %c0_7, %c0_8] : memref<10x128x128xbf16, #tpu.memory_space<vmem>>, vector<1x128x128xbf16>
    %11 = vector.shape_cast %10 : vector<1x128x128xbf16> to vector<128x128xbf16>
    %cst_9 = arith.constant dense<0.000000e+00> : vector<128x128xf32>
    %12 = tpu.matmul %9, %11, %cst_9 {dimension_numbers = #tpu.dot_dimension_numbers<[1], [0], [0], [1], [0, 0, 1, 1], [], []>} : vector<128x128xbf16>, vector<128x128xbf16>, vector<128x128xf32> -> vector<128x128xf32>
    %c1 = arith.constant 1 : index
    %c0_10 = arith.constant 0 : index
    %13 = vector.load %arg5[%c1, %c0_10] : memref<11x128xf32, #tpu.memory_space<vmem>>, vector<1x128xf32>
    %14 = vector.broadcast %13 : vector<1x128xf32> to vector<128x128xf32>
    %15 = arith.addf %12, %14 : vector<128x128xf32>
    %cst_11 = arith.constant 0.000000e+00 : f32
    %16 = vector.broadcast %cst_11 : f32 to vector<128x128xf32>
    %17 = arith.maximumf %15, %16 : vector<128x128xf32>
    %18 = arith.truncf %17 : vector<128x128xf32> to vector<128x128xbf16>
    %c1_12 = arith.constant 1 : index
    %c0_13 = arith.constant 0 : index
    %c0_14 = arith.constant 0 : index
    %19 = vector.load %arg3[%c1_12, %c0_13, %c0_14] : memref<10x128x128xbf16, #tpu.memory_space<vmem>>, vector<1x128x128xbf16>
    %20 = vector.shape_cast %19 : vector<1x128x128xbf16> to vector<128x128xbf16>
    %cst_15 = arith.constant dense<0.000000e+00> : vector<128x128xf32>
    %21 = tpu.matmul %18, %20, %cst_15 {dimension_numbers = #tpu.dot_dimension_numbers<[1], [0], [0], [1], [0, 0, 1, 1], [], []>} : vector<128x128xbf16>, vector<128x128xbf16>, vector<128x128xf32> -> vector<128x128xf32>
    %c2 = arith.constant 2 : index
    %c0_16 = arith.constant 0 : index
    %22 = vector.load %arg5[%c2, %c0_16] : memref<11x128xf32, #tpu.memory_space<vmem>>, vector<1x128xf32>
    %23 = vector.broadcast %22 : vector<1x128xf32> to vector<128x128xf32>
    %24 = arith.addf %21, %23 : vector<128x128xf32>
    %cst_17 = arith.constant 0.000000e+00 : f32
    %25 = vector.broadcast %cst_17 : f32 to vector<128x128xf32>
    %26 = arith.maximumf %24, %25 : vector<128x128xf32>
    %27 = arith.truncf %26 : vector<128x128xf32> to vector<128x128xbf16>
    %c2_18 = arith.constant 2 : index
    %c0_19 = arith.constant 0 : index
    %c0_20 = arith.constant 0 : index
    %28 = vector.load %arg3[%c2_18, %c0_19, %c0_20] : memref<10x128x128xbf16, #tpu.memory_space<vmem>>, vector<1x128x128xbf16>
    %29 = vector.shape_cast %28 : vector<1x128x128xbf16> to vector<128x128xbf16>
    %cst_21 = arith.constant dense<0.000000e+00> : vector<128x128xf32>
    %30 = tpu.matmul %27, %29, %cst_21 {dimension_numbers = #tpu.dot_dimension_numbers<[1], [0], [0], [1], [0, 0, 1, 1], [], []>} : vector<128x128xbf16>, vector<128x128xbf16>, vector<128x128xf32> -> vector<128x128xf32>
    %c3 = arith.constant 3 : index
    %c0_22 = arith.constant 0 : index
    %31 = vector.load %arg5[%c3, %c0_22] : memref<11x128xf32, #tpu.memory_space<vmem>>, vector<1x128xf32>
    %32 = vector.broadcast %31 : vector<1x128xf32> to vector<128x128xf32>
    %33 = arith.addf %30, %32 : vector<128x128xf32>
    %cst_23 = arith.constant 0.000000e+00 : f32
    %34 = vector.broadcast %cst_23 : f32 to vector<128x128xf32>
    %35 = arith.maximumf %33, %34 : vector<128x128xf32>
    %36 = arith.truncf %35 : vector<128x128xf32> to vector<128x128xbf16>
    %c3_24 = arith.constant 3 : index
    %c0_25 = arith.constant 0 : index
    %c0_26 = arith.constant 0 : index
    %37 = vector.load %arg3[%c3_24, %c0_25, %c0_26] : memref<10x128x128xbf16, #tpu.memory_space<vmem>>, vector<1x128x128xbf16>
    %38 = vector.shape_cast %37 : vector<1x128x128xbf16> to vector<128x128xbf16>
    %cst_27 = arith.constant dense<0.000000e+00> : vector<128x128xf32>
    %39 = tpu.matmul %36, %38, %cst_27 {dimension_numbers = #tpu.dot_dimension_numbers<[1], [0], [0], [1], [0, 0, 1, 1], [], []>} : vector<128x128xbf16>, vector<128x128xbf16>, vector<128x128xf32> -> vector<128x128xf32>
    %c4 = arith.constant 4 : index
    %c0_28 = arith.constant 0 : index
    %40 = vector.load %arg5[%c4, %c0_28] : memref<11x128xf32, #tpu.memory_space<vmem>>, vector<1x128xf32>
    %41 = vector.broadcast %40 : vector<1x128xf32> to vector<128x128xf32>
    %42 = arith.addf %39, %41 : vector<128x128xf32>
    %cst_29 = arith.constant 0.000000e+00 : f32
    %43 = vector.broadcast %cst_29 : f32 to vector<128x128xf32>
    %44 = arith.maximumf %42, %43 : vector<128x128xf32>
    %45 = arith.truncf %44 : vector<128x128xf32> to vector<128x128xbf16>
    %c4_30 = arith.constant 4 : index
    %c0_31 = arith.constant 0 : index
    %c0_32 = arith.constant 0 : index
    %46 = vector.load %arg3[%c4_30, %c0_31, %c0_32] : memref<10x128x128xbf16, #tpu.memory_space<vmem>>, vector<1x128x128xbf16>
    %47 = vector.shape_cast %46 : vector<1x128x128xbf16> to vector<128x128xbf16>
    %cst_33 = arith.constant dense<0.000000e+00> : vector<128x128xf32>
    %48 = tpu.matmul %45, %47, %cst_33 {dimension_numbers = #tpu.dot_dimension_numbers<[1], [0], [0], [1], [0, 0, 1, 1], [], []>} : vector<128x128xbf16>, vector<128x128xbf16>, vector<128x128xf32> -> vector<128x128xf32>
    %c5 = arith.constant 5 : index
    %c0_34 = arith.constant 0 : index
    %49 = vector.load %arg5[%c5, %c0_34] : memref<11x128xf32, #tpu.memory_space<vmem>>, vector<1x128xf32>
    %50 = vector.broadcast %49 : vector<1x128xf32> to vector<128x128xf32>
    %51 = arith.addf %48, %50 : vector<128x128xf32>
    %52 = arith.truncf %51 : vector<128x128xf32> to vector<128x128xbf16>
    %c5_35 = arith.constant 5 : index
    %c0_36 = arith.constant 0 : index
    %c0_37 = arith.constant 0 : index
    %53 = vector.load %arg3[%c5_35, %c0_36, %c0_37] : memref<10x128x128xbf16, #tpu.memory_space<vmem>>, vector<1x128x128xbf16>
    %54 = vector.shape_cast %53 : vector<1x128x128xbf16> to vector<128x128xbf16>
    %cst_38 = arith.constant dense<0.000000e+00> : vector<128x128xf32>
    %55 = tpu.matmul %52, %54, %cst_38 {dimension_numbers = #tpu.dot_dimension_numbers<[1], [0], [0], [1], [0, 0, 1, 1], [], []>} : vector<128x128xbf16>, vector<128x128xbf16>, vector<128x128xf32> -> vector<128x128xf32>
    %c6 = arith.constant 6 : index
    %c0_39 = arith.constant 0 : index
    %56 = vector.load %arg5[%c6, %c0_39] : memref<11x128xf32, #tpu.memory_space<vmem>>, vector<1x128xf32>
    %57 = vector.broadcast %56 : vector<1x128xf32> to vector<128x128xf32>
    %58 = arith.addf %55, %57 : vector<128x128xf32>
    %cst_40 = arith.constant 0.000000e+00 : f32
    %59 = vector.broadcast %cst_40 : f32 to vector<128x128xf32>
    %60 = arith.maximumf %58, %59 : vector<128x128xf32>
    %61 = arith.truncf %60 : vector<128x128xf32> to vector<128x128xbf16>
    %c6_41 = arith.constant 6 : index
    %c0_42 = arith.constant 0 : index
    %c0_43 = arith.constant 0 : index
    %62 = vector.load %arg3[%c6_41, %c0_42, %c0_43] : memref<10x128x128xbf16, #tpu.memory_space<vmem>>, vector<1x128x128xbf16>
    %63 = vector.shape_cast %62 : vector<1x128x128xbf16> to vector<128x128xbf16>
    %cst_44 = arith.constant dense<0.000000e+00> : vector<128x128xf32>
    %64 = tpu.matmul %61, %63, %cst_44 {dimension_numbers = #tpu.dot_dimension_numbers<[1], [0], [0], [1], [0, 0, 1, 1], [], []>} : vector<128x128xbf16>, vector<128x128xbf16>, vector<128x128xf32> -> vector<128x128xf32>
    %c7 = arith.constant 7 : index
    %c0_45 = arith.constant 0 : index
    %65 = vector.load %arg5[%c7, %c0_45] : memref<11x128xf32, #tpu.memory_space<vmem>>, vector<1x128xf32>
    %66 = vector.broadcast %65 : vector<1x128xf32> to vector<128x128xf32>
    %67 = arith.addf %64, %66 : vector<128x128xf32>
    %cst_46 = arith.constant 0.000000e+00 : f32
    %68 = vector.broadcast %cst_46 : f32 to vector<128x128xf32>
    %69 = arith.maximumf %67, %68 : vector<128x128xf32>
    %70 = arith.truncf %69 : vector<128x128xf32> to vector<128x128xbf16>
    %c7_47 = arith.constant 7 : index
    %c0_48 = arith.constant 0 : index
    %c0_49 = arith.constant 0 : index
    %71 = vector.load %arg3[%c7_47, %c0_48, %c0_49] : memref<10x128x128xbf16, #tpu.memory_space<vmem>>, vector<1x128x128xbf16>
    %72 = vector.shape_cast %71 : vector<1x128x128xbf16> to vector<128x128xbf16>
    %cst_50 = arith.constant dense<0.000000e+00> : vector<128x128xf32>
    %73 = tpu.matmul %70, %72, %cst_50 {dimension_numbers = #tpu.dot_dimension_numbers<[1], [0], [0], [1], [0, 0, 1, 1], [], []>} : vector<128x128xbf16>, vector<128x128xbf16>, vector<128x128xf32> -> vector<128x128xf32>
    %c8 = arith.constant 8 : index
    %c0_51 = arith.constant 0 : index
    %74 = vector.load %arg5[%c8, %c0_51] : memref<11x128xf32, #tpu.memory_space<vmem>>, vector<1x128xf32>
    %75 = vector.broadcast %74 : vector<1x128xf32> to vector<128x128xf32>
    %76 = arith.addf %73, %75 : vector<128x128xf32>
    %cst_52 = arith.constant 0.000000e+00 : f32
    %77 = vector.broadcast %cst_52 : f32 to vector<128x128xf32>
    %78 = arith.maximumf %76, %77 : vector<128x128xf32>
    %79 = arith.truncf %78 : vector<128x128xf32> to vector<128x128xbf16>
    %c8_53 = arith.constant 8 : index
    %c0_54 = arith.constant 0 : index
    %c0_55 = arith.constant 0 : index
    %80 = vector.load %arg3[%c8_53, %c0_54, %c0_55] : memref<10x128x128xbf16, #tpu.memory_space<vmem>>, vector<1x128x128xbf16>
    %81 = vector.shape_cast %80 : vector<1x128x128xbf16> to vector<128x128xbf16>
    %cst_56 = arith.constant dense<0.000000e+00> : vector<128x128xf32>
    %82 = tpu.matmul %79, %81, %cst_56 {dimension_numbers = #tpu.dot_dimension_numbers<[1], [0], [0], [1], [0, 0, 1, 1], [], []>} : vector<128x128xbf16>, vector<128x128xbf16>, vector<128x128xf32> -> vector<128x128xf32>
    %c9 = arith.constant 9 : index
    %c0_57 = arith.constant 0 : index
    %83 = vector.load %arg5[%c9, %c0_57] : memref<11x128xf32, #tpu.memory_space<vmem>>, vector<1x128xf32>
    %84 = vector.broadcast %83 : vector<1x128xf32> to vector<128x128xf32>
    %85 = arith.addf %82, %84 : vector<128x128xf32>
    %cst_58 = arith.constant 0.000000e+00 : f32
    %86 = vector.broadcast %cst_58 : f32 to vector<128x128xf32>
    %87 = arith.maximumf %85, %86 : vector<128x128xf32>
    %88 = arith.truncf %87 : vector<128x128xf32> to vector<128x128xbf16>
    %c9_59 = arith.constant 9 : index
    %c0_60 = arith.constant 0 : index
    %c0_61 = arith.constant 0 : index
    %89 = vector.load %arg3[%c9_59, %c0_60, %c0_61] : memref<10x128x128xbf16, #tpu.memory_space<vmem>>, vector<1x128x128xbf16>
    %90 = vector.shape_cast %89 : vector<1x128x128xbf16> to vector<128x128xbf16>
    %cst_62 = arith.constant dense<0.000000e+00> : vector<128x128xf32>
    %91 = tpu.matmul %88, %90, %cst_62 {dimension_numbers = #tpu.dot_dimension_numbers<[1], [0], [0], [1], [0, 0, 1, 1], [], []>} : vector<128x128xbf16>, vector<128x128xbf16>, vector<128x128xf32> -> vector<128x128xf32>
    %c10 = arith.constant 10 : index
    %c0_63 = arith.constant 0 : index
    %92 = vector.load %arg5[%c10, %c0_63] : memref<11x128xf32, #tpu.memory_space<vmem>>, vector<1x128xf32>
    %93 = vector.broadcast %92 : vector<1x128xf32> to vector<128x128xf32>
    %94 = arith.addf %91, %93 : vector<128x128xf32>
    %cst_64 = arith.constant 0.000000e+00 : f32
    %95 = vector.broadcast %cst_64 : f32 to vector<128x128xf32>
    %96 = arith.maximumf %94, %95 : vector<128x128xf32>
    %97 = arith.truncf %96 : vector<128x128xf32> to vector<128x128xbf16>
    %c0_65 = arith.constant 0 : index
    %c0_66 = arith.constant 0 : index
    %98 = vector.load %arg4[%c0_65, %c0_66] : memref<128x784xbf16, #tpu.memory_space<vmem>>, vector<128x784xbf16>
    %cst_67 = arith.constant dense<0.000000e+00> : vector<128x784xf32>
    %99 = tpu.matmul %97, %98, %cst_67 {dimension_numbers = #tpu.dot_dimension_numbers<[1], [0], [0], [1], [0, 0, 1, 1], [], []>} : vector<128x128xbf16>, vector<128x784xbf16>, vector<128x784xf32> -> vector<128x784xf32>
    %c0_68 = arith.constant 0 : index
    %c0_69 = arith.constant 0 : index
    %100 = vector.load %arg6[%c0_68, %c0_69] : memref<1x784xf32, #tpu.memory_space<vmem>>, vector<1x784xf32>
    %101 = vector.broadcast %100 : vector<1x784xf32> to vector<128x784xf32>
    %102 = arith.addf %99, %101 : vector<128x784xf32>
    %103 = arith.negf %102 : vector<128x784xf32>
    %104 = math.exp %103 : vector<128x784xf32>
    %cst_70 = arith.constant 1.000000e+00 : f32
    %105 = vector.broadcast %cst_70 : f32 to vector<128x784xf32>
    %106 = arith.addf %105, %104 : vector<128x784xf32>
    %107 = arith.divf %105, %106 : vector<128x784xf32>
    %c0_71 = arith.constant 0 : index
    %c0_72 = arith.constant 0 : index
    %108 = vector.load %arg7[%c0_71, %c0_72] : memref<128x784xf32, #tpu.memory_space<vmem>>, vector<128x784xf32>
    tpu.vector_store %arg7[%c0_71, %c0_72], %107 {strides = array<i32>} : memref<128x784xf32, #tpu.memory_space<vmem>>, vector<128x784xf32>,
    return
  }
  func.func @transform_0(%arg0: i32) -> (i32, i32) {
    %c0_i32 = arith.constant 0 : i32
    %c0_i32_0 = arith.constant 0 : i32
    return %arg0, %c0_i32 : i32, i32
  }
  func.func @transform_1(%arg0: i32) -> (i32, i32) {
    %c0_i32 = arith.constant 0 : i32
    %c0_i32_0 = arith.constant 0 : i32
    %c0_i32_1 = arith.constant 0 : i32
    return %c0_i32, %c0_i32_0 : i32, i32
  }
  func.func @transform_2(%arg0: i32) -> (i32, i32, i32) {
    %c0_i32 = arith.constant 0 : i32
    %c0_i32_0 = arith.constant 0 : i32
    %c0_i32_1 = arith.constant 0 : i32
    %c0_i32_2 = arith.constant 0 : i32
    return %c0_i32, %c0_i32_0, %c0_i32_1 : i32, i32, i32
  }
  func.func @transform_3(%arg0: i32) -> (i32, i32) {
    %c0_i32 = arith.constant 0 : i32
    %c0_i32_0 = arith.constant 0 : i32
    %c0_i32_1 = arith.constant 0 : i32
    return %c0_i32, %c0_i32_0 : i32, i32
  }
  func.func @transform_4(%arg0: i32) -> (i32, i32) {
    %c0_i32 = arith.constant 0 : i32
    %c0_i32_0 = arith.constant 0 : i32
    %c0_i32_1 = arith.constant 0 : i32
    return %c0_i32, %c0_i32_0 : i32, i32
  }
  func.func @transform_5(%arg0: i32) -> (i32, i32) {
    %c0_i32 = arith.constant 0 : i32
    %c0_i32_0 = arith.constant 0 : i32
    %c0_i32_1 = arith.constant 0 : i32
    return %c0_i32, %c0_i32_0 : i32, i32
  }
  func.func @transform_6(%arg0: i32) -> (i32, i32) {
    %c0_i32 = arith.constant 0 : i32
    %c0_i32_0 = arith.constant 0 : i32
    return %arg0, %c0_i32 : i32, i32
  }
}

</mosaic_0001>

<bundles_post_ra>
// kernel: autoencoder_v2.1
= control target key start
LH: loop header
LB: loop body
LE: loop exit
PB: predicated region body
PF: predicated region fallthrough
CT: control target
= control target key end

     0   :  { %s6753_s21 = smov 0   ;;  %s8194_s0 = inlined_call_operand.vmem [shape: f32[256,784], index: 0, kind: input, shape index: {}]   ;;  %s8195_s1 = inlined_call_operand.vmem [shape: bf16[784,128], index: 1, kind: input, shape index: {}]   ;;  %s8196_s2 = inlined_call_operand.vmem [shape: bf16[10,128,128], index: 2, kind: input, shape index: {}]   ;;  %s8197_s3 = inlined_call_operand.vmem [shape: bf16[128,784], index: 3, kind: input, shape index: {}]   ;;  %s8198_s4 = inlined_call_operand.vmem [shape: f32[11,128], index: 4, kind: input, shape index: {}]   ;;  %s8199_s5 = inlined_call_operand.vmem [shape: f32[1,784], index: 5, kind: input, shape index: {}]   ;;  %s8200_s6 = inlined_call_operand.vmem [shape: f32[256,784], index: 6, kind: output, shape index: {}]  }
   0x1 LB: > { %s4823_s22 = sadd.s32 4294967295, %s6715_s21   ;;  %p4827_p0 = scmp.ge.s32.totalorder %s6715_s21, 1  ;;  %s6715_s21 = sphi %s6753_s21, %s16_s21  }
   0x2   : > { %p214_p1 = scmp.lt.s32.totalorder %s6715_s21, 3 }
   0x4   : > { %p215_p2 = pnand %p4827_p0, %p214_p1 }
   0x6   : > { %218 = sbr.rel (%p215_p2) target bundleno = 3019 (0xbcb), region = 44 }
   0xd   : > { %v6051_v0 = vld [vmem:[%s8195_s1 + $0x40] sm:$0xff]   ;;  %v6055_v4 = vld [vmem:[%s8195_s1 + $0x48] sm:$0xff]   ;;  %v6059_v8 = vld [vmem:[%s8195_s1 + $0x50] sm:$0xff]   ;;  %s4828_s29 = sshll.u32 %s4823_s22, 4  ;;  %vm826_vm0 = vcmask 130048  }
   0xe   : > { %v6052_v1 = vld [vmem:[%s8195_s1] sm:$0xff]   ;;  %5294 = vmatprep.subr.bf16.mxu0 %v6051_v0  ;;  %v6056_v5 = vld [vmem:[%s8195_s1 + $0x8] sm:$0xff]   ;;  %v6060_v9 = vld [vmem:[%s8195_s1 + $0x10] sm:$0xff]   ;;  %p247_p3 = scmp.lt.s32.totalorder %s4828_s29, 31 }
   0xf   : > { %v6053_v2 = vld [vmem:[%s8195_s1 + $0xc0] sm:$0xff]   ;;  %5295 = vmatpush3.bf16.msra.mxu0 %v6052_v1  ;;  %v6057_v6 = vld [vmem:[%s8195_s1 + $0xc8] sm:$0xff]   ;;  %v6061_v10 = vld [vmem:[%s8195_s1 + $0xd0] sm:$0xff]  }
  0x10   : > { %v6054_v3 = vld [vmem:[%s8195_s1 + $0x80] sm:$0xff]   ;;  %5358 = vmatprep.subr.bf16.mxu1 %v6053_v2  ;;  %5296 = vmatprep.subr.bf16.mxu0 %v6055_v4  ;;  %v6058_v7 = vld [vmem:[%s8195_s1 + $0x88] sm:$0xff]   ;;  %v6062_v11 = vld [vmem:[%s8195_s1 + $0x90] sm:$0xff]   ;;  %s8206_s29 = smov (!%p247_p3, %s4828_s29), 31 }
  0x11   : > { %5359 = vmatpush3.bf16.msra.mxu1 %v6054_v3  ;;  %v6063_v12 = vld [vmem:[%s8195_s1 + $0x58] sm:$0xff]   ;;  %v6067_v16 = vld [vmem:[%s8195_s1 + $0x60] sm:$0xff]   ;;  %v6071_v20 = vld [vmem:[%s8195_s1 + $0x68] sm:$0xff]   ;;  %s6041_s30 = smul.u32 56, %s8206_s29 }
  0x12   : > { %5360 = vmatprep.subr.bf16.mxu1 %v6057_v6  ;;  %v6064_v13 = vld [vmem:[%s8195_s1 + $0x18] sm:$0xff]   ;;  %v6068_v17 = vld [vmem:[%s8195_s1 + $0x20] sm:$0xff]   ;;  %v6072_v21 = vld [vmem:[%s8195_s1 + $0x28] sm:$0xff]  }
  0x13   : > { %5297 = vmatpush3.bf16.msra.mxu0 %v6056_v5  ;;  %v6065_v14 = vld [vmem:[%s8195_s1 + $0xd8] sm:$0xff]   ;;  %v6069_v18 = vld [vmem:[%s8195_s1 + $0xe0] sm:$0xff]   ;;  %v6073_v22 = vld [vmem:[%s8195_s1 + $0xe8] sm:$0xff]   ;;  %s6858_s16 = scalar_lea.vmem %s8194_s0, %s6041_s30  ;;  %s7686_s23 = scalar_lea.vmem %s8200_s6, %s6041_s30 }
  0x14   : > { %5298 = vmatprep.subr.bf16.mxu0 %v6059_v8  ;;  %v6066_v15 = vld [vmem:[%s8195_s1 + $0x98] sm:$0xff]   ;;  %v6070_v19 = vld [vmem:[%s8195_s1 + $0xa0] sm:$0xff]   ;;  %v6074_v23 = vld [vmem:[%s8195_s1 + $0xa8] sm:$0xff]  }
  0x15   : > { %5361 = vmatpush3.bf16.msra.mxu1 %v6058_v7  ;;  %v6075_v24 = vld [vmem:[%s8195_s1 + $0x70] sm:$0xff]   ;;  %v6079_v28 = vld [vmem:[%s8195_s1 + $0x78] sm:$0xff]   ;;  %v262_v31 = vld [vmem:[%s6858_s16 + $0x8] sm:$0xff] }
  0x16   : > { %5362 = vmatprep.subr.bf16.mxu1 %v6061_v10  ;;  %v6076_v25 = vld [vmem:[%s8195_s1 + $0x30] sm:$0xff]   ;;  %v6080_v29 = vld [vmem:[%s8195_s1 + $0x38] sm:$0xff]   ;;  %v269_v32 = vld [vmem:[%s6858_s16 + $0x40] sm:$0xff] }
  0x17   : > { %5299 = vmatpush3.bf16.msra.mxu0 %v6060_v9  ;;  %v6077_v26 = vld [vmem:[%s8195_s1 + $0xf0] sm:$0xff]   ;;  %v6081_v30 = vld [vmem:[%s8195_s1 + $0xf8] sm:$0xff]   ;;  %v374_v33 = vpack.c.bf16 %v269_v32, %v262_v31  ;;  %v261_v35 = vld [vmem:[%s6858_s16] sm:$0xff] }
  0x18   : > { %5300 = vmatprep.subr.bf16.mxu0 %v6063_v12  ;;  %v6078_v27 = vld [vmem:[%s8195_s1 + $0xb0] sm:$0xff]   ;;  %v6082_v34 = vld [vmem:[%s8195_s1 + $0xb8] sm:$0xff]   ;;  %v6083_v38 = vld [vmem:[%s8195_s1 + $0x140] sm:$0xff]  }
  0x19   : > { %5363 = vmatpush3.bf16.msra.mxu1 %v6062_v11  ;;  %v268_v36 = vld [vmem:[%s6858_s16 + $0x38] sm:$0xff]  ;;  %883 = vmatprep.mubr.bf16.mxu0 %v374_v33  ;;  %v271_v40 = vld [vmem:[%s6858_s16 + $0x50] sm:$0xff]  ;;  %v6084_v42 = vld [vmem:[%s8195_s1 + $0x100] sm:$0xff]  }
  0x1a   : > { %5364 = vmatprep.subr.bf16.mxu1 %v6065_v14  ;;  %v373_v37 = vpack.c.bf16 %v268_v36, %v261_v35  ;;  %v264_v39 = vld [vmem:[%s6858_s16 + $0x18] sm:$0xff]  ;;  %v263_v43 = vld [vmem:[%s6858_s16 + $0x10] sm:$0xff]  ;;  %v270_v44 = vld [vmem:[%s6858_s16 + $0x48] sm:$0xff] }
  0x1b   : > { %5301 = vmatpush3.bf16.msra.mxu0 %v6064_v13  ;;  %v376_v41 = vpack.c.bf16 %v271_v40, %v264_v39  ;;  %v276_v45 = vld [vmem:[%s6858_s16 + $0x78] sm:$0xff]  ;;  %v375_v46 = vpack.c.bf16 %v270_v44, %v263_v43  ;;  %v283_v47 = vld [vmem:[%s6858_s16 + $0xb0] sm:$0xff]  ;;  %v282_v49 = vld [vmem:[%s6858_s16 + $0xa8] sm:$0xff] }
  0x1c   : > { %5302 = vmatprep.subr.bf16.mxu0 %v6067_v16  ;;  %v275_v48 = vld [vmem:[%s6858_s16 + $0x70] sm:$0xff]  ;;  %v381_v50 = vpack.c.bf16 %v283_v47, %v276_v45  ;;  %v6085_v51 = vld [vmem:[%s8195_s1 + $0x148] sm:$0xff]   ;;  %v285_v53 = vld [vmem:[%s6858_s16 + $0xc0] sm:$0xff] }
  0x1d   : > { %5365 = vmatpush3.bf16.msra.mxu1 %v6066_v15  ;;  %980 = vmatprep.mubr.bf16.mxu1 %v376_v41  ;;  %v278_v52 = vld [vmem:[%s6858_s16 + $0x88] sm:$0xff]  ;;  %v380_v54 = vpack.c.bf16 %v282_v49, %v275_v48  ;;  %v277_v57 = vld [vmem:[%s6858_s16 + $0x80] sm:$0xff]  ;;  %v284_v58 = vld [vmem:[%s6858_s16 + $0xb8] sm:$0xff] }
  0x1e   : > { %5366 = vmatprep.subr.bf16.mxu1 %v6069_v18  ;;  %v383_v55 = vpack.c.bf16 %v285_v53, %v278_v52  ;;  %v6086_v56 = vld [vmem:[%s8195_s1 + $0x108] sm:$0xff]   ;;  %v6087_v59 = vld [vmem:[%s8195_s1 + $0x180] sm:$0xff]   ;;  %v382_v62 = vpack.c.bf16 %v284_v58, %v277_v57  ;;  %v296_v1 = vld [vmem:[%s6858_s16 + $0x118] sm:$0xff] }
  0x1f   : > { %5303 = vmatpush3.bf16.msra.mxu0 %v6068_v17  ;;  %v290_v60 = vld [vmem:[%s6858_s16 + $0xe8] sm:$0xff]  ;;  %v297_v61 = vld [vmem:[%s6858_s16 + $0x120] sm:$0xff]  ;;  %v6088_v2 = vld [vmem:[%s8195_s1 + $0x150] sm:$0xff]  }
  0x20   : > { %5304 = vmatprep.subr.bf16.mxu0 %v6071_v20  ;;  %v388_v63 = vpack.c.bf16 %v297_v61, %v290_v60  ;;  %v289_v0 = vld [vmem:[%s6858_s16 + $0xe0] sm:$0xff]  ;;  %v292_v3 = vld [vmem:[%s6858_s16 + $0xf8] sm:$0xff]  ;;  %v299_v4 = vld [vmem:[%s6858_s16 + $0x130] sm:$0xff] }
  0x21   : > { %5367 = vmatpush3.bf16.msra.mxu1 %v6070_v19  ;;  %v390_v5 = vpack.c.bf16 %v299_v4, %v292_v3  ;;  %v6089_v6 = vld [vmem:[%s8195_s1 + $0x110] sm:$0xff]   ;;  %v304_v8 = vld [vmem:[%s6858_s16 + $0x158] sm:$0xff]  ;;  %v387_v10 = vpack.c.bf16 %v296_v1, %v289_v0  ;;  %v298_v11 = vld [vmem:[%s6858_s16 + $0x128] sm:$0xff] }
  0x22   : > { %5368 = vmatprep.subr.bf16.mxu1 %v6073_v22  ;;  %v291_v7 = vld [vmem:[%s6858_s16 + $0xf0] sm:$0xff]  ;;  %v6090_v13 = vld [vmem:[%s8195_s1 + $0x158] sm:$0xff]   ;;  %v306_v14 = vld [vmem:[%s6858_s16 + $0x168] sm:$0xff] }
  0x23   : > { %5305 = vmatpush3.bf16.msra.mxu0 %v6072_v21  ;;  %v311_v9 = vld [vmem:[%s6858_s16 + $0x190] sm:$0xff]  ;;  %v313_v15 = vld [vmem:[%s6858_s16 + $0x1a0] sm:$0xff]  ;;  %v6091_v16 = vld [vmem:[%s8195_s1 + $0x118] sm:$0xff]   ;;  %v389_v17 = vpack.c.bf16 %v298_v11, %v291_v7 }
  0x24   : > { %5306 = vmatprep.subr.bf16.mxu0 %v6075_v24  ;;  %v395_v12 = vpack.c.bf16 %v311_v9, %v304_v8  ;;  %v303_v18 = vld [vmem:[%s6858_s16 + $0x150] sm:$0xff]  ;;  %v310_v19 = vld [vmem:[%s6858_s16 + $0x188] sm:$0xff]  ;;  %v397_v20 = vpack.c.bf16 %v313_v15, %v306_v14  ;;  %v6092_v21 = vld [vmem:[%s8195_s1 + $0x160] sm:$0xff]  }
  0x25   : > { %5369 = vmatpush3.bf16.msra.mxu1 %v6074_v23  ;;  %v318_v22 = vld [vmem:[%s6858_s16 + $0x1c8] sm:$0xff]  ;;  %v325_v23 = vld [vmem:[%s6858_s16 + $0x200] sm:$0xff]  ;;  %v324_v36 = vld [vmem:[%s6858_s16 + $0x1f8] sm:$0xff] }
  0x26   : > { %5370 = vmatprep.subr.bf16.mxu1 %v6077_v26  ;;  %v6093_v24 = vld [vmem:[%s8195_s1 + $0x120] sm:$0xff]   ;;  %v6094_v31 = vld [vmem:[%s8195_s1 + $0x168] sm:$0xff]   ;;  %v319_v39 = vld [vmem:[%s6858_s16 + $0x1d0] sm:$0xff] }
  0x27   : > { %5307 = vmatpush3.bf16.msra.mxu0 %v6076_v25  ;;  %v394_v25 = vpack.c.bf16 %v310_v19, %v303_v18  ;;  %v305_v26 = vld [vmem:[%s6858_s16 + $0x160] sm:$0xff]  ;;  %v326_v40 = vld [vmem:[%s6858_s16 + $0x208] sm:$0xff]  ;;  %v6096_v41 = vld [vmem:[%s8195_s1 + $0x170] sm:$0xff]  }
  0x28   : > { %5308 = vmatprep.subr.bf16.mxu0 %v6079_v28  ;;  %v402_v28 = vpack.c.bf16 %v325_v23, %v318_v22  ;;  %v317_v35 = vld [vmem:[%s6858_s16 + $0x1c0] sm:$0xff]  ;;  %v6097_v43 = vld [vmem:[%s8195_s1 + $0x130] sm:$0xff]   ;;  %v334_v45 = vld [vmem:[%s6858_s16 + $0x248] sm:$0xff]  ;;  %v403_v47 = vpack.c.bf16 %v326_v40, %v319_v39 }
  0x29   : > { %5371 = vmatpush3.bf16.msra.mxu1 %v6078_v27  ;;  %v312_v27 = vld [vmem:[%s6858_s16 + $0x198] sm:$0xff]  ;;  %v331_v49 = vld [vmem:[%s6858_s16 + $0x230] sm:$0xff]  ;;  %v346_v53 = vld [vmem:[%s6858_s16 + $0x2a8] sm:$0xff] }
  0x2a   : > { %5372 = vmatprep.subr.bf16.mxu1 %v6081_v30  ;;  %v327_v30 = vld [vmem:[%s6858_s16 + $0x210] sm:$0xff]  ;;  %v396_v32 = vpack.c.bf16 %v312_v27, %v305_v26  ;;  %v6098_v48 = vld [vmem:[%s8195_s1 + $0x178] sm:$0xff]   ;;  %v362_v7 = vld [vmem:[%s6858_s16 + $0x328] sm:$0xff] }
  0x2b   : > { %5309 = vmatpush3.bf16.msra.mxu0 %v6080_v29  ;;  %v320_v29 = vld [vmem:[%s6858_s16 + $0x1d8] sm:$0xff]  ;;  %v355_v60 = vld [vmem:[%s6858_s16 + $0x2f0] sm:$0xff]  ;;  %v369_v8 = vld [vmem:[%s6858_s16 + $0x360] sm:$0xff] }
  0x2c   : > { %5422 = vmatprep.subr.bf16.mxu0 %v6083_v38  ;;  %v404_v33 = vpack.c.bf16 %v327_v30, %v320_v29  ;;  %v339_v38 = vld [vmem:[%s6858_s16 + $0x270] sm:$0xff]  ;;  %v6099_v52 = vld [vmem:[%s8195_s1 + $0x138] sm:$0xff]   ;;  %v361_v14 = vld [vmem:[%s6858_s16 + $0x320] sm:$0xff] }
  0x2d   : > { %5373 = vmatpush3.bf16.msra.mxu1 %v6082_v34  ;;  %v6095_v34 = vld [vmem:[%s8195_s1 + $0x128] sm:$0xff]   ;;  %v340_v57 = vld [vmem:[%s6858_s16 + $0x278] sm:$0xff]  ;;  %v347_v4 = vld [vmem:[%s6858_s16 + $0x2b0] sm:$0xff] }
  0x2e   : > { %884 = vmatmul.mubr.bf16.vlgmr.msra.gmra.mrb[0].mxu0 %v373_v37  ;;  %5671 = vmatprep.subr.bf16.mxu1 %v6087_v59  ;;  %v332_v37 = vld [vmem:[%s6858_s16 + $0x238] sm:$0xff]  ;;  %v359_v11 = vld [vmem:[%s6858_s16 + $0x310] sm:$0xff]  ;;  %v274_v18 = vld [vmem:[%s6858_s16 + $0x68] sm:$0xff] }
  0x2f   : > { %5423 = vmatpush3.bf16.msra.mxu0 %v6084_v42  ;;  %891 = vmatprep.mubr.bf16.mxu0 %v381_v50  ;;  %v401_v42 = vpack.c.bf16 %v324_v36, %v317_v35  ;;  %v409_v44 = vpack.c.bf16 %v339_v38, %v332_v37  ;;  %v352_v0 = vld [vmem:[%s6858_s16 + $0x2d8] sm:$0xff]  ;;  %v265_v22 = vld [vmem:[%s6858_s16 + $0x20] sm:$0xff]  ;;  %v287_v26 = vld [vmem:[%s6858_s16 + $0xd0] sm:$0xff] }
  0x30   : > { %981 = vmatmul.mubr.bf16.vlgmr.msra.gmra.mrb[0].mxu1 %v375_v46  ;;  %5424 = vmatprep.subr.bf16.mxu0 %v6085_v51  ;;  %v341_v46 = vld [vmem:[%s6858_s16 + $0x280] sm:$0xff]  ;;  %v338_v51 = vld [vmem:[%s6858_s16 + $0x268] sm:$0xff]  ;;  %v360_v1 = vld [vmem:[%s6858_s16 + $0x318] sm:$0xff] }
  0x31   : > { %988 = vmatprep.mubr.bf16.mxu1 %v383_v55  ;;  %5672 = vmatpush3.bf16.msra.mxu1 %v6087_v59  ;;  %v411_v50 = vpack.c.bf16 %v341_v46, %v334_v45  ;;  %v408_v55 = vpack.c.bf16 %v338_v51, %v331_v49  ;;  %v348_v59 = vld [vmem:[%s6858_s16 + $0x2b8] sm:$0xff]  ;;  %v281_v27 = vld [vmem:[%s6858_s16 + $0xa0] sm:$0xff]  ;;  %v295_v29 = vld [vmem:[%s6858_s16 + $0x110] sm:$0xff] }
  0x32   : > { %v368_v15 = vld [vmem:[%s6858_s16 + $0x358] sm:$0xff]  ;;  %v302_v30 = vld [vmem:[%s6858_s16 + $0x148] sm:$0xff]  ;;  %v301_v37 = vld [vmem:[%s6858_s16 + $0x140] sm:$0xff] }
  0x33   : > { %5425 = vmatpush3.bf16.msra.mxu0 %v6086_v56  ;;  %v333_v56 = vld [vmem:[%s6858_s16 + $0x240] sm:$0xff]  ;;  %v272_v23 = vld [vmem:[%s6858_s16 + $0x58] sm:$0xff]  ;;  %v286_v35 = vld [vmem:[%s6858_s16 + $0xc8] sm:$0xff]  ;;  %v393_v38 = vpack.c.bf16 %v302_v30, %v295_v29 }
  0x34   : > { %5426 = vmatprep.subr.bf16.mxu0 %v6088_v2  ;;  %v410_v61 = vpack.c.bf16 %v340_v57, %v333_v56  ;;  %v367_v2 = vld [vmem:[%s6858_s16 + $0x350] sm:$0xff]  ;;  %v294_v36 = vld [vmem:[%s6858_s16 + $0x108] sm:$0xff]  ;;  %v309_v39 = vld [vmem:[%s6858_s16 + $0x180] sm:$0xff] }
  0x35   : > { %v316_v40 = vld [vmem:[%s6858_s16 + $0x1b8] sm:$0xff]  ;;  %v293_v45 = vld [vmem:[%s6858_s16 + $0x100] sm:$0xff]  ;;  %v315_v49 = vld [vmem:[%s6858_s16 + $0x1b0] sm:$0xff] }
  0x36   : > { %892 = vmatmul.mubr.bf16.gmra.mrb[4].mxu0 %v380_v54  ;;  %v353_v54 = vld [vmem:[%s6858_s16 + $0x2e0] sm:$0xff]  ;;  %v300_v46 = vld [vmem:[%s6858_s16 + $0x138] sm:$0xff]  ;;  %v307_v57 = vld [vmem:[%s6858_s16 + $0x170] sm:$0xff] }
  0x37   : > { %899 = vmatprep.mubr.bf16.mxu0 %v388_v63  ;;  %5427 = vmatpush3.bf16.msra.mxu0 %v6089_v6  ;;  %v416_v58 = vpack.c.bf16 %v353_v54, %v346_v53  ;;  %v345_v63 = vld [vmem:[%s6858_s16 + $0x2a0] sm:$0xff]  ;;  %v423_v6 = vpack.c.bf16 %v367_v2, %v360_v1  ;;  %v351_v53 = vld [vmem:[%s6858_s16 + $0x2d0] sm:$0xff]  ;;  %v358_v54 = vld [vmem:[%s6858_s16 + $0x308] sm:$0xff] }
  0x38   : > { %989 = vmatmul.mubr.bf16.gmra.mrb[4].mxu1 %v382_v62  ;;  %5428 = vmatprep.subr.bf16.mxu0 %v6090_v13  ;;  %v418_v62 = vpack.c.bf16 %v355_v60, %v348_v59  ;;  %v415_v3 = vpack.c.bf16 %v352_v0, %v345_v63  ;;  %v266_v13 = vld [vmem:[%s6858_s16 + $0x28] sm:$0xff]  ;;  %v337_v51 = vld [vmem:[%s6858_s16 + $0x260] sm:$0xff]  ;;  %v372_v0 = vld [vmem:[%s6858_s16 + $0x378] sm:$0xff] }
  0x39   : > { %996 = vmatprep.mubr.bf16.mxu1 %v390_v5  ;;  %v354_v5 = vld [vmem:[%s6858_s16 + $0x2e8] sm:$0xff]  ;;  %v365_v63 = vld [vmem:[%s6858_s16 + $0x340] sm:$0xff] }
  0x3a   : > { %v417_v9 = vpack.c.bf16 %v354_v5, %v347_v4  ;;  %v322_v60 = vld [vmem:[%s6858_s16 + $0x1e8] sm:$0xff]  ;;  %v328_v4 = vld [vmem:[%s6858_s16 + $0x218] sm:$0xff]  ;;  %v428_v5 = vpack.c.bf16 %v372_v0, %v365_v63  ;;  %v6104_v29 = vld [vmem:[%s8196_s2 + $0x20] sm:$0xff]  }
  0x3b   : > { %5429 = vmatpush3.bf16.msra.mxu0 %v6091_v16  ;;  %v273_v16 = vld [vmem:[%s6858_s16 + $0x60] sm:$0xff]  ;;  %v6105_v30 = vld [vmem:[%s8196_s2 + $0x28] sm:$0xff]  }
  0x3c   : > { %5430 = vmatprep.subr.bf16.mxu0 %v6092_v21  ;;  %v424_v21 = vpack.c.bf16 %v368_v15, %v361_v14 }
  0x3e   : > { %900 = vmatmul.mubr.bf16.gmra.mrb[8].mxu0 %v387_v10  ;;  %v425_v10 = vpack.c.bf16 %v369_v8, %v362_v7  ;;  %v343_v7 = vld [vmem:[%s6858_s16 + $0x290] sm:$0xff] }
  0x3f   : > { %907 = vmatprep.mubr.bf16.mxu0 %v395_v12  ;;  %5431 = vmatpush3.bf16.msra.mxu0 %v6093_v24  ;;  %v366_v12 = vld [vmem:[%s6858_s16 + $0x348] sm:$0xff] }
  0x40   : > { %997 = vmatmul.mubr.bf16.gmra.mrb[8].mxu1 %v389_v17  ;;  %5432 = vmatprep.subr.bf16.mxu0 %v6094_v31  ;;  %v267_v17 = vld [vmem:[%s6858_s16 + $0x30] sm:$0xff]  ;;  %v422_v19 = vpack.c.bf16 %v366_v12, %v359_v11  ;;  %v377_v31 = vpack.c.bf16 %v272_v23, %v265_v22  ;;  %v342_v11 = vld [vmem:[%s6858_s16 + $0x288] sm:$0xff] }
  0x41   : > { %1004 = vmatprep.mubr.bf16.mxu1 %v397_v20  ;;  %v378_v20 = vpack.c.bf16 %v273_v16, %v266_v13  ;;  %v379_v24 = vpack.c.bf16 %v274_v18, %v267_v17  ;;  %v350_v12 = vld [vmem:[%s6858_s16 + $0x2c8] sm:$0xff]  ;;  %v357_v13 = vld [vmem:[%s6858_s16 + $0x300] sm:$0xff]  ;;  %v356_v17 = vld [vmem:[%s6858_s16 + $0x2f8] sm:$0xff] }
  0x42   : > { %v420_v15 = vpack.c.bf16 %v357_v13, %v350_v12  ;;  %v349_v16 = vld [vmem:[%s6858_s16 + $0x2c0] sm:$0xff]  ;;  %v364_v18 = vld [vmem:[%s6858_s16 + $0x338] sm:$0xff]  ;;  %v363_v22 = vld [vmem:[%s6858_s16 + $0x330] sm:$0xff] }
  0x43   : > { %5433 = vmatpush3.bf16.msra.mxu0 %v6095_v34  ;;  %v279_v34 = vld [vmem:[%s6858_s16 + $0x90] sm:$0xff]  ;;  %v370_v23 = vld [vmem:[%s6858_s16 + $0x368] sm:$0xff] }
  0x44   : > { %5434 = vmatprep.subr.bf16.mxu0 %v6096_v41  ;;  %v323_v41 = vld [vmem:[%s6858_s16 + $0x1f0] sm:$0xff] }
  0x46   : > { %908 = vmatmul.mubr.bf16.gmra.mrb[12].mxu0 %v394_v25  ;;  %v280_v25 = vld [vmem:[%s6858_s16 + $0x98] sm:$0xff] }
  0x47   : > { %915 = vmatprep.mubr.bf16.mxu0 %v402_v28  ;;  %5435 = vmatpush3.bf16.msra.mxu0 %v6097_v43  ;;  %v288_v28 = vld [vmem:[%s6858_s16 + $0xd8] sm:$0xff]  ;;  %v384_v43 = vpack.c.bf16 %v286_v35, %v279_v34  ;;  %v7067_v34 = vld [vmem:[%s8198_s4] ss:$0 sm:$0xff] }
  0x48   : > { %1005 = vmatmul.mubr.bf16.gmra.mrb[12].mxu1 %v396_v32  ;;  %5436 = vmatprep.subr.bf16.mxu0 %v6098_v48  ;;  %v385_v32 = vpack.c.bf16 %v287_v26, %v280_v25  ;;  %v308_v48 = vld [vmem:[%s6858_s16 + $0x178] sm:$0xff]  ;;  %v6100_v25 = vld [vmem:[%s8196_s2] sm:$0xff]   ;;  %v6101_v26 = vld [vmem:[%s8196_s2 + $0x8] sm:$0xff]  }
  0x49   : > { %1012 = vmatprep.mubr.bf16.mxu1 %v404_v33  ;;  %v386_v33 = vpack.c.bf16 %v288_v28, %v281_v27  ;;  %v399_v56 = vpack.c.bf16 %v315_v49, %v308_v48  ;;  %5689 = vmatprep.subr.bf16.mxu1 %v6100_v25  ;;  %v6102_v27 = vld [vmem:[%s8196_s2 + $0x10] sm:$0xff]   ;;  %v6103_v28 = vld [vmem:[%s8196_s2 + $0x18] sm:$0xff]   ;;  %v6109_v48 = vld [vmem:[%s8196_s2 + $0x48] sm:$0xff]  }
  0x4b   : > { %5437 = vmatpush3.bf16.msra.mxu0 %v6099_v52  ;;  %v344_v52 = vld [vmem:[%s6858_s16 + $0x298] sm:$0xff] }
  0x4c   : > { %v414_v59 = vpack.c.bf16 %v344_v52, %v337_v51 }
  0x4e   : > { %916 = vmatmul.mubr.bf16.gmra.mrb[16].mxu0 %v401_v42  ;;  %v330_v42 = vld [vmem:[%s6858_s16 + $0x228] sm:$0xff] }
  0x4f   : > { %923 = vmatprep.mubr.bf16.mxu0 %v409_v44  ;;  %v392_v44 = vpack.c.bf16 %v301_v37, %v294_v36 }
  0x50   : > { %1013 = vmatmul.mubr.bf16.gmra.mrb[16].mxu1 %v403_v47  ;;  %v400_v47 = vpack.c.bf16 %v316_v40, %v309_v39 }
  0x51   : > { %1020 = vmatprep.mubr.bf16.mxu1 %v411_v50  ;;  %v407_v50 = vpack.c.bf16 %v330_v42, %v323_v41 }
  0x56   : > { %924 = vmatmul.mubr.bf16.gmra.mrb[20].mxu0 %v408_v55  ;;  %v391_v55 = vpack.c.bf16 %v300_v46, %v293_v45 }
  0x57   : > { %931 = vmatprep.mubr.bf16.mxu0 %v416_v58  ;;  %v314_v58 = vld [vmem:[%s6858_s16 + $0x1a8] sm:$0xff] }
  0x58   : > { %1021 = vmatmul.mubr.bf16.gmra.mrb[20].mxu1 %v410_v61  ;;  %v329_v61 = vld [vmem:[%s6858_s16 + $0x220] sm:$0xff]  ;;  %v398_v1 = vpack.c.bf16 %v314_v58, %v307_v57 }
  0x59   : > { %1028 = vmatprep.mubr.bf16.mxu1 %v418_v62  ;;  %v421_v62 = vpack.c.bf16 %v358_v54, %v351_v53  ;;  %v406_v2 = vpack.c.bf16 %v329_v61, %v322_v60 }
  0x5e   : > { %932 = vmatmul.mubr.bf16.gmra.mrb[24].mxu0 %v415_v3  ;;  %v321_v3 = vld [vmem:[%s6858_s16 + $0x1e0] sm:$0xff] }
  0x5f   : > { %939 = vmatprep.mubr.bf16.mxu0 %v423_v6  ;;  %v336_v6 = vld [vmem:[%s6858_s16 + $0x258] sm:$0xff]  ;;  %v405_v8 = vpack.c.bf16 %v328_v4, %v321_v3 }
  0x60   : > { %1029 = vmatmul.mubr.bf16.gmra.mrb[24].mxu1 %v417_v9  ;;  %v413_v9 = vpack.c.bf16 %v343_v7, %v336_v6 }
  0x61   : > { %1036 = vmatprep.mubr.bf16.mxu1 %v425_v10  ;;  %v335_v10 = vld [vmem:[%s6858_s16 + $0x250] sm:$0xff] }
  0x62   : > { %v412_v14 = vpack.c.bf16 %v342_v11, %v335_v10  ;;  %v6112_v10 = vld [vmem:[%s8196_s2 + $0x60] sm:$0xff]  }
  0x66   : > { %940 = vmatmul.mubr.bf16.gmra.mrb[28].mxu0 %v422_v19  ;;  %v371_v19 = vld [vmem:[%s6858_s16 + $0x370] sm:$0xff] }
  0x67   : > { %1077 = vmatprep.mubr.bf16.mxu0 %v378_v20  ;;  %v419_v20 = vpack.c.bf16 %v356_v17, %v349_v16 }
  0x68   : > { %1037 = vmatmul.mubr.bf16.gmra.mrb[28].mxu1 %v424_v21  ;;  %v427_v21 = vpack.c.bf16 %v371_v19, %v364_v18 }
  0x69   : > { %5673 = vmatprep.mubr.msk.bf16.mxu1 %vm826_vm0, %v379_v24  ;;  %v426_v24 = vpack.c.bf16 %v370_v23, %v363_v22 }
  0x6e   : > { %1078 = vmatmul.mubr.bf16.vlgmr.msra.gmra.mrb[32].mxu0 %v377_v31  ;;  %v6106_v31 = vld [vmem:[%s8196_s2 + $0x30] sm:$0xff]  }
  0x6f   : > { %1085 = vmatprep.mubr.bf16.mxu0 %v385_v32  ;;  %v6107_v32 = vld [vmem:[%s8196_s2 + $0x38] sm:$0xff]  }
  0x70   : > { %5674 = vmatmul.mubr.msk.bf16.vlgmr.msra.gmra.mrb[32].mxu1 %vm826_vm0, %v386_v33 }
  0x71   : > { %5677 = vmatprep.mubr.msk.bf16.mxu1 %vm826_vm0, %v393_v38  ;;  %5690 = vmatpush3.bf16.msra.mxu1 %v6100_v25 }
  0x72   : > { %5691 = vmatprep.subr.bf16.mxu1 %v6101_v26 }
  0x75   : > { %5692 = vmatpush3.bf16.msra.mxu1 %v6101_v26 }
  0x76   : > { %1086 = vmatmul.mubr.bf16.gmra.mrb[36].mxu0 %v384_v43  ;;  %5693 = vmatprep.subr.bf16.mxu1 %v6102_v27 }
  0x77   : > { %1093 = vmatprep.mubr.bf16.mxu0 %v392_v44 }
  0x78   : > { %5678 = vmatmul.mubr.msk.bf16.gmra.mrb[36].mxu1 %vm826_vm0, %v400_v47  ;;  %v6108_v47 = vld [vmem:[%s8196_s2 + $0x40] sm:$0xff]  }
  0x79   : > { %5681 = vmatprep.mubr.msk.bf16.mxu1 %vm826_vm0, %v407_v50  ;;  %5694 = vmatpush3.bf16.msra.mxu1 %v6102_v27 }
  0x7a   : > { %5695 = vmatprep.subr.bf16.mxu1 %v6103_v28  ;;  %5721 = vmatprep.subr.bf16.mxu0 %v6108_v47 }
  0x7b   : > { %5722 = vmatpush3.bf16.msra.mxu0 %v6108_v47 }
  0x7c   : > { %5723 = vmatprep.subr.bf16.mxu0 %v6109_v48 }
  0x7d   : > { %5696 = vmatpush3.bf16.msra.mxu1 %v6103_v28  ;;  %v6114_v28 = vld [vmem:[%s8196_s2 + $0x70] sm:$0xff]  }
  0x7e   : > { %1094 = vmatmul.mubr.bf16.gmra.mrb[40].mxu0 %v391_v55  ;;  %5697 = vmatprep.subr.bf16.mxu1 %v6104_v29 }
  0x7f   : > { %1101 = vmatprep.mubr.bf16.mxu0 %v399_v56  ;;  %v6110_v56 = vld [vmem:[%s8196_s2 + $0x50] sm:$0xff]   ;;  %5724 = vmatpush3.bf16.msra.mxu0 %v6109_v48 }
  0x80   : > { %5682 = vmatmul.mubr.msk.bf16.gmra.mrb[40].mxu1 %vm826_vm0, %v414_v59  ;;  %5725 = vmatprep.subr.bf16.mxu0 %v6110_v56 }
  0x81   : > { %5685 = vmatprep.mubr.msk.bf16.mxu1 %vm826_vm0, %v421_v62  ;;  %5698 = vmatpush3.bf16.msra.mxu1 %v6104_v29 }
  0x82   : > { %5699 = vmatprep.subr.bf16.mxu1 %v6105_v30 }
  0x83   : > { %5726 = vmatpush3.bf16.msra.mxu0 %v6110_v56 }
  0x85   : > { %5700 = vmatpush3.bf16.msra.mxu1 %v6105_v30 }
  0x86   : > { %1102 = vmatmul.mubr.bf16.gmra.mrb[44].mxu0 %v398_v1  ;;  %5701 = vmatprep.subr.bf16.mxu1 %v6106_v31 }
  0x87   : > { %1109 = vmatprep.mubr.bf16.mxu0 %v406_v2  ;;  %v6111_v2 = vld [vmem:[%s8196_s2 + $0x58] sm:$0xff]  }
  0x88   : > { %5686 = vmatmul.mubr.msk.bf16.gmra.mrb[44].mxu1 %vm826_vm0, %v428_v5  ;;  %5727 = vmatprep.subr.bf16.mxu0 %v6111_v2 }
  0x89   : > { %5702 = vmatpush3.bf16.msra.mxu1 %v6106_v31  ;;  %5728 = vmatpush3.bf16.msra.mxu0 %v6111_v2 }
  0x8a   : > { %5703 = vmatprep.subr.bf16.mxu1 %v6107_v32  ;;  %5729 = vmatprep.subr.bf16.mxu0 %v6112_v10 }
  0x8d   : > { %5704 = vmatpush3.bf16.msra.mxu1 %v6107_v32  ;;  %5730 = vmatpush3.bf16.msra.mxu0 %v6112_v10 }
  0x8e   : > { %1110 = vmatmul.mubr.bf16.gmra.mrb[48].mxu0 %v405_v8 }
  0x8f   : > { %1117 = vmatprep.mubr.bf16.mxu0 %v413_v9 }
  0x96   : > { %1118 = vmatmul.mubr.bf16.gmra.mrb[52].mxu0 %v412_v14 }
  0x97   : > { %1125 = vmatprep.mubr.bf16.mxu0 %v420_v15 }
  0x9e   : > { %1126 = vmatmul.mubr.bf16.gmra.mrb[56].mxu0 %v419_v20  ;;  %v6113_v20 = vld [vmem:[%s8196_s2 + $0x68] sm:$0xff]  }
  0x9f   : > { %1133 = vmatprep.mubr.bf16.mxu0 %v427_v21  ;;  %5731 = vmatprep.subr.bf16.mxu0 %v6113_v20 }
  0xa0   : > { %5732 = vmatpush3.bf16.msra.mxu0 %v6113_v20 }
  0xa1   : > { %5733 = vmatprep.subr.bf16.mxu0 %v6114_v28 }
  0xa4   : > { %5734 = vmatpush3.bf16.msra.mxu0 %v6114_v28 }
  0xa6   : > { %1134 = vmatmul.mubr.bf16.gmra.mrb[60].mxu0 %v426_v24 }
 0x101   : > { %v5310_v33 = vpop.f32.mrb[0].mxu0 }
 0x102   : > { %v5311_v35 = vpop.f32.mrb[1].mxu0 }
 0x103   : > { %v5312_v36 = vadd.f32 %v5311_v35, %v5310_v33  ;;  %v5313_v37 = vpop.f32.mrb[2].mxu0  ;;  %v5374_v38 = vpop.f32.mrb[0].mxu1 }
 0x104   : > { %v5314_v39 = vpop.f32.mrb[3].mxu0  ;;  %v5375_v42 = vpop.f32.mrb[1].mxu1 }
 0x105   : > { %v886_v40 = vadd.f32 %v5312_v36, %v7067_v34  ;;  %v5315_v41 = vadd.f32 %v5314_v39, %v5313_v37  ;;  %v5376_v43 = vadd.f32 %v5375_v42, %v5374_v38  ;;  %v5377_v44 = vpop.f32.mrb[2].mxu1 }
 0x106   : > { %v5378_v46 = vpop.f32.mrb[3].mxu1 }
 0x107   : > { %v889_v45 = vadd.f32 %v5315_v41, %v7067_v34  ;;  %v7077_v49 = vadd.f32 %v5376_v43, %v886_v40  ;;  %v5379_v50 = vadd.f32 %v5378_v46, %v5377_v44 }
 0x109   : > { %v5316_v51 = vpop.f32.mrb[4].mxu0  ;;  %v7079_v52 = vadd.f32 %v5379_v50, %v889_v45 }
 0x10a   : > { %v5317_v53 = vpop.f32.mrb[5].mxu0 }
 0x10b   : > { %v5318_v54 = vadd.f32 %v5317_v53, %v5316_v51  ;;  %v5319_v55 = vpop.f32.mrb[6].mxu0  ;;  %v5380_v57 = vpop.f32.mrb[4].mxu1 }
 0x10c   : > { %v5320_v58 = vpop.f32.mrb[7].mxu0  ;;  %v5381_v61 = vpop.f32.mrb[5].mxu1 }
 0x10d   : > { %v894_v59 = vadd.f32 %v5318_v54, %v7067_v34  ;;  %v5321_v60 = vadd.f32 %v5320_v58, %v5319_v55  ;;  %v5382_v62 = vadd.f32 %v5381_v61, %v5380_v57  ;;  %v5383_v63 = vpop.f32.mrb[6].mxu1 }
 0x10e   : > { %v5384_v1 = vpop.f32.mrb[7].mxu1 }
 0x10f   : > { %v897_v0 = vadd.f32 %v5321_v60, %v7067_v34  ;;  %v7089_v3 = vadd.f32 %v5382_v62, %v894_v59  ;;  %v5385_v4 = vadd.f32 %v5384_v1, %v5383_v63 }
 0x111   : > { %v5322_v5 = vpop.f32.mrb[8].mxu0  ;;  %v7091_v6 = vadd.f32 %v5385_v4, %v897_v0 }
 0x112   : > { %v5323_v7 = vpop.f32.mrb[9].mxu0 }
 0x113   : > { %v5324_v8 = vadd.f32 %v5323_v7, %v5322_v5  ;;  %v5325_v9 = vpop.f32.mrb[10].mxu0  ;;  %v5386_v11 = vpop.f32.mrb[8].mxu1 }
 0x114   : > { %v5326_v12 = vpop.f32.mrb[11].mxu0  ;;  %v5387_v15 = vpop.f32.mrb[9].mxu1 }
 0x115   : > { %v902_v13 = vadd.f32 %v5324_v8, %v7067_v34  ;;  %v5327_v14 = vadd.f32 %v5326_v12, %v5325_v9  ;;  %v5388_v16 = vadd.f32 %v5387_v15, %v5386_v11  ;;  %v5389_v17 = vpop.f32.mrb[10].mxu1 }
 0x116   : > { %v5390_v19 = vpop.f32.mrb[11].mxu1 }
 0x117   : > { %v905_v18 = vadd.f32 %v5327_v14, %v7067_v34  ;;  %v7101_v21 = vadd.f32 %v5388_v16, %v902_v13  ;;  %v5391_v22 = vadd.f32 %v5390_v19, %v5389_v17 }
 0x119   : > { %v5328_v23 = vpop.f32.mrb[12].mxu0  ;;  %v7103_v24 = vadd.f32 %v5391_v22, %v905_v18 }
 0x11a   : > { %v5329_v25 = vpop.f32.mrb[13].mxu0 }
 0x11b   : > { %v5330_v26 = vadd.f32 %v5329_v25, %v5328_v23  ;;  %v5331_v27 = vpop.f32.mrb[14].mxu0  ;;  %v5392_v29 = vpop.f32.mrb[12].mxu1 }
 0x11c   : > { %v5332_v30 = vpop.f32.mrb[15].mxu0  ;;  %v5393_v33 = vpop.f32.mrb[13].mxu1 }
 0x11d   : > { %v910_v31 = vadd.f32 %v5330_v26, %v7067_v34  ;;  %v5333_v32 = vadd.f32 %v5332_v30, %v5331_v27  ;;  %v5394_v35 = vadd.f32 %v5393_v33, %v5392_v29  ;;  %v5395_v36 = vpop.f32.mrb[14].mxu1 }
 0x11e   : > { %v5396_v38 = vpop.f32.mrb[15].mxu1 }
 0x11f   : > { %v913_v37 = vadd.f32 %v5333_v32, %v7067_v34  ;;  %v7110_v39 = vadd.f32 %v5394_v35, %v910_v31  ;;  %v5397_v40 = vadd.f32 %v5396_v38, %v5395_v36 }
 0x121   : > { %v5334_v41 = vpop.f32.mrb[16].mxu0  ;;  %v7112_v42 = vadd.f32 %v5397_v40, %v913_v37 }
 0x122   : > { %v5335_v43 = vpop.f32.mrb[17].mxu0 }
 0x123   : > { %v5336_v44 = vadd.f32 %v5335_v43, %v5334_v41  ;;  %v5337_v45 = vpop.f32.mrb[18].mxu0  ;;  %v5398_v46 = vpop.f32.mrb[16].mxu1 }
 0x124   : > { %v5338_v47 = vpop.f32.mrb[19].mxu0  ;;  %v5399_v51 = vpop.f32.mrb[17].mxu1 }
 0x125   : > { %v918_v48 = vadd.f32 %v5336_v44, %v7067_v34  ;;  %v5339_v50 = vadd.f32 %v5338_v47, %v5337_v45  ;;  %v5400_v53 = vadd.f32 %v5399_v51, %v5398_v46  ;;  %v5401_v54 = vpop.f32.mrb[18].mxu1 }
 0x126   : > { %v5402_v56 = vpop.f32.mrb[19].mxu1 }
 0x127   : > { %v921_v55 = vadd.f32 %v5339_v50, %v7067_v34  ;;  %v7116_v57 = vadd.f32 %v5400_v53, %v918_v48  ;;  %v5403_v58 = vadd.f32 %v5402_v56, %v5401_v54 }
 0x129   : > { %v5340_v59 = vpop.f32.mrb[20].mxu0  ;;  %v7118_v60 = vadd.f32 %v5403_v58, %v921_v55 }
 0x12a   : > { %v5341_v61 = vpop.f32.mrb[21].mxu0 }
 0x12b   : > { %v5342_v62 = vadd.f32 %v5341_v61, %v5340_v59  ;;  %v5343_v63 = vpop.f32.mrb[22].mxu0  ;;  %v5404_v0 = vpop.f32.mrb[20].mxu1 }
 0x12c   : > { %v5344_v1 = vpop.f32.mrb[23].mxu0  ;;  %v5405_v5 = vpop.f32.mrb[21].mxu1 }
 0x12d   : > { %v926_v2 = vadd.f32 %v5342_v62, %v7067_v34  ;;  %v5345_v4 = vadd.f32 %v5344_v1, %v5343_v63  ;;  %v5406_v7 = vadd.f32 %v5405_v5, %v5404_v0  ;;  %v5407_v8 = vpop.f32.mrb[22].mxu1 }
 0x12e   : > { %v5408_v10 = vpop.f32.mrb[23].mxu1 }
 0x12f   : > { %v929_v9 = vadd.f32 %v5345_v4, %v7067_v34  ;;  %v7122_v11 = vadd.f32 %v5406_v7, %v926_v2  ;;  %v5409_v12 = vadd.f32 %v5408_v10, %v5407_v8 }
 0x131   : > { %v5346_v13 = vpop.f32.mrb[24].mxu0  ;;  %v7124_v14 = vadd.f32 %v5409_v12, %v929_v9 }
 0x132   : > { %v5347_v15 = vpop.f32.mrb[25].mxu0 }
 0x133   : > { %v5348_v16 = vadd.f32 %v5347_v15, %v5346_v13  ;;  %v5349_v17 = vpop.f32.mrb[26].mxu0  ;;  %v5410_v18 = vpop.f32.mrb[24].mxu1 }
 0x134   : > { %v5350_v19 = vpop.f32.mrb[27].mxu0  ;;  %v5411_v23 = vpop.f32.mrb[25].mxu1 }
 0x135   : > { %v934_v20 = vadd.f32 %v5348_v16, %v7067_v34  ;;  %v5351_v22 = vadd.f32 %v5350_v19, %v5349_v17  ;;  %v5412_v25 = vadd.f32 %v5411_v23, %v5410_v18  ;;  %v5413_v26 = vpop.f32.mrb[26].mxu1 }
 0x136   : > { %v5414_v28 = vpop.f32.mrb[27].mxu1 }
 0x137   : > { %v937_v27 = vadd.f32 %v5351_v22, %v7067_v34  ;;  %v7128_v29 = vadd.f32 %v5412_v25, %v934_v20  ;;  %v5415_v30 = vadd.f32 %v5414_v28, %v5413_v26 }
 0x139   : > { %v5352_v31 = vpop.f32.mrb[28].mxu0  ;;  %v7130_v32 = vadd.f32 %v5415_v30, %v937_v27 }
 0x13a   : > { %v5353_v33 = vpop.f32.mrb[29].mxu0 }
 0x13b   : > { %v5354_v35 = vadd.f32 %v5353_v33, %v5352_v31  ;;  %v5355_v36 = vpop.f32.mrb[30].mxu0  ;;  %v5416_v37 = vpop.f32.mrb[28].mxu1 }
 0x13c   : > { %v5356_v38 = vpop.f32.mrb[31].mxu0  ;;  %v5417_v43 = vpop.f32.mrb[29].mxu1 }
 0x13d   : > { %v942_v40 = vadd.f32 %v5354_v35, %v7067_v34  ;;  %v5357_v41 = vadd.f32 %v5356_v38, %v5355_v36  ;;  %v5418_v44 = vadd.f32 %v5417_v43, %v5416_v37  ;;  %v5419_v45 = vpop.f32.mrb[30].mxu1 }
 0x13e   : > { %v5420_v47 = vpop.f32.mrb[31].mxu1 }
 0x13f   : > { %v945_v46 = vadd.f32 %v5357_v41, %v7067_v34  ;;  %v7134_v48 = vadd.f32 %v5418_v44, %v942_v40  ;;  %v5421_v50 = vadd.f32 %v5420_v47, %v5419_v45 }
 0x141   : > { %v5438_v51 = vpop.f32.mrb[32].mxu0  ;;  %v7136_v53 = vadd.f32 %v5421_v50, %v945_v46 }
 0x142   : > { %v5439_v54 = vpop.f32.mrb[33].mxu0 }
 0x143   : > { %v5440_v55 = vadd.f32 %v5439_v54, %v5438_v51  ;;  %v5441_v56 = vpop.f32.mrb[34].mxu0  ;;  %v5675_v59 = vpop.f32.mrb[32].mxu1 }
 0x144   : > { %v5442_v58 = vpop.f32.mrb[35].mxu0  ;;  %v1176_v63 = vpop.f32.mrb[33].mxu1 }
 0x145   : > { %v5443_v61 = vadd.f32 %v5442_v58, %v5441_v56  ;;  %v1080_v62 = vadd.f32 %v5440_v55, %v7077_v49  ;;  %v5676_v0 = vpop.f32.mrb[34].mxu1 }
 0x146   : > { %v1179_v2 = vpop.f32.mrb[35].mxu1 }
 0x147   : > { %v1177_v1 = vadd.f32 %v1176_v63, %v1080_v62  ;;  %v1083_v34 = vadd.f32 %v5443_v61, %v7079_v52 }
 0x149   : > { %v1180_v4 = vadd.f32 %v1179_v2, %v1083_v34  ;;  %v5444_v5 = vpop.f32.mrb[36].mxu0  ;;  %v1239_v8 = vmax.f32 %v1177_v1, 0.0 }
 0x14a   : > { %v5445_v7 = vpop.f32.mrb[37].mxu0 }
 0x14b   : > { %v1240_v9 = vmax.f32 %v1180_v4, 0.0  ;;  %v5446_v10 = vadd.f32 %v5445_v7, %v5444_v5  ;;  %v5447_v12 = vpop.f32.mrb[38].mxu0  ;;  %v5679_v15 = vpop.f32.mrb[36].mxu1 }
 0x14c   : > { %v5448_v13 = vpop.f32.mrb[39].mxu0  ;;  %v1192_v49 = vpop.f32.mrb[37].mxu1 }
 0x14d   : > { %v1255_v16 = vpack.c.bf16 %v1240_v9, %v1239_v8  ;;  %v1088_v17 = vadd.f32 %v5446_v10, %v7089_v3  ;;  %v5449_v18 = vadd.f32 %v5448_v13, %v5447_v12  ;;  %v5680_v19 = vpop.f32.mrb[38].mxu1 }
 0x14e   : > { %v1195_v52 = vpop.f32.mrb[39].mxu1 }
 0x14f   : > { %v1185_v20 = vadd.f32 %v5675_v59, %v1088_v17  ;;  %v1091_v22 = vadd.f32 %v5449_v18, %v7091_v6  ;;  %5705 = vmatprep.mubr.bf16.mxu1 %v1255_v16 }
 0x151   : > { %v1188_v23 = vadd.f32 %v5676_v0, %v1091_v22  ;;  %v5450_v25 = vpop.f32.mrb[40].mxu0  ;;  %v1241_v27 = vmax.f32 %v1185_v20, 0.0 }
 0x152   : > { %v5451_v26 = vpop.f32.mrb[41].mxu0 }
 0x153   : > { %v1242_v28 = vmax.f32 %v1188_v23, 0.0  ;;  %v5452_v30 = vadd.f32 %v5451_v26, %v5450_v25  ;;  %v5453_v31 = vpop.f32.mrb[42].mxu0  ;;  %v5683_v35 = vpop.f32.mrb[40].mxu1 }
 0x154   : > { %v5454_v33 = vpop.f32.mrb[43].mxu0  ;;  %v1208_v38 = vpop.f32.mrb[41].mxu1 }
 0x155   : > { %v1256_v36 = vpack.c.bf16 %v1242_v28, %v1241_v27  ;;  %v5455_v37 = vadd.f32 %v5454_v33, %v5453_v31  ;;  %v1096_v3 = vadd.f32 %v5452_v30, %v7101_v21  ;;  %v5684_v40 = vpop.f32.mrb[42].mxu1 }
 0x156   : > { %v1211_v43 = vpop.f32.mrb[43].mxu1 }
 0x157   : > { %v1193_v41 = vadd.f32 %v1192_v49, %v1096_v3  ;;  %5706 = vmatmul.mubr.bf16.vlgmr.msra.gmra.mrb[48].mxu1 %v1256_v36  ;;  %v1099_v6 = vadd.f32 %v5455_v37, %v7103_v24 }
 0x159   : > { %v1196_v44 = vadd.f32 %v1195_v52, %v1099_v6  ;;  %v5456_v45 = vpop.f32.mrb[44].mxu0  ;;  %v1243_v47 = vmax.f32 %v1193_v41, 0.0 }
 0x15a   : > { %v5457_v46 = vpop.f32.mrb[45].mxu0 }
 0x15b   : > { %v1244_v50 = vmax.f32 %v1196_v44, 0.0  ;;  %v5458_v51 = vadd.f32 %v5457_v46, %v5456_v45  ;;  %v5459_v54 = vpop.f32.mrb[46].mxu0  ;;  %v7144_v56 = vpop.f32.mrb[44].mxu1 }
 0x15c   : > { %v5460_v55 = vpop.f32.mrb[47].mxu0  ;;  %v1224_v61 = vpop.f32.mrb[45].mxu1 }
 0x15d   : > { %v1257_v58 = vpack.c.bf16 %v1244_v50, %v1243_v47  ;;  %v1104_v21 = vadd.f32 %v5458_v51, %v7110_v39  ;;  %v5461_v59 = vadd.f32 %v5460_v55, %v5459_v54  ;;  %v5688_v62 = vpop.f32.mrb[46].mxu1 }
 0x15e   : > { %v1227_v0 = vpop.f32.mrb[47].mxu1 }
 0x15f   : > { %v1201_v63 = vadd.f32 %v5679_v15, %v1104_v21  ;;  %v1107_v24 = vadd.f32 %v5461_v59, %v7112_v42  ;;  %5709 = vmatprep.mubr.bf16.mxu1 %v1257_v58 }
 0x161   : > { %v1204_v1 = vadd.f32 %v5680_v19, %v1107_v24  ;;  %v5462_v34 = vpop.f32.mrb[48].mxu0  ;;  %v1245_v4 = vmax.f32 %v1201_v63, 0.0  ;;  %v6120_v63 = vld [vmem:[%s8196_s2 + $0xa0] sm:$0xff]   ;;  %v6121_v24 = vld [vmem:[%s8196_s2 + $0xa8] sm:$0xff]  }
 0x162   : > { %v5463_v2 = vpop.f32.mrb[49].mxu0 }
 0x163   : > { %v1246_v5 = vmax.f32 %v1204_v1, 0.0  ;;  %v5464_v7 = vadd.f32 %v5463_v2, %v5462_v34  ;;  %v5465_v8 = vpop.f32.mrb[50].mxu0 }
 0x164   : > { %v5466_v9 = vpop.f32.mrb[51].mxu0 }
 0x165   : > { %v5467_v10 = vadd.f32 %v5466_v9, %v5465_v8  ;;  %v1112_v12 = vadd.f32 %v5464_v7, %v7116_v57  ;;  %v1258_v39 = vpack.c.bf16 %v1246_v5, %v1245_v4 }
 0x167   : > { %v1209_v13 = vadd.f32 %v1208_v38, %v1112_v12  ;;  %5710 = vmatmul.mubr.bf16.gmra.mrb[52].mxu1 %v1258_v39  ;;  %v1115_v15 = vadd.f32 %v5467_v10, %v7118_v60 }
 0x169   : > { %v1212_v16 = vadd.f32 %v1211_v43, %v1115_v15  ;;  %v5468_v42 = vpop.f32.mrb[52].mxu0  ;;  %v1247_v18 = vmax.f32 %v1209_v13, 0.0 }
 0x16a   : > { %v5469_v17 = vpop.f32.mrb[53].mxu0 }
 0x16b   : > { %v1248_v49 = vmax.f32 %v1212_v16, 0.0  ;;  %v5470_v19 = vadd.f32 %v5469_v17, %v5468_v42  ;;  %v5471_v20 = vpop.f32.mrb[54].mxu0 }
 0x16c   : > { %v5472_v22 = vpop.f32.mrb[55].mxu0 }
 0x16d   : > { %v1259_v52 = vpack.c.bf16 %v1248_v49, %v1247_v18  ;;  %v1120_v23 = vadd.f32 %v5470_v19, %v7122_v11  ;;  %v5473_v25 = vadd.f32 %v5472_v22, %v5471_v20 }
 0x16f   : > { %v1217_v26 = vadd.f32 %v5683_v35, %v1120_v23  ;;  %v1123_v57 = vadd.f32 %v5473_v25, %v7124_v14  ;;  %5713 = vmatprep.mubr.bf16.mxu1 %v1259_v52 }
 0x171   : > { %v1220_v27 = vadd.f32 %v5684_v40, %v1123_v57  ;;  %v5474_v28 = vpop.f32.mrb[56].mxu0  ;;  %v1249_v60 = vmax.f32 %v1217_v26, 0.0 }
 0x172   : > { %v5475_v30 = vpop.f32.mrb[57].mxu0 }
 0x173   : > { %v1250_v31 = vmax.f32 %v1220_v27, 0.0  ;;  %v5476_v33 = vadd.f32 %v5475_v30, %v5474_v28  ;;  %v5477_v36 = vpop.f32.mrb[58].mxu0 }
 0x174   : > { %v5478_v37 = vpop.f32.mrb[59].mxu0 }
 0x175   : > { %v5479_v3 = vadd.f32 %v5478_v37, %v5477_v36  ;;  %v1128_v38 = vadd.f32 %v5476_v33, %v7128_v29  ;;  %v1260_v41 = vpack.c.bf16 %v1250_v31, %v1249_v60 }
 0x177   : > { %v1225_v6 = vadd.f32 %v1224_v61, %v1128_v38  ;;  %5714 = vmatmul.mubr.bf16.gmra.mrb[56].mxu1 %v1260_v41  ;;  %v1131_v11 = vadd.f32 %v5479_v3, %v7130_v32  ;;  %v6115_v61 = vld [vmem:[%s8196_s2 + $0x78] sm:$0xff]  }
 0x178   : > { %5735 = vmatprep.subr.bf16.mxu0 %v6115_v61 }
 0x179   : > { %v1228_v35 = vadd.f32 %v1227_v0, %v1131_v11  ;;  %v5480_v43 = vpop.f32.mrb[60].mxu0  ;;  %v1251_v44 = vmax.f32 %v1225_v6, 0.0  ;;  %5736 = vmatpush3.bf16.msra.mxu0 %v6115_v61  ;;  %v4890_v0 = vld [vmem:[%s8198_s4 + $0x1] ss:$0 sm:$0xff]  ;;  %v6122_v61 = vld [vmem:[%s8196_s2 + $0xb0] sm:$0xff]  }
 0x17a   : > { %v5481_v14 = vpop.f32.mrb[61].mxu0 }
 0x17b   : > { %v1252_v40 = vmax.f32 %v1228_v35, 0.0  ;;  %v5482_v45 = vadd.f32 %v5481_v14, %v5480_v43  ;;  %v5483_v46 = vpop.f32.mrb[62].mxu0 }
 0x17c   : > { %v5484_v47 = vpop.f32.mrb[63].mxu0 }
 0x17d   : > { %v1261_v50 = vpack.c.bf16 %v1252_v40, %v1251_v44  ;;  %v1136_v51 = vadd.f32 %v5482_v45, %v7134_v48  ;;  %v5485_v54 = vadd.f32 %v5484_v47, %v5483_v46  ;;  %v6116_v48 = vld [vmem:[%s8196_s2 + $0x80] sm:$0xff]  }
 0x17e   : > { %5753 = vmatprep.subr.bf16.mxu1 %v6116_v48 }
 0x17f   : > { %v1233_v55 = vadd.f32 %v7144_v56, %v1136_v51  ;;  %v1139_v29 = vadd.f32 %v5485_v54, %v7136_v53  ;;  %5717 = vmatprep.mubr.bf16.mxu1 %v1261_v50  ;;  %v6117_v53 = vld [vmem:[%s8196_s2 + $0x88] sm:$0xff]   ;;  %5754 = vmatpush3.bf16.msra.mxu1 %v6116_v48  ;;  %v6118_v56 = vld [vmem:[%s8196_s2 + $0x90] sm:$0xff]   ;;  %v6123_v48 = vld [vmem:[%s8196_s2 + $0xb8] sm:$0xff]  }
 0x180   : > { %5755 = vmatprep.subr.bf16.mxu1 %v6117_v53 }
 0x181   : > { %v1236_v58 = vadd.f32 %v5688_v62, %v1139_v29  ;;  %v1253_v21 = vmax.f32 %v1233_v55, 0.0  ;;  %v6119_v62 = vld [vmem:[%s8196_s2 + $0x98] sm:$0xff]  }
 0x183   : > { %v1254_v32 = vmax.f32 %v1236_v58, 0.0  ;;  %5756 = vmatpush3.bf16.msra.mxu1 %v6117_v53  ;;  %v6124_v53 = vld [vmem:[%s8196_s2 + $0xc0] sm:$0xff]  }
 0x184   : > { %5757 = vmatprep.subr.bf16.mxu1 %v6118_v56  ;;  %5785 = vmatprep.subr.bf16.mxu0 %v6124_v53 }
 0x185   : > { %v1262_v59 = vpack.c.bf16 %v1254_v32, %v1253_v21 }
 0x187   : > { %5718 = vmatmul.mubr.bf16.gmra.mrb[60].mxu1 %v1262_v59 }
 0x188   : > { %5758 = vmatpush3.bf16.msra.mxu1 %v6118_v56  ;;  %v6125_v56 = vld [vmem:[%s8196_s2 + $0xc8] sm:$0xff]  }
 0x189   : > { %5759 = vmatprep.subr.bf16.mxu1 %v6119_v62 }
 0x18c   : > { %5760 = vmatpush3.bf16.msra.mxu1 %v6119_v62  ;;  %v6126_v62 = vld [vmem:[%s8196_s2 + $0xd0] sm:$0xff]  }
 0x18d   : > { %5761 = vmatprep.subr.bf16.mxu1 %v6120_v63 }
 0x190   : > { %5762 = vmatpush3.bf16.msra.mxu1 %v6120_v63  ;;  %v6127_v63 = vld [vmem:[%s8196_s2 + $0xd8] sm:$0xff]  }
 0x191   : > { %5763 = vmatprep.subr.bf16.mxu1 %v6121_v24 }
 0x194   : > { %5764 = vmatpush3.bf16.msra.mxu1 %v6121_v24  ;;  %v6128_v24 = vld [vmem:[%s8196_s2 + $0xe0] sm:$0xff]  }
 0x195   : > { %5765 = vmatprep.subr.bf16.mxu1 %v6122_v61 }
 0x198   : > { %5766 = vmatpush3.bf16.msra.mxu1 %v6122_v61 }
 0x199   : > { %5767 = vmatprep.subr.bf16.mxu1 %v6123_v48 }
 0x19c   : > { %5768 = vmatpush3.bf16.msra.mxu1 %v6123_v48  ;;  %v6130_v48 = vld [vmem:[%s8196_s2 + $0xf0] sm:$0xff]  }
 0x22a   : > { %v5707_v1 = vpop.f32.mrb[48].mxu1 }
 0x22b   : > { %v1375_v34 = vadd.f32 %v5707_v1, %v4890_v0  ;;  %v1366_v2 = vpop.f32.mrb[49].mxu1  ;;  %v4915_v1 = vld [vmem:[%s8198_s4 + $0x2] ss:$0 sm:$0xff] }
 0x22c   : > { %v1367_v4 = vadd.f32 %v4890_v0, %v1366_v2  ;;  %v5708_v5 = vpop.f32.mrb[50].mxu1 }
 0x22d   : > { %v1378_v7 = vadd.f32 %v5708_v5, %v4890_v0  ;;  %v1369_v8 = vpop.f32.mrb[51].mxu1  ;;  %v1431_v10 = vmax.f32 %v1375_v34, 0.0 }
 0x22e   : > { %v1370_v9 = vadd.f32 %v4890_v0, %v1369_v8  ;;  %v1429_v39 = vmax.f32 %v1367_v4, 0.0 }
 0x22f   : > { %v1432_v12 = vmax.f32 %v1378_v7, 0.0 }
 0x230   : > { %v1430_v13 = vmax.f32 %v1370_v9, 0.0 }
 0x231   : > { %v1446_v15 = vpack.c.bf16 %v1432_v12, %v1431_v10 }
 0x232   : > { %v1445_v16 = vpack.c.bf16 %v1430_v13, %v1429_v39 }
 0x234   : > { %5737 = vmatprep.mubr.bf16.mxu0 %v1445_v16 }
 0x235   : > { %5738 = vmatmul.mubr.bf16.vlgmr.msra.gmra.mrb[64].mxu0 %v1446_v15 }
 0x236   : > { %5786 = vmatpush3.bf16.msra.mxu0 %v6124_v53  ;;  %v6131_v53 = vld [vmem:[%s8196_s2 + $0xf8] sm:$0xff]  }
 0x237   : > { %5787 = vmatprep.subr.bf16.mxu0 %v6125_v56 }
 0x23a   : > { %v5711_v42 = vpop.f32.mrb[52].mxu1  ;;  %5788 = vmatpush3.bf16.msra.mxu0 %v6125_v56  ;;  %v6132_v56 = vld [vmem:[%s8196_s2 + $0x100] sm:$0xff]  }
 0x23b   : > { %v1391_v17 = vadd.f32 %v5711_v42, %v4890_v0  ;;  %v1382_v18 = vpop.f32.mrb[53].mxu1  ;;  %5789 = vmatprep.subr.bf16.mxu0 %v6126_v62  ;;  %5817 = vmatprep.subr.bf16.mxu1 %v6132_v56 }
 0x23c   : > { %v1383_v49 = vadd.f32 %v4890_v0, %v1382_v18  ;;  %v5712_v19 = vpop.f32.mrb[54].mxu1 }
 0x23d   : > { %v1394_v20 = vadd.f32 %v5712_v19, %v4890_v0  ;;  %v1385_v22 = vpop.f32.mrb[55].mxu1  ;;  %v1435_v23 = vmax.f32 %v1391_v17, 0.0 }
 0x23e   : > { %v1386_v52 = vadd.f32 %v4890_v0, %v1385_v22  ;;  %v1433_v26 = vmax.f32 %v1383_v49, 0.0  ;;  %5790 = vmatpush3.bf16.msra.mxu0 %v6126_v62  ;;  %v6133_v62 = vld [vmem:[%s8196_s2 + $0x108] sm:$0xff]  }
 0x23f   : > { %v1436_v25 = vmax.f32 %v1394_v20, 0.0  ;;  %5791 = vmatprep.subr.bf16.mxu0 %v6127_v63 }
 0x240   : > { %v1434_v57 = vmax.f32 %v1386_v52, 0.0 }
 0x241   : > { %v1448_v27 = vpack.c.bf16 %v1436_v25, %v1435_v23 }
 0x242   : > { %v1447_v28 = vpack.c.bf16 %v1434_v57, %v1433_v26  ;;  %5792 = vmatpush3.bf16.msra.mxu0 %v6127_v63  ;;  %v6134_v63 = vld [vmem:[%s8196_s2 + $0x110] sm:$0xff]  }
 0x243   : > { %5793 = vmatprep.subr.bf16.mxu0 %v6128_v24 }
 0x244   : > { %5741 = vmatprep.mubr.bf16.mxu0 %v1447_v28 }
 0x245   : > { %5742 = vmatmul.mubr.bf16.gmra.mrb[68].mxu0 %v1448_v27 }
 0x246   : > { %5794 = vmatpush3.bf16.msra.mxu0 %v6128_v24  ;;  %v6135_v24 = vld [vmem:[%s8196_s2 + $0x118] sm:$0xff]  }
 0x24a   : > { %v5715_v30 = vpop.f32.mrb[56].mxu1 }
 0x24b   : > { %v1407_v60 = vadd.f32 %v5715_v30, %v4890_v0  ;;  %v1398_v31 = vpop.f32.mrb[57].mxu1 }
 0x24c   : > { %v1399_v33 = vadd.f32 %v4890_v0, %v1398_v31  ;;  %v5716_v36 = vpop.f32.mrb[58].mxu1 }
 0x24d   : > { %v1410_v37 = vadd.f32 %v5716_v36, %v4890_v0  ;;  %v1401_v3 = vpop.f32.mrb[59].mxu1  ;;  %v1439_v41 = vmax.f32 %v1407_v60, 0.0 }
 0x24e   : > { %v1402_v38 = vadd.f32 %v4890_v0, %v1401_v3  ;;  %v1437_v11 = vmax.f32 %v1399_v33, 0.0 }
 0x24f   : > { %v1440_v6 = vmax.f32 %v1410_v37, 0.0 }
 0x250   : > { %v1438_v35 = vmax.f32 %v1402_v38, 0.0 }
 0x251   : > { %v1450_v43 = vpack.c.bf16 %v1440_v6, %v1439_v41 }
 0x252   : > { %v1449_v14 = vpack.c.bf16 %v1438_v35, %v1437_v11 }
 0x254   : > { %5745 = vmatprep.mubr.bf16.mxu0 %v1449_v14 }
 0x255   : > { %5746 = vmatmul.mubr.bf16.gmra.mrb[72].mxu0 %v1450_v43 }
 0x25a   : > { %v5719_v44 = vpop.f32.mrb[60].mxu1 }
 0x25b   : > { %v1423_v40 = vadd.f32 %v5719_v44, %v4890_v0  ;;  %v1414_v45 = vpop.f32.mrb[61].mxu1 }
 0x25c   : > { %v1415_v46 = vadd.f32 %v4890_v0, %v1414_v45  ;;  %v5720_v47 = vpop.f32.mrb[62].mxu1 }
 0x25d   : > { %v1426_v50 = vadd.f32 %v5720_v47, %v4890_v0  ;;  %v1417_v51 = vpop.f32.mrb[63].mxu1  ;;  %v1443_v55 = vmax.f32 %v1423_v40, 0.0 }
 0x25e   : > { %v1418_v54 = vadd.f32 %v4890_v0, %v1417_v51  ;;  %v1441_v58 = vmax.f32 %v1415_v46, 0.0  ;;  %v6129_v0 = vld [vmem:[%s8196_s2 + $0xe8] sm:$0xff]  }
 0x25f   : > { %v1444_v29 = vmax.f32 %v1426_v50, 0.0  ;;  %5795 = vmatprep.subr.bf16.mxu0 %v6129_v0 }
 0x260   : > { %v1442_v21 = vmax.f32 %v1418_v54, 0.0  ;;  %5796 = vmatpush3.bf16.msra.mxu0 %v6129_v0  ;;  %v6136_v0 = vld [vmem:[%s8196_s2 + $0x120] sm:$0xff]  }
 0x261   : > { %v1452_v32 = vpack.c.bf16 %v1444_v29, %v1443_v55  ;;  %5797 = vmatprep.subr.bf16.mxu0 %v6130_v48 }
 0x262   : > { %v1451_v59 = vpack.c.bf16 %v1442_v21, %v1441_v58 }
 0x264   : > { %5749 = vmatprep.mubr.bf16.mxu0 %v1451_v59  ;;  %5798 = vmatpush3.bf16.msra.mxu0 %v6130_v48 }
 0x265   : > { %5750 = vmatmul.mubr.bf16.gmra.mrb[76].mxu0 %v1452_v32  ;;  %5799 = vmatprep.subr.bf16.mxu0 %v6131_v53 }
 0x268   : > { %5800 = vmatpush3.bf16.msra.mxu0 %v6131_v53  ;;  %v6138_v53 = vld [vmem:[%s8196_s2 + $0x130] sm:$0xff]  }
 0x308   : > { %v5739_v34 = vpop.f32.mrb[64].mxu0 }
 0x309   : > { %v1566_v2 = vadd.f32 %v5739_v34, %v4915_v1  ;;  %v1557_v4 = vpop.f32.mrb[65].mxu0  ;;  %v4940_v34 = vld [vmem:[%s8198_s4 + $0x3] ss:$0 sm:$0xff] }
 0x30a   : > { %v1558_v5 = vadd.f32 %v4915_v1, %v1557_v4  ;;  %v5740_v7 = vpop.f32.mrb[66].mxu0 }
 0x30b   : > { %v1569_v8 = vadd.f32 %v5740_v7, %v4915_v1  ;;  %v1560_v9 = vpop.f32.mrb[67].mxu0  ;;  %v1622_v12 = vmax.f32 %v1566_v2, 0.0 }
 0x30c   : > { %v1561_v10 = vadd.f32 %v4915_v1, %v1560_v9  ;;  %v1620_v13 = vmax.f32 %v1558_v5, 0.0 }
 0x30d   : > { %v1623_v39 = vmax.f32 %v1569_v8, 0.0 }
 0x30e   : > { %v1621_v15 = vmax.f32 %v1561_v10, 0.0 }
 0x30f   : > { %v1637_v16 = vpack.c.bf16 %v1623_v39, %v1622_v12 }
 0x310   : > { %v1636_v42 = vpack.c.bf16 %v1621_v15, %v1620_v13 }
 0x312   : > { %5769 = vmatprep.mubr.bf16.mxu1 %v1636_v42 }
 0x313   : > { %5770 = vmatmul.mubr.bf16.vlgmr.msra.gmra.mrb[64].mxu1 %v1637_v16 }
 0x314   : > { %5818 = vmatpush3.bf16.msra.mxu1 %v6132_v56  ;;  %v6139_v56 = vld [vmem:[%s8196_s2 + $0x138] sm:$0xff]  }
 0x315   : > { %5819 = vmatprep.subr.bf16.mxu1 %v6133_v62 }
 0x318   : > { %v5743_v17 = vpop.f32.mrb[68].mxu0  ;;  %5820 = vmatpush3.bf16.msra.mxu1 %v6133_v62  ;;  %v6140_v62 = vld [vmem:[%s8196_s2 + $0x140] sm:$0xff]  }
 0x319   : > { %v1582_v18 = vadd.f32 %v5743_v17, %v4915_v1  ;;  %v1573_v49 = vpop.f32.mrb[69].mxu0  ;;  %5821 = vmatprep.subr.bf16.mxu1 %v6134_v63  ;;  %5849 = vmatprep.subr.bf16.mxu0 %v6140_v62 }
 0x31a   : > { %v1574_v19 = vadd.f32 %v4915_v1, %v1573_v49  ;;  %v5744_v20 = vpop.f32.mrb[70].mxu0 }
 0x31b   : > { %v1585_v22 = vadd.f32 %v5744_v20, %v4915_v1  ;;  %v1576_v52 = vpop.f32.mrb[71].mxu0  ;;  %v1626_v25 = vmax.f32 %v1582_v18, 0.0 }
 0x31c   : > { %v1577_v23 = vadd.f32 %v4915_v1, %v1576_v52  ;;  %v1624_v57 = vmax.f32 %v1574_v19, 0.0  ;;  %5822 = vmatpush3.bf16.msra.mxu1 %v6134_v63  ;;  %v6141_v63 = vld [vmem:[%s8196_s2 + $0x148] sm:$0xff]  }
 0x31d   : > { %v1627_v26 = vmax.f32 %v1585_v22, 0.0  ;;  %5823 = vmatprep.subr.bf16.mxu1 %v6135_v24 }
 0x31e   : > { %v1625_v27 = vmax.f32 %v1577_v23, 0.0 }
 0x31f   : > { %v1639_v28 = vpack.c.bf16 %v1627_v26, %v1626_v25 }
 0x320   : > { %v1638_v30 = vpack.c.bf16 %v1625_v27, %v1624_v57  ;;  %5824 = vmatpush3.bf16.msra.mxu1 %v6135_v24  ;;  %v6142_v24 = vld [vmem:[%s8196_s2 + $0x150] sm:$0xff]  }
 0x321   : > { %5825 = vmatprep.subr.bf16.mxu1 %v6136_v0 }
 0x322   : > { %5773 = vmatprep.mubr.bf16.mxu1 %v1638_v30 }
 0x323   : > { %5774 = vmatmul.mubr.bf16.gmra.mrb[68].mxu1 %v1639_v28 }
 0x324   : > { %5826 = vmatpush3.bf16.msra.mxu1 %v6136_v0  ;;  %v6143_v0 = vld [vmem:[%s8196_s2 + $0x158] sm:$0xff]  }
 0x328   : > { %v5747_v60 = vpop.f32.mrb[72].mxu0 }
 0x329   : > { %v1598_v31 = vadd.f32 %v5747_v60, %v4915_v1  ;;  %v1589_v33 = vpop.f32.mrb[73].mxu0 }
 0x32a   : > { %v1590_v36 = vadd.f32 %v4915_v1, %v1589_v33  ;;  %v5748_v37 = vpop.f32.mrb[74].mxu0 }
 0x32b   : > { %v1601_v3 = vadd.f32 %v5748_v37, %v4915_v1  ;;  %v1592_v38 = vpop.f32.mrb[75].mxu0  ;;  %v1630_v6 = vmax.f32 %v1598_v31, 0.0 }
 0x32c   : > { %v1593_v41 = vadd.f32 %v4915_v1, %v1592_v38  ;;  %v1628_v35 = vmax.f32 %v1590_v36, 0.0 }
 0x32d   : > { %v1631_v11 = vmax.f32 %v1601_v3, 0.0 }
 0x32e   : > { %v1629_v43 = vmax.f32 %v1593_v41, 0.0 }
 0x32f   : > { %v1641_v14 = vpack.c.bf16 %v1631_v11, %v1630_v6 }
 0x330   : > { %v1640_v44 = vpack.c.bf16 %v1629_v43, %v1628_v35 }
 0x332   : > { %5777 = vmatprep.mubr.bf16.mxu1 %v1640_v44 }
 0x333   : > { %5778 = vmatmul.mubr.bf16.gmra.mrb[72].mxu1 %v1641_v14 }
 0x338   : > { %v5751_v40 = vpop.f32.mrb[76].mxu0 }
 0x339   : > { %v1614_v45 = vadd.f32 %v5751_v40, %v4915_v1  ;;  %v1605_v46 = vpop.f32.mrb[77].mxu0 }
 0x33a   : > { %v1606_v47 = vadd.f32 %v4915_v1, %v1605_v46  ;;  %v5752_v50 = vpop.f32.mrb[78].mxu0 }
 0x33b   : > { %v1617_v51 = vadd.f32 %v5752_v50, %v4915_v1  ;;  %v1608_v54 = vpop.f32.mrb[79].mxu0  ;;  %v1634_v29 = vmax.f32 %v1614_v45, 0.0 }
 0x33c   : > { %v1609_v55 = vadd.f32 %v4915_v1, %v1608_v54  ;;  %v1632_v21 = vmax.f32 %v1606_v47, 0.0  ;;  %v6137_v1 = vld [vmem:[%s8196_s2 + $0x128] sm:$0xff]  }
 0x33d   : > { %v1635_v58 = vmax.f32 %v1617_v51, 0.0  ;;  %5827 = vmatprep.subr.bf16.mxu1 %v6137_v1 }
 0x33e   : > { %v1633_v32 = vmax.f32 %v1609_v55, 0.0  ;;  %5828 = vmatpush3.bf16.msra.mxu1 %v6137_v1  ;;  %v6144_v1 = vld [vmem:[%s8196_s2 + $0x160] sm:$0xff]  }
 0x33f   : > { %v1643_v59 = vpack.c.bf16 %v1635_v58, %v1634_v29  ;;  %5829 = vmatprep.subr.bf16.mxu1 %v6138_v53 }
 0x340   : > { %v1642_v61 = vpack.c.bf16 %v1633_v32, %v1632_v21 }
 0x342   : > { %5781 = vmatprep.mubr.bf16.mxu1 %v1642_v61  ;;  %5830 = vmatpush3.bf16.msra.mxu1 %v6138_v53 }
 0x343   : > { %5782 = vmatmul.mubr.bf16.gmra.mrb[76].mxu1 %v1643_v59  ;;  %5831 = vmatprep.subr.bf16.mxu1 %v6139_v56 }
 0x346   : > { %5832 = vmatpush3.bf16.msra.mxu1 %v6139_v56  ;;  %v6146_v56 = vld [vmem:[%s8196_s2 + $0x170] sm:$0xff]  }
 0x3e6   : > { %v5771_v2 = vpop.f32.mrb[64].mxu1 }
 0x3e7   : > { %v1757_v4 = vadd.f32 %v5771_v2, %v4940_v34  ;;  %v1748_v5 = vpop.f32.mrb[65].mxu1  ;;  %v4965_v2 = vld [vmem:[%s8198_s4 + $0x4] ss:$0 sm:$0xff] }
 0x3e8   : > { %v1749_v7 = vadd.f32 %v4940_v34, %v1748_v5  ;;  %v5772_v8 = vpop.f32.mrb[66].mxu1 }
 0x3e9   : > { %v1760_v9 = vadd.f32 %v5772_v8, %v4940_v34  ;;  %v1751_v10 = vpop.f32.mrb[67].mxu1  ;;  %v1813_v39 = vmax.f32 %v1757_v4, 0.0 }
 0x3ea   : > { %v1752_v12 = vadd.f32 %v4940_v34, %v1751_v10  ;;  %v1811_v15 = vmax.f32 %v1749_v7, 0.0 }
 0x3eb   : > { %v1814_v13 = vmax.f32 %v1760_v9, 0.0 }
 0x3ec   : > { %v1812_v16 = vmax.f32 %v1752_v12, 0.0 }
 0x3ed   : > { %v1828_v42 = vpack.c.bf16 %v1814_v13, %v1813_v39 }
 0x3ee   : > { %v1827_v17 = vpack.c.bf16 %v1812_v16, %v1811_v15 }
 0x3f0   : > { %5801 = vmatprep.mubr.bf16.mxu0 %v1827_v17 }
 0x3f1   : > { %5802 = vmatmul.mubr.bf16.vlgmr.msra.gmra.mrb[80].mxu0 %v1828_v42 }
 0x3f2   : > { %5850 = vmatpush3.bf16.msra.mxu0 %v6140_v62  ;;  %v6147_v62 = vld [vmem:[%s8196_s2 + $0x178] sm:$0xff]  }
 0x3f3   : > { %5851 = vmatprep.subr.bf16.mxu0 %v6141_v63 }
 0x3f6   : > { %v5775_v18 = vpop.f32.mrb[68].mxu1  ;;  %5852 = vmatpush3.bf16.msra.mxu0 %v6141_v63  ;;  %v6148_v63 = vld [vmem:[%s8196_s2 + $0x180] sm:$0xff]  }
 0x3f7   : > { %v1773_v49 = vadd.f32 %v5775_v18, %v4940_v34  ;;  %v1764_v19 = vpop.f32.mrb[69].mxu1  ;;  %5853 = vmatprep.subr.bf16.mxu0 %v6142_v24  ;;  %5881 = vmatprep.subr.bf16.mxu1 %v6148_v63 }
 0x3f8   : > { %v1765_v20 = vadd.f32 %v4940_v34, %v1764_v19  ;;  %v5776_v22 = vpop.f32.mrb[70].mxu1 }
 0x3f9   : > { %v1776_v52 = vadd.f32 %v5776_v22, %v4940_v34  ;;  %v1767_v23 = vpop.f32.mrb[71].mxu1  ;;  %v1817_v26 = vmax.f32 %v1773_v49, 0.0 }
 0x3fa   : > { %v1768_v25 = vadd.f32 %v4940_v34, %v1767_v23  ;;  %v1815_v27 = vmax.f32 %v1765_v20, 0.0  ;;  %5854 = vmatpush3.bf16.msra.mxu0 %v6142_v24  ;;  %v6149_v24 = vld [vmem:[%s8196_s2 + $0x188] sm:$0xff]  }
 0x3fb   : > { %v1818_v57 = vmax.f32 %v1776_v52, 0.0  ;;  %5855 = vmatprep.subr.bf16.mxu0 %v6143_v0 }
 0x3fc   : > { %v1816_v28 = vmax.f32 %v1768_v25, 0.0 }
 0x3fd   : > { %v1830_v30 = vpack.c.bf16 %v1818_v57, %v1817_v26 }
 0x3fe   : > { %v1829_v60 = vpack.c.bf16 %v1816_v28, %v1815_v27  ;;  %5856 = vmatpush3.bf16.msra.mxu0 %v6143_v0  ;;  %v6150_v0 = vld [vmem:[%s8196_s2 + $0x190] sm:$0xff]  }
 0x3ff   : > { %5857 = vmatprep.subr.bf16.mxu0 %v6144_v1 }
 0x400   : > { %5805 = vmatprep.mubr.bf16.mxu0 %v1829_v60 }
 0x401   : > { %5806 = vmatmul.mubr.bf16.gmra.mrb[84].mxu0 %v1830_v30 }
 0x402   : > { %5858 = vmatpush3.bf16.msra.mxu0 %v6144_v1  ;;  %v6151_v1 = vld [vmem:[%s8196_s2 + $0x198] sm:$0xff]  }
 0x406   : > { %v5779_v31 = vpop.f32.mrb[72].mxu1 }
 0x407   : > { %v1789_v33 = vadd.f32 %v5779_v31, %v4940_v34  ;;  %v1780_v36 = vpop.f32.mrb[73].mxu1 }
 0x408   : > { %v1781_v37 = vadd.f32 %v4940_v34, %v1780_v36  ;;  %v5780_v3 = vpop.f32.mrb[74].mxu1 }
 0x409   : > { %v1792_v38 = vadd.f32 %v5780_v3, %v4940_v34  ;;  %v1783_v41 = vpop.f32.mrb[75].mxu1  ;;  %v1821_v11 = vmax.f32 %v1789_v33, 0.0 }
 0x40a   : > { %v1784_v6 = vadd.f32 %v4940_v34, %v1783_v41  ;;  %v1819_v43 = vmax.f32 %v1781_v37, 0.0 }
 0x40b   : > { %v1822_v35 = vmax.f32 %v1792_v38, 0.0 }
 0x40c   : > { %v1820_v14 = vmax.f32 %v1784_v6, 0.0 }
 0x40d   : > { %v1832_v44 = vpack.c.bf16 %v1822_v35, %v1821_v11 }
 0x40e   : > { %v1831_v40 = vpack.c.bf16 %v1820_v14, %v1819_v43 }
 0x410   : > { %5809 = vmatprep.mubr.bf16.mxu0 %v1831_v40 }
 0x411   : > { %5810 = vmatmul.mubr.bf16.gmra.mrb[88].mxu0 %v1832_v44 }
 0x416   : > { %v5783_v45 = vpop.f32.mrb[76].mxu1 }
 0x417   : > { %v1805_v46 = vadd.f32 %v5783_v45, %v4940_v34  ;;  %v1796_v47 = vpop.f32.mrb[77].mxu1 }
 0x418   : > { %v1797_v50 = vadd.f32 %v4940_v34, %v1796_v47  ;;  %v5784_v51 = vpop.f32.mrb[78].mxu1 }
 0x419   : > { %v1808_v54 = vadd.f32 %v5784_v51, %v4940_v34  ;;  %v1799_v55 = vpop.f32.mrb[79].mxu1  ;;  %v1825_v58 = vmax.f32 %v1805_v46, 0.0 }
 0x41a   : > { %v1800_v29 = vadd.f32 %v4940_v34, %v1799_v55  ;;  %v1823_v32 = vmax.f32 %v1797_v50, 0.0  ;;  %v6145_v34 = vld [vmem:[%s8196_s2 + $0x168] sm:$0xff]  }
 0x41b   : > { %v1826_v21 = vmax.f32 %v1808_v54, 0.0  ;;  %5859 = vmatprep.subr.bf16.mxu0 %v6145_v34 }
 0x41c   : > { %v1824_v59 = vmax.f32 %v1800_v29, 0.0  ;;  %5860 = vmatpush3.bf16.msra.mxu0 %v6145_v34  ;;  %v6152_v34 = vld [vmem:[%s8196_s2 + $0x1a0] sm:$0xff]  }
 0x41d   : > { %v1834_v61 = vpack.c.bf16 %v1826_v21, %v1825_v58  ;;  %5861 = vmatprep.subr.bf16.mxu0 %v6146_v56 }
 0x41e   : > { %v1833_v48 = vpack.c.bf16 %v1824_v59, %v1823_v32 }
 0x420   : > { %5813 = vmatprep.mubr.bf16.mxu0 %v1833_v48  ;;  %5862 = vmatpush3.bf16.msra.mxu0 %v6146_v56 }
 0x421   : > { %5814 = vmatmul.mubr.bf16.gmra.mrb[92].mxu0 %v1834_v61  ;;  %5863 = vmatprep.subr.bf16.mxu0 %v6147_v62 }
 0x424   : > { %5864 = vmatpush3.bf16.msra.mxu0 %v6147_v62 }
 0x4c4   : > { %v5803_v4 = vpop.f32.mrb[80].mxu0 }
 0x4c5   : > { %v1948_v5 = vadd.f32 %v5803_v4, %v4965_v2  ;;  %v1939_v7 = vpop.f32.mrb[81].mxu0 }
 0x4c6   : > { %v1940_v8 = vadd.f32 %v4965_v2, %v1939_v7  ;;  %v5804_v9 = vpop.f32.mrb[82].mxu0 }
 0x4c7   : > { %v1951_v10 = vadd.f32 %v5804_v9, %v4965_v2  ;;  %v1942_v12 = vpop.f32.mrb[83].mxu0  ;;  %v2004_v13 = vmax.f32 %v1948_v5, 0.0  ;;  %v4990_v5 = vld [vmem:[%s8198_s4 + $0x5] ss:$0 sm:$0xff] }
 0x4c8   : > { %v1943_v39 = vadd.f32 %v4965_v2, %v1942_v12  ;;  %v2002_v16 = vmax.f32 %v1940_v8, 0.0 }
 0x4c9   : > { %v2005_v15 = vmax.f32 %v1951_v10, 0.0 }
 0x4ca   : > { %v2003_v42 = vmax.f32 %v1943_v39, 0.0 }
 0x4cb   : > { %v2019_v17 = vpack.c.bf16 %v2005_v15, %v2004_v13 }
 0x4cc   : > { %v2018_v18 = vpack.c.bf16 %v2003_v42, %v2002_v16 }
 0x4ce   : > { %5833 = vmatprep.mubr.bf16.mxu1 %v2018_v18 }
 0x4cf   : > { %5834 = vmatmul.mubr.bf16.vlgmr.msra.gmra.mrb[80].mxu1 %v2019_v17 }
 0x4d0   : > { %5882 = vmatpush3.bf16.msra.mxu1 %v6148_v63 }
 0x4d1   : > { %5883 = vmatprep.subr.bf16.mxu1 %v6149_v24 }
 0x4d4   : > { %v5807_v49 = vpop.f32.mrb[84].mxu0  ;;  %5884 = vmatpush3.bf16.msra.mxu1 %v6149_v24 }
 0x4d5   : > { %v1964_v19 = vadd.f32 %v5807_v49, %v4965_v2  ;;  %v1955_v20 = vpop.f32.mrb[85].mxu0  ;;  %5885 = vmatprep.subr.bf16.mxu1 %v6150_v0 }
 0x4d6   : > { %v1956_v22 = vadd.f32 %v4965_v2, %v1955_v20  ;;  %v5808_v52 = vpop.f32.mrb[86].mxu0 }
 0x4d7   : > { %v1967_v23 = vadd.f32 %v5808_v52, %v4965_v2  ;;  %v1958_v25 = vpop.f32.mrb[87].mxu0  ;;  %v2008_v57 = vmax.f32 %v1964_v19, 0.0 }
 0x4d8   : > { %v1959_v26 = vadd.f32 %v4965_v2, %v1958_v25  ;;  %v2006_v28 = vmax.f32 %v1956_v22, 0.0  ;;  %5886 = vmatpush3.bf16.msra.mxu1 %v6150_v0 }
 0x4d9   : > { %v2009_v27 = vmax.f32 %v1967_v23, 0.0  ;;  %5887 = vmatprep.subr.bf16.mxu1 %v6151_v1 }
 0x4da   : > { %v2007_v30 = vmax.f32 %v1959_v26, 0.0 }
 0x4db   : > { %v2021_v60 = vpack.c.bf16 %v2009_v27, %v2008_v57 }
 0x4dc   : > { %v2020_v31 = vpack.c.bf16 %v2007_v30, %v2006_v28  ;;  %5888 = vmatpush3.bf16.msra.mxu1 %v6151_v1 }
 0x4dd   : > { %5889 = vmatprep.subr.bf16.mxu1 %v6152_v34 }
 0x4de   : > { %5837 = vmatprep.mubr.bf16.mxu1 %v2020_v31 }
 0x4df   : > { %5838 = vmatmul.mubr.bf16.gmra.mrb[84].mxu1 %v2021_v60 }
 0x4e0   : > { %5890 = vmatpush3.bf16.msra.mxu1 %v6152_v34 }
 0x4e4   : > { %v5811_v33 = vpop.f32.mrb[88].mxu0 }
 0x4e5   : > { %v1980_v36 = vadd.f32 %v5811_v33, %v4965_v2  ;;  %v1971_v37 = vpop.f32.mrb[89].mxu0 }
 0x4e6   : > { %v1972_v3 = vadd.f32 %v4965_v2, %v1971_v37  ;;  %v5812_v38 = vpop.f32.mrb[90].mxu0 }
 0x4e7   : > { %v1983_v41 = vadd.f32 %v5812_v38, %v4965_v2  ;;  %v1974_v6 = vpop.f32.mrb[91].mxu0  ;;  %v2012_v35 = vmax.f32 %v1980_v36, 0.0 }
 0x4e8   : > { %v1975_v11 = vadd.f32 %v4965_v2, %v1974_v6  ;;  %v2010_v14 = vmax.f32 %v1972_v3, 0.0 }
 0x4e9   : > { %v2013_v43 = vmax.f32 %v1983_v41, 0.0 }
 0x4ea   : > { %v2011_v44 = vmax.f32 %v1975_v11, 0.0 }
 0x4eb   : > { %v2023_v40 = vpack.c.bf16 %v2013_v43, %v2012_v35 }
 0x4ec   : > { %v2022_v45 = vpack.c.bf16 %v2011_v44, %v2010_v14 }
 0x4ee   : > { %5841 = vmatprep.mubr.bf16.mxu1 %v2022_v45  ;;  %v6154_v45 = vld [vmem:[%s8196_s2 + $0x1b0] sm:$0xff]  }
 0x4ef   : > { %5842 = vmatmul.mubr.bf16.gmra.mrb[88].mxu1 %v2023_v40 }
 0x4f4   : > { %v5815_v46 = vpop.f32.mrb[92].mxu0 }
 0x4f5   : > { %v1996_v47 = vadd.f32 %v5815_v46, %v4965_v2  ;;  %v1987_v50 = vpop.f32.mrb[93].mxu0  ;;  %v6155_v46 = vld [vmem:[%s8196_s2 + $0x1b8] sm:$0xff]  }
 0x4f6   : > { %v1988_v51 = vadd.f32 %v4965_v2, %v1987_v50  ;;  %v5816_v54 = vpop.f32.mrb[94].mxu0  ;;  %v6157_v50 = vld [vmem:[%s8196_s2 + $0x1c8] sm:$0xff]  }
 0x4f7   : > { %v1999_v55 = vadd.f32 %v5816_v54, %v4965_v2  ;;  %v1990_v29 = vpop.f32.mrb[95].mxu0  ;;  %v2016_v21 = vmax.f32 %v1996_v47, 0.0  ;;  %v6156_v47 = vld [vmem:[%s8196_s2 + $0x1c0] sm:$0xff]   ;;  %v6159_v54 = vld [vmem:[%s8196_s2 + $0x1d8] sm:$0xff]  }
 0x4f8   : > { %v1991_v58 = vadd.f32 %v4965_v2, %v1990_v29  ;;  %v2014_v59 = vmax.f32 %v1988_v51, 0.0  ;;  %v6153_v2 = vld [vmem:[%s8196_s2 + $0x1a8] sm:$0xff]   ;;  %5913 = vmatprep.subr.bf16.mxu0 %v6156_v47  ;;  %v6158_v51 = vld [vmem:[%s8196_s2 + $0x1d0] sm:$0xff]  }
 0x4f9   : > { %v2017_v32 = vmax.f32 %v1999_v55, 0.0  ;;  %5891 = vmatprep.subr.bf16.mxu1 %v6153_v2  ;;  %v6160_v55 = vld [vmem:[%s8196_s2 + $0x1e0] sm:$0xff]   ;;  %v6161_v29 = vld [vmem:[%s8196_s2 + $0x1e8] sm:$0xff]  }
 0x4fa   : > { %v2015_v61 = vmax.f32 %v1991_v58, 0.0  ;;  %5892 = vmatpush3.bf16.msra.mxu1 %v6153_v2  ;;  %v5015_v58 = vld [vmem:[%s8198_s4 + $0x6] ss:$0 sm:$0xff] }
 0x4fb   : > { %v2025_v48 = vpack.c.bf16 %v2017_v32, %v2016_v21  ;;  %5893 = vmatprep.subr.bf16.mxu1 %v6154_v45 }
 0x4fc   : > { %v2024_v53 = vpack.c.bf16 %v2015_v61, %v2014_v59 }
 0x4fe   : > { %5845 = vmatprep.mubr.bf16.mxu1 %v2024_v53  ;;  %5894 = vmatpush3.bf16.msra.mxu1 %v6154_v45 }
 0x4ff   : > { %5846 = vmatmul.mubr.bf16.gmra.mrb[92].mxu1 %v2025_v48  ;;  %5895 = vmatprep.subr.bf16.mxu1 %v6155_v46 }
 0x502   : > { %5896 = vmatpush3.bf16.msra.mxu1 %v6155_v46  ;;  %v6162_v46 = vld [vmem:[%s8196_s2 + $0x1f0] sm:$0xff]  }
 0x5a2   : > { %v5835_v4 = vpop.f32.mrb[80].mxu1 }
 0x5a3   : > { %v2130_v7 = vpop.f32.mrb[81].mxu1  ;;  %v2139_v9 = vadd.f32 %v5835_v4, %v4990_v5 }
 0x5a4   : > { %v5836_v8 = vpop.f32.mrb[82].mxu1  ;;  %v2131_v39 = vadd.f32 %v4990_v5, %v2130_v7 }
 0x5a5   : > { %v2142_v10 = vadd.f32 %v5836_v8, %v4990_v5  ;;  %v2133_v12 = vpop.f32.mrb[83].mxu1 }
 0x5a6   : > { %v2134_v13 = vadd.f32 %v4990_v5, %v2133_v12 }
 0x5a7   : > { %v2194_v15 = vpack.c.bf16 %v2142_v10, %v2139_v9 }
 0x5a8   : > { %v2193_v16 = vpack.c.bf16 %v2134_v13, %v2131_v39 }
 0x5aa   : > { %5865 = vmatprep.mubr.bf16.mxu0 %v2193_v16 }
 0x5ab   : > { %5866 = vmatmul.mubr.bf16.vlgmr.msra.gmra.mrb[96].mxu0 %v2194_v15 }
 0x5ac   : > { %5914 = vmatpush3.bf16.msra.mxu0 %v6156_v47  ;;  %v6163_v47 = vld [vmem:[%s8196_s2 + $0x1f8] sm:$0xff]  }
 0x5ad   : > { %5915 = vmatprep.subr.bf16.mxu0 %v6157_v50 }
 0x5b0   : > { %5916 = vmatpush3.bf16.msra.mxu0 %v6157_v50  ;;  %v6164_v50 = vld [vmem:[%s8196_s2 + $0x200] sm:$0xff]  }
 0x5b1   : > { %5917 = vmatprep.subr.bf16.mxu0 %v6158_v51  ;;  %5945 = vmatprep.subr.bf16.mxu1 %v6164_v50 }
 0x5b2   : > { %v5839_v42 = vpop.f32.mrb[84].mxu1 }
 0x5b3   : > { %v2146_v17 = vpop.f32.mrb[85].mxu1  ;;  %v2155_v49 = vadd.f32 %v5839_v42, %v4990_v5 }
 0x5b4   : > { %v5840_v18 = vpop.f32.mrb[86].mxu1  ;;  %v2147_v22 = vadd.f32 %v4990_v5, %v2146_v17  ;;  %5918 = vmatpush3.bf16.msra.mxu0 %v6158_v51  ;;  %v6165_v51 = vld [vmem:[%s8196_s2 + $0x208] sm:$0xff]  }
 0x5b5   : > { %v2158_v19 = vadd.f32 %v5840_v18, %v4990_v5  ;;  %v2149_v20 = vpop.f32.mrb[87].mxu1  ;;  %5919 = vmatprep.subr.bf16.mxu0 %v6159_v54 }
 0x5b6   : > { %v2150_v52 = vadd.f32 %v4990_v5, %v2149_v20 }
 0x5b7   : > { %v2196_v23 = vpack.c.bf16 %v2158_v19, %v2155_v49 }
 0x5b8   : > { %v2195_v25 = vpack.c.bf16 %v2150_v52, %v2147_v22  ;;  %5920 = vmatpush3.bf16.msra.mxu0 %v6159_v54  ;;  %v6166_v54 = vld [vmem:[%s8196_s2 + $0x210] sm:$0xff]  }
 0x5b9   : > { %5921 = vmatprep.subr.bf16.mxu0 %v6160_v55 }
 0x5ba   : > { %5869 = vmatprep.mubr.bf16.mxu0 %v2195_v25 }
 0x5bb   : > { %5870 = vmatmul.mubr.bf16.gmra.mrb[100].mxu0 %v2196_v23 }
 0x5bc   : > { %5922 = vmatpush3.bf16.msra.mxu0 %v6160_v55  ;;  %v6167_v55 = vld [vmem:[%s8196_s2 + $0x218] sm:$0xff]  }
 0x5bd   : > { %5923 = vmatprep.subr.bf16.mxu0 %v6161_v29 }
 0x5c0   : > { %5924 = vmatpush3.bf16.msra.mxu0 %v6161_v29  ;;  %v6168_v29 = vld [vmem:[%s8196_s2 + $0x220] sm:$0xff]  }
 0x5c1   : > { %5925 = vmatprep.subr.bf16.mxu0 %v6162_v46 }
 0x5c2   : > { %v5843_v26 = vpop.f32.mrb[88].mxu1 }
 0x5c3   : > { %v2162_v57 = vpop.f32.mrb[89].mxu1  ;;  %v2171_v28 = vadd.f32 %v5843_v26, %v4990_v5 }
 0x5c4   : > { %v5844_v27 = vpop.f32.mrb[90].mxu1  ;;  %v2163_v31 = vadd.f32 %v4990_v5, %v2162_v57  ;;  %5926 = vmatpush3.bf16.msra.mxu0 %v6162_v46 }
 0x5c5   : > { %v2174_v30 = vadd.f32 %v5844_v27, %v4990_v5  ;;  %v2165_v60 = vpop.f32.mrb[91].mxu1  ;;  %5927 = vmatprep.subr.bf16.mxu0 %v6163_v47 }
 0x5c6   : > { %v2166_v33 = vadd.f32 %v4990_v5, %v2165_v60 }
 0x5c7   : > { %v2198_v36 = vpack.c.bf16 %v2174_v30, %v2171_v28 }
 0x5c8   : > { %v2197_v37 = vpack.c.bf16 %v2166_v33, %v2163_v31  ;;  %5928 = vmatpush3.bf16.msra.mxu0 %v6163_v47  ;;  %v6170_v47 = vld [vmem:[%s8196_s2 + $0x230] sm:$0xff]  }
 0x5ca   : > { %5873 = vmatprep.mubr.bf16.mxu0 %v2197_v37 }
 0x5cb   : > { %5874 = vmatmul.mubr.bf16.gmra.mrb[104].mxu0 %v2198_v36 }
 0x5d2   : > { %v5847_v3 = vpop.f32.mrb[92].mxu1 }
 0x5d3   : > { %v2178_v38 = vpop.f32.mrb[93].mxu1  ;;  %v2187_v6 = vadd.f32 %v5847_v3, %v4990_v5 }
 0x5d4   : > { %v5848_v41 = vpop.f32.mrb[94].mxu1  ;;  %v2179_v43 = vadd.f32 %v4990_v5, %v2178_v38 }
 0x5d5   : > { %v2190_v11 = vadd.f32 %v5848_v41, %v4990_v5  ;;  %v2181_v35 = vpop.f32.mrb[95].mxu1 }
 0x5d6   : > { %v2182_v14 = vadd.f32 %v4990_v5, %v2181_v35 }
 0x5d7   : > { %v2200_v44 = vpack.c.bf16 %v2190_v11, %v2187_v6 }
 0x5d8   : > { %v2199_v40 = vpack.c.bf16 %v2182_v14, %v2179_v43 }
 0x5da   : > { %5877 = vmatprep.mubr.bf16.mxu0 %v2199_v40 }
 0x5db   : > { %5878 = vmatmul.mubr.bf16.gmra.mrb[108].mxu0 %v2200_v44 }
 0x67e   : > { %v5867_v21 = vpop.f32.mrb[96].mxu0 }
 0x67f   : > { %v2314_v32 = vadd.f32 %v5867_v21, %v5015_v58  ;;  %v2305_v59 = vpop.f32.mrb[97].mxu0  ;;  %v5040_v21 = vld [vmem:[%s8198_s4 + $0x7] ss:$0 sm:$0xff] }
 0x680   : > { %v2306_v61 = vadd.f32 %v5015_v58, %v2305_v59  ;;  %v5868_v48 = vpop.f32.mrb[98].mxu0 }
 0x681   : > { %v2317_v53 = vadd.f32 %v5868_v48, %v5015_v58  ;;  %v2308_v56 = vpop.f32.mrb[99].mxu0  ;;  %v2370_v63 = vmax.f32 %v2314_v32, 0.0 }
 0x682   : > { %v2309_v62 = vadd.f32 %v5015_v58, %v2308_v56  ;;  %v2368_v0 = vmax.f32 %v2306_v61, 0.0 }
 0x683   : > { %v2371_v24 = vmax.f32 %v2317_v53, 0.0 }
 0x684   : > { %v2369_v1 = vmax.f32 %v2309_v62, 0.0 }
 0x685   : > { %v2385_v34 = vpack.c.bf16 %v2371_v24, %v2370_v63 }
 0x686   : > { %v2384_v2 = vpack.c.bf16 %v2369_v1, %v2368_v0 }
 0x688   : > { %5897 = vmatprep.mubr.bf16.mxu1 %v2384_v2 }
 0x689   : > { %5898 = vmatmul.mubr.bf16.vlgmr.msra.gmra.mrb[96].mxu1 %v2385_v34 }
 0x68a   : > { %5946 = vmatpush3.bf16.msra.mxu1 %v6164_v50  ;;  %v6171_v50 = vld [vmem:[%s8196_s2 + $0x238] sm:$0xff]  }
 0x68b   : > { %5947 = vmatprep.subr.bf16.mxu1 %v6165_v51 }
 0x68e   : > { %v5871_v4 = vpop.f32.mrb[100].mxu0  ;;  %5948 = vmatpush3.bf16.msra.mxu1 %v6165_v51  ;;  %v6172_v51 = vld [vmem:[%s8196_s2 + $0x240] sm:$0xff]  }
 0x68f   : > { %v2330_v5 = vadd.f32 %v5871_v4, %v5015_v58  ;;  %v2321_v7 = vpop.f32.mrb[101].mxu0  ;;  %5949 = vmatprep.subr.bf16.mxu1 %v6166_v54  ;;  %5977 = vmatprep.subr.bf16.mxu0 %v6172_v51 }
 0x690   : > { %v2322_v8 = vadd.f32 %v5015_v58, %v2321_v7  ;;  %v5872_v9 = vpop.f32.mrb[102].mxu0 }
 0x691   : > { %v2333_v10 = vadd.f32 %v5872_v9, %v5015_v58  ;;  %v2324_v12 = vpop.f32.mrb[103].mxu0  ;;  %v2374_v13 = vmax.f32 %v2330_v5, 0.0 }
 0x692   : > { %v2325_v39 = vadd.f32 %v5015_v58, %v2324_v12  ;;  %v2372_v16 = vmax.f32 %v2322_v8, 0.0  ;;  %5950 = vmatpush3.bf16.msra.mxu1 %v6166_v54  ;;  %v6173_v54 = vld [vmem:[%s8196_s2 + $0x248] sm:$0xff]  }
 0x693   : > { %v2375_v15 = vmax.f32 %v2333_v10, 0.0  ;;  %5951 = vmatprep.subr.bf16.mxu1 %v6167_v55 }
 0x694   : > { %v2373_v42 = vmax.f32 %v2325_v39, 0.0 }
 0x695   : > { %v2387_v17 = vpack.c.bf16 %v2375_v15, %v2374_v13 }
 0x696   : > { %v2386_v18 = vpack.c.bf16 %v2373_v42, %v2372_v16  ;;  %5952 = vmatpush3.bf16.msra.mxu1 %v6167_v55  ;;  %v6174_v55 = vld [vmem:[%s8196_s2 + $0x250] sm:$0xff]  }
 0x697   : > { %5953 = vmatprep.subr.bf16.mxu1 %v6168_v29 }
 0x698   : > { %5901 = vmatprep.mubr.bf16.mxu1 %v2386_v18 }
 0x699   : > { %5902 = vmatmul.mubr.bf16.gmra.mrb[100].mxu1 %v2387_v17 }
 0x69a   : > { %5954 = vmatpush3.bf16.msra.mxu1 %v6168_v29  ;;  %v6175_v29 = vld [vmem:[%s8196_s2 + $0x258] sm:$0xff]  }
 0x69e   : > { %v5875_v49 = vpop.f32.mrb[104].mxu0 }
 0x69f   : > { %v2346_v19 = vadd.f32 %v5875_v49, %v5015_v58  ;;  %v2337_v20 = vpop.f32.mrb[105].mxu0 }
 0x6a0   : > { %v2338_v22 = vadd.f32 %v5015_v58, %v2337_v20  ;;  %v5876_v52 = vpop.f32.mrb[106].mxu0 }
 0x6a1   : > { %v2349_v23 = vadd.f32 %v5876_v52, %v5015_v58  ;;  %v2340_v25 = vpop.f32.mrb[107].mxu0  ;;  %v2378_v57 = vmax.f32 %v2346_v19, 0.0 }
 0x6a2   : > { %v2341_v26 = vadd.f32 %v5015_v58, %v2340_v25  ;;  %v2376_v28 = vmax.f32 %v2338_v22, 0.0 }
 0x6a3   : > { %v2379_v27 = vmax.f32 %v2349_v23, 0.0 }
 0x6a4   : > { %v2377_v30 = vmax.f32 %v2341_v26, 0.0 }
 0x6a5   : > { %v2389_v60 = vpack.c.bf16 %v2379_v27, %v2378_v57 }
 0x6a6   : > { %v2388_v31 = vpack.c.bf16 %v2377_v30, %v2376_v28 }
 0x6a8   : > { %5905 = vmatprep.mubr.bf16.mxu1 %v2388_v31 }
 0x6a9   : > { %5906 = vmatmul.mubr.bf16.gmra.mrb[104].mxu1 %v2389_v60 }
 0x6ae   : > { %v5879_v33 = vpop.f32.mrb[108].mxu0 }
 0x6af   : > { %v2362_v36 = vadd.f32 %v5879_v33, %v5015_v58  ;;  %v2353_v37 = vpop.f32.mrb[109].mxu0 }
 0x6b0   : > { %v2354_v3 = vadd.f32 %v5015_v58, %v2353_v37  ;;  %v5880_v38 = vpop.f32.mrb[110].mxu0 }
 0x6b1   : > { %v2365_v41 = vadd.f32 %v5880_v38, %v5015_v58  ;;  %v2356_v6 = vpop.f32.mrb[111].mxu0  ;;  %v2382_v35 = vmax.f32 %v2362_v36, 0.0 }
 0x6b2   : > { %v2357_v11 = vadd.f32 %v5015_v58, %v2356_v6  ;;  %v2380_v14 = vmax.f32 %v2354_v3, 0.0  ;;  %v6169_v58 = vld [vmem:[%s8196_s2 + $0x228] sm:$0xff]  }
 0x6b3   : > { %v2383_v43 = vmax.f32 %v2365_v41, 0.0  ;;  %5955 = vmatprep.subr.bf16.mxu1 %v6169_v58 }
 0x6b4   : > { %v2381_v44 = vmax.f32 %v2357_v11, 0.0  ;;  %5956 = vmatpush3.bf16.msra.mxu1 %v6169_v58  ;;  %v6176_v58 = vld [vmem:[%s8196_s2 + $0x260] sm:$0xff]  }
 0x6b5   : > { %v2391_v40 = vpack.c.bf16 %v2383_v43, %v2382_v35  ;;  %5957 = vmatprep.subr.bf16.mxu1 %v6170_v47 }
 0x6b6   : > { %v2390_v45 = vpack.c.bf16 %v2381_v44, %v2380_v14 }
 0x6b8   : > { %5909 = vmatprep.mubr.bf16.mxu1 %v2390_v45  ;;  %5958 = vmatpush3.bf16.msra.mxu1 %v6170_v47 }
 0x6b9   : > { %5910 = vmatmul.mubr.bf16.gmra.mrb[108].mxu1 %v2391_v40  ;;  %5959 = vmatprep.subr.bf16.mxu1 %v6171_v50 }
 0x6bc   : > { %5960 = vmatpush3.bf16.msra.mxu1 %v6171_v50  ;;  %v6178_v50 = vld [vmem:[%s8196_s2 + $0x270] sm:$0xff]  }
 0x75c   : > { %v5899_v32 = vpop.f32.mrb[96].mxu1 }
 0x75d   : > { %v2505_v59 = vadd.f32 %v5899_v32, %v5040_v21  ;;  %v2496_v61 = vpop.f32.mrb[97].mxu1  ;;  %v5065_v32 = vld [vmem:[%s8198_s4 + $0x8] ss:$0 sm:$0xff] }
 0x75e   : > { %v2497_v48 = vadd.f32 %v5040_v21, %v2496_v61  ;;  %v5900_v53 = vpop.f32.mrb[98].mxu1 }
 0x75f   : > { %v2508_v56 = vadd.f32 %v5900_v53, %v5040_v21  ;;  %v2499_v62 = vpop.f32.mrb[99].mxu1  ;;  %v2561_v24 = vmax.f32 %v2505_v59, 0.0 }
 0x760   : > { %v2500_v63 = vadd.f32 %v5040_v21, %v2499_v62  ;;  %v2559_v1 = vmax.f32 %v2497_v48, 0.0 }
 0x761   : > { %v2562_v0 = vmax.f32 %v2508_v56, 0.0 }
 0x762   : > { %v2560_v34 = vmax.f32 %v2500_v63, 0.0 }
 0x763   : > { %v2576_v2 = vpack.c.bf16 %v2562_v0, %v2561_v24 }
 0x764   : > { %v2575_v4 = vpack.c.bf16 %v2560_v34, %v2559_v1 }
 0x766   : > { %5929 = vmatprep.mubr.bf16.mxu0 %v2575_v4 }
 0x767   : > { %5930 = vmatmul.mubr.bf16.vlgmr.msra.gmra.mrb[112].mxu0 %v2576_v2 }
 0x768   : > { %5978 = vmatpush3.bf16.msra.mxu0 %v6172_v51  ;;  %v6179_v51 = vld [vmem:[%s8196_s2 + $0x278] sm:$0xff]  }
 0x769   : > { %5979 = vmatprep.subr.bf16.mxu0 %v6173_v54 }
 0x76c   : > { %v5903_v5 = vpop.f32.mrb[100].mxu1  ;;  %5980 = vmatpush3.bf16.msra.mxu0 %v6173_v54  ;;  %v6180_v54 = vld [vmem:[%s8197_s3] ss:$28 sps:$4 sm:$0xff]  }
 0x76d   : > { %v2521_v7 = vadd.f32 %v5903_v5, %v5040_v21  ;;  %v2512_v8 = vpop.f32.mrb[101].mxu1  ;;  %5981 = vmatprep.subr.bf16.mxu0 %v6174_v55 }
 0x76e   : > { %v2513_v9 = vadd.f32 %v5040_v21, %v2512_v8  ;;  %v5904_v10 = vpop.f32.mrb[102].mxu1 }
 0x76f   : > { %v2524_v12 = vadd.f32 %v5904_v10, %v5040_v21  ;;  %v2515_v39 = vpop.f32.mrb[103].mxu1  ;;  %v2565_v15 = vmax.f32 %v2521_v7, 0.0 }
 0x770   : > { %v2516_v13 = vadd.f32 %v5040_v21, %v2515_v39  ;;  %v2563_v42 = vmax.f32 %v2513_v9, 0.0  ;;  %5982 = vmatpush3.bf16.msra.mxu0 %v6174_v55  ;;  %v6182_v55 = vld [vmem:[%s8197_s3 + $0x4] ss:$28 sps:$4 sm:$0xff]  }
 0x771   : > { %v2566_v16 = vmax.f32 %v2524_v12, 0.0  ;;  %5983 = vmatprep.subr.bf16.mxu0 %v6175_v29  ;;  %3545 = vmatprep.subr.bf16.mxu1 %v6182_v55 }
 0x772   : > { %v2564_v17 = vmax.f32 %v2516_v13, 0.0 }
 0x773   : > { %v2578_v18 = vpack.c.bf16 %v2566_v16, %v2565_v15 }
 0x774   : > { %v2577_v49 = vpack.c.bf16 %v2564_v17, %v2563_v42  ;;  %5984 = vmatpush3.bf16.msra.mxu0 %v6175_v29  ;;  %v6185_v29 = vld [vmem:[%s8197_s3 + $0xc] ss:$28 sps:$4 sm:$0xff]  }
 0x775   : > { %5985 = vmatprep.subr.bf16.mxu0 %v6176_v58 }
 0x776   : > { %5933 = vmatprep.mubr.bf16.mxu0 %v2577_v49 }
 0x777   : > { %5934 = vmatmul.mubr.bf16.gmra.mrb[116].mxu0 %v2578_v18 }
 0x778   : > { %5986 = vmatpush3.bf16.msra.mxu0 %v6176_v58  ;;  %v6188_v58 = vld [vmem:[%s8197_s3 + $0x3c] ss:$28 sps:$4 sm:$0xff]  }
 0x77c   : > { %v5907_v19 = vpop.f32.mrb[104].mxu1 }
 0x77d   : > { %v2537_v20 = vadd.f32 %v5907_v19, %v5040_v21  ;;  %v2528_v22 = vpop.f32.mrb[105].mxu1 }
 0x77e   : > { %v2529_v52 = vadd.f32 %v5040_v21, %v2528_v22  ;;  %v5908_v23 = vpop.f32.mrb[106].mxu1 }
 0x77f   : > { %v2540_v25 = vadd.f32 %v5908_v23, %v5040_v21  ;;  %v2531_v26 = vpop.f32.mrb[107].mxu1  ;;  %v2569_v27 = vmax.f32 %v2537_v20, 0.0 }
 0x780   : > { %v2532_v57 = vadd.f32 %v5040_v21, %v2531_v26  ;;  %v2567_v30 = vmax.f32 %v2529_v52, 0.0 }
 0x781   : > { %v2570_v28 = vmax.f32 %v2540_v25, 0.0 }
 0x782   : > { %v2568_v60 = vmax.f32 %v2532_v57, 0.0 }
 0x783   : > { %v2580_v31 = vpack.c.bf16 %v2570_v28, %v2569_v27 }
 0x784   : > { %v2579_v33 = vpack.c.bf16 %v2568_v60, %v2567_v30 }
 0x786   : > { %5937 = vmatprep.mubr.bf16.mxu0 %v2579_v33 }
 0x787   : > { %5938 = vmatmul.mubr.bf16.gmra.mrb[120].mxu0 %v2580_v31 }
 0x78c   : > { %v5911_v36 = vpop.f32.mrb[108].mxu1 }
 0x78d   : > { %v2553_v37 = vadd.f32 %v5911_v36, %v5040_v21  ;;  %v2544_v3 = vpop.f32.mrb[109].mxu1 }
 0x78e   : > { %v2545_v38 = vadd.f32 %v5040_v21, %v2544_v3  ;;  %v5912_v41 = vpop.f32.mrb[110].mxu1 }
 0x78f   : > { %v2556_v6 = vadd.f32 %v5912_v41, %v5040_v21  ;;  %v2547_v11 = vpop.f32.mrb[111].mxu1  ;;  %v2573_v43 = vmax.f32 %v2553_v37, 0.0 }
 0x790   : > { %v2548_v35 = vadd.f32 %v5040_v21, %v2547_v11  ;;  %v2571_v44 = vmax.f32 %v2545_v38, 0.0  ;;  %v6177_v21 = vld [vmem:[%s8196_s2 + $0x268] sm:$0xff]  }
 0x791   : > { %v2574_v14 = vmax.f32 %v2556_v6, 0.0  ;;  %5987 = vmatprep.subr.bf16.mxu0 %v6177_v21 }
 0x792   : > { %v2572_v40 = vmax.f32 %v2548_v35, 0.0  ;;  %5988 = vmatpush3.bf16.msra.mxu0 %v6177_v21  ;;  %v6186_v21 = vld [vmem:[%s8197_s3 + $0x38] ss:$28 sps:$4 sm:$0xff]  }
 0x793   : > { %v2582_v45 = vpack.c.bf16 %v2574_v14, %v2573_v43  ;;  %5989 = vmatprep.subr.bf16.mxu0 %v6178_v50 }
 0x794   : > { %v2581_v46 = vpack.c.bf16 %v2572_v40, %v2571_v44 }
 0x796   : > { %5941 = vmatprep.mubr.bf16.mxu0 %v2581_v46  ;;  %5990 = vmatpush3.bf16.msra.mxu0 %v6178_v50 }
 0x797   : > { %5942 = vmatmul.mubr.bf16.gmra.mrb[124].mxu0 %v2582_v45  ;;  %5991 = vmatprep.subr.bf16.mxu0 %v6179_v51 }
 0x79a   : > { %5992 = vmatpush3.bf16.msra.mxu0 %v6179_v51 }
 0x79b   : > { %3658 = vmatprep.subr.bf16.mxu0 %v6185_v29 }
 0x83a   : > { %v5931_v59 = vpop.f32.mrb[112].mxu0 }
 0x83b   : > { %v2696_v61 = vadd.f32 %v5931_v59, %v5065_v32  ;;  %v2687_v48 = vpop.f32.mrb[113].mxu0  ;;  %v6192_v59 = vld [vmem:[%s8197_s3 + $0x70] ss:$28 sps:$4 sm:$0xff]  }
 0x83c   : > { %v2688_v53 = vadd.f32 %v5065_v32, %v2687_v48  ;;  %v5932_v56 = vpop.f32.mrb[114].mxu0  ;;  %v6198_v48 = vld [vmem:[%s8197_s3 + $0xa8] ss:$28 sps:$4 sm:$0xff]  }
 0x83d   : > { %v2699_v62 = vadd.f32 %v5932_v56, %v5065_v32  ;;  %v2690_v63 = vpop.f32.mrb[115].mxu0  ;;  %v2752_v0 = vmax.f32 %v2696_v61, 0.0  ;;  %v6200_v61 = vld [vmem:[%s8197_s3 + $0xac] ss:$28 sps:$4 sm:$0xff]   ;;  %v6204_v56 = vld [vmem:[%s8197_s3 + $0xe0] ss:$28 sps:$4 sm:$0xff]  }
 0x83e   : > { %v2691_v24 = vadd.f32 %v5065_v32, %v2690_v63  ;;  %v2750_v34 = vmax.f32 %v2688_v53, 0.0  ;;  %v6206_v53 = vld [vmem:[%s8197_s3 + $0xe4] ss:$28 sps:$4 sm:$0xff]   ;;  %v6210_v63 = vld [vmem:[%s8197_s3 + $0x118] ss:$28 sps:$4 sm:$0xff]  }
 0x83f   : > { %v2753_v1 = vmax.f32 %v2699_v62, 0.0  ;;  %v6212_v62 = vld [vmem:[%s8197_s3 + $0x11c] ss:$28 sps:$4 sm:$0xff]  }
 0x840   : > { %v2751_v2 = vmax.f32 %v2691_v24, 0.0  ;;  %v7418_v24 = vld [vmem:[%s8198_s4 + $0x9] ss:$0 sm:$0xff] }
 0x841   : > { %v2767_v4 = vpack.c.bf16 %v2753_v1, %v2752_v0 }
 0x842   : > { %v2766_v5 = vpack.c.bf16 %v2751_v2, %v2750_v34 }
 0x844   : > { %5961 = vmatprep.mubr.bf16.mxu1 %v2766_v5 }
 0x845   : > { %5962 = vmatmul.mubr.bf16.vlgmr.msra.gmra.mrb[112].mxu1 %v2767_v4 }
 0x846   : > { %3546 = vmatpush1.bf16.msra.mxu1 %v6180_v54 }
 0x847   : > { %3547 = vmatprep.subr.bf16.mxu1 %v6188_v58 }
 0x84a   : > { %v5935_v7 = vpop.f32.mrb[116].mxu0  ;;  %3548 = vmatpush1.bf16.msra.mxu1 %v6186_v21 }
 0x84b   : > { %v2712_v8 = vadd.f32 %v5935_v7, %v5065_v32  ;;  %v2703_v9 = vpop.f32.mrb[117].mxu0 }
 0x84c   : > { %v2704_v10 = vadd.f32 %v5065_v32, %v2703_v9  ;;  %v5936_v12 = vpop.f32.mrb[118].mxu0 }
 0x84d   : > { %v2715_v39 = vadd.f32 %v5936_v12, %v5065_v32  ;;  %v2706_v13 = vpop.f32.mrb[119].mxu0  ;;  %v2756_v16 = vmax.f32 %v2712_v8, 0.0 }
 0x84e   : > { %v2707_v15 = vadd.f32 %v5065_v32, %v2706_v13  ;;  %v2754_v17 = vmax.f32 %v2704_v10, 0.0 }
 0x84f   : > { %v2757_v42 = vmax.f32 %v2715_v39, 0.0 }
 0x850   : > { %v2755_v18 = vmax.f32 %v2707_v15, 0.0 }
 0x851   : > { %v2769_v49 = vpack.c.bf16 %v2757_v42, %v2756_v16  ;;  %v6183_v16 = vld [vmem:[%s8197_s3 + $0x8] ss:$28 sps:$4 sm:$0xff]  }
 0x852   : > { %v2768_v19 = vpack.c.bf16 %v2755_v18, %v2754_v17  ;;  %v6191_v42 = vld [vmem:[%s8197_s3 + $0x44] ss:$28 sps:$4 sm:$0xff]   ;;  %v6197_v18 = vld [vmem:[%s8197_s3 + $0x7c] ss:$28 sps:$4 sm:$0xff]  }
 0x853   : > { %v6189_v17 = vld [vmem:[%s8197_s3 + $0x40] ss:$28 sps:$4 sm:$0xff]  }
 0x854   : > { %5965 = vmatprep.mubr.bf16.mxu1 %v2768_v19  ;;  %v6195_v19 = vld [vmem:[%s8197_s3 + $0x78] ss:$28 sps:$4 sm:$0xff]  }
 0x855   : > { %5966 = vmatmul.mubr.bf16.gmra.mrb[116].mxu1 %v2769_v49 }
 0x85a   : > { %v5939_v20 = vpop.f32.mrb[120].mxu0 }
 0x85b   : > { %v2728_v22 = vadd.f32 %v5939_v20, %v5065_v32  ;;  %v2719_v52 = vpop.f32.mrb[121].mxu0 }
 0x85c   : > { %v2720_v23 = vadd.f32 %v5065_v32, %v2719_v52  ;;  %v5940_v25 = vpop.f32.mrb[122].mxu0  ;;  %v6203_v52 = vld [vmem:[%s8197_s3 + $0xb4] ss:$28 sps:$4 sm:$0xff]  }
 0x85d   : > { %v2731_v26 = vadd.f32 %v5940_v25, %v5065_v32  ;;  %v2722_v57 = vpop.f32.mrb[123].mxu0  ;;  %v2760_v28 = vmax.f32 %v2728_v22, 0.0 }
 0x85e   : > { %v2723_v27 = vadd.f32 %v5065_v32, %v2722_v57  ;;  %v2758_v60 = vmax.f32 %v2720_v23, 0.0 }
 0x85f   : > { %v2761_v30 = vmax.f32 %v2731_v26, 0.0 }
 0x860   : > { %v2759_v31 = vmax.f32 %v2723_v27, 0.0 }
 0x861   : > { %v2771_v33 = vpack.c.bf16 %v2761_v30, %v2760_v28  ;;  %v6201_v28 = vld [vmem:[%s8197_s3 + $0xb0] ss:$28 sps:$4 sm:$0xff]  }
 0x862   : > { %v2770_v36 = vpack.c.bf16 %v2759_v31, %v2758_v60  ;;  %v6209_v31 = vld [vmem:[%s8197_s3 + $0xec] ss:$28 sps:$4 sm:$0xff]  }
 0x864   : > { %5969 = vmatprep.mubr.bf16.mxu1 %v2770_v36 }
 0x865   : > { %5970 = vmatmul.mubr.bf16.gmra.mrb[120].mxu1 %v2771_v33 }
 0x86a   : > { %v5943_v37 = vpop.f32.mrb[124].mxu0 }
 0x86b   : > { %v2744_v3 = vadd.f32 %v5943_v37, %v5065_v32  ;;  %v2735_v38 = vpop.f32.mrb[125].mxu0 }
 0x86c   : > { %v2736_v41 = vadd.f32 %v5065_v32, %v2735_v38  ;;  %v5944_v6 = vpop.f32.mrb[126].mxu0  ;;  %v6207_v38 = vld [vmem:[%s8197_s3 + $0xe8] ss:$28 sps:$4 sm:$0xff]  }
 0x86d   : > { %v2747_v11 = vadd.f32 %v5944_v6, %v5065_v32  ;;  %v2738_v35 = vpop.f32.mrb[127].mxu0  ;;  %v2764_v14 = vmax.f32 %v2744_v3, 0.0  ;;  %v6213_v6 = vld [vmem:[%s8197_s3 + $0x120] ss:$28 sps:$4 sm:$0xff]  }
 0x86e   : > { %v2739_v43 = vadd.f32 %v5065_v32, %v2738_v35  ;;  %v2762_v40 = vmax.f32 %v2736_v41, 0.0  ;;  %v6194_v32 = vld [vmem:[%s8197_s3 + $0x74] ss:$28 sps:$4 sm:$0xff]   ;;  %v6215_v41 = vld [vmem:[%s8197_s3 + $0x124] ss:$28 sps:$4 sm:$0xff]  }
 0x86f   : > { %v2765_v44 = vmax.f32 %v2747_v11, 0.0  ;;  %3549 = vmatprep.subr.bf16.mxu1 %v6194_v32 }
 0x870   : > { %v2763_v45 = vmax.f32 %v2739_v43, 0.0  ;;  %3550 = vmatpush1.bf16.msra.mxu1 %v6192_v59 }
 0x871   : > { %v2773_v46 = vpack.c.bf16 %v2765_v44, %v2764_v14  ;;  %3551 = vmatprep.subr.bf16.mxu1 %v6200_v61 }
 0x872   : > { %v2772_v47 = vpack.c.bf16 %v2763_v45, %v2762_v40 }
 0x874   : > { %5973 = vmatprep.mubr.bf16.mxu1 %v2772_v47  ;;  %3552 = vmatpush1.bf16.msra.mxu1 %v6198_v48 }
 0x875   : > { %5974 = vmatmul.mubr.bf16.gmra.mrb[124].mxu1 %v2773_v46  ;;  %3553 = vmatprep.subr.bf16.mxu1 %v6206_v53 }
 0x878   : > { %3554 = vmatpush1.bf16.msra.mxu1 %v6204_v56 }
 0x879   : > { %3555 = vmatprep.subr.bf16.mxu1 %v6212_v62 }
 0x87c   : > { %3556 = vmatpush1.bf16.msra.mxu1 %v6210_v63 }
 0x918   : > { %v5963_v0 = vpop.f32.mrb[112].mxu1 }
 0x919   : > { %v2887_v1 = vadd.f32 %v5963_v0, %v7418_v24  ;;  %v2878_v34 = vpop.f32.mrb[113].mxu1 }
 0x91a   : > { %v2879_v2 = vadd.f32 %v7418_v24, %v2878_v34  ;;  %v5964_v4 = vpop.f32.mrb[114].mxu1 }
 0x91b   : > { %v2890_v5 = vadd.f32 %v5964_v4, %v7418_v24  ;;  %v2881_v7 = vpop.f32.mrb[115].mxu1  ;;  %v2943_v9 = vmax.f32 %v2887_v1, 0.0  ;;  %v6218_v4 = vld [vmem:[%s8197_s3 + $0x154] ss:$28 sps:$4 sm:$0xff]  }
 0x91c   : > { %v2882_v8 = vadd.f32 %v7418_v24, %v2881_v7  ;;  %v2941_v12 = vmax.f32 %v2879_v2, 0.0  ;;  %v6219_v7 = vld [vmem:[%s8197_s3 + $0x158] ss:$28 sps:$4 sm:$0xff]   ;;  %3557 = vmatprep.subr.bf16.mxu1 %v6218_v4 }
 0x91d   : > { %v2944_v10 = vmax.f32 %v2890_v5, 0.0  ;;  %v6221_v5 = vld [vmem:[%s8197_s3 + $0x15c] ss:$28 sps:$4 sm:$0xff]  }
 0x91e   : > { %v2942_v39 = vmax.f32 %v2882_v8, 0.0  ;;  %v6224_v8 = vld [vmem:[%s8197_s3 + $0x18c] ss:$28 sps:$4 sm:$0xff]  }
 0x91f   : > { %v2958_v13 = vpack.c.bf16 %v2944_v10, %v2943_v9  ;;  %v6227_v9 = vld [vmem:[%s8197_s3 + $0x194] ss:$28 sps:$4 sm:$0xff]   ;;  %v6222_v10 = vld [vmem:[%s8197_s3 + $0x188] ss:$28 sps:$4 sm:$0xff]  }
 0x920   : > { %v2957_v15 = vpack.c.bf16 %v2942_v39, %v2941_v12  ;;  %v6225_v12 = vld [vmem:[%s8197_s3 + $0x190] ss:$28 sps:$4 sm:$0xff]   ;;  %v6717_v39 = vmov 0  }
 0x921   : > { %3577 = vmatprep.mubr.bf16.mxu1 %v6717_v39 }
 0x922   : > { %5993 = vmatprep.mubr.bf16.mxu0 %v2957_v15  ;;  %v6243_v15 = vld [vmem:[%s8197_s3 + $0x18] ss:$28 sps:$4 sm:$0xff]  }
 0x923   : > { %5994 = vmatmul.mubr.bf16.vlgmr.msra.gmra.mrb[128].mxu0 %v2958_v13  ;;  %v6230_v13 = vld [vmem:[%s8197_s3 + $0x14] ss:$28 sps:$4 sm:$0xff]  }
 0x924   : > { %3659 = vmatpush1.bf16.msra.mxu0 %v6183_v16  ;;  %v7504_v16 = vld [vmem:[%s8198_s4 + $0xa] ss:$0 sm:$0xff] }
 0x925   : > { %3660 = vmatprep.subr.bf16.mxu0 %v6191_v42 }
 0x928   : > { %v5967_v49 = vpop.f32.mrb[116].mxu1  ;;  %3661 = vmatpush1.bf16.msra.mxu0 %v6189_v17 }
 0x929   : > { %v2903_v20 = vadd.f32 %v5967_v49, %v7418_v24  ;;  %v2894_v22 = vpop.f32.mrb[117].mxu1  ;;  %3662 = vmatprep.subr.bf16.mxu0 %v6197_v18 }
 0x92a   : > { %v2895_v23 = vadd.f32 %v7418_v24, %v2894_v22  ;;  %v5968_v25 = vpop.f32.mrb[118].mxu1 }
 0x92b   : > { %v2906_v26 = vadd.f32 %v5968_v25, %v7418_v24  ;;  %v2897_v57 = vpop.f32.mrb[119].mxu1  ;;  %v2947_v30 = vmax.f32 %v2903_v20, 0.0 }
 0x92c   : > { %v2898_v27 = vadd.f32 %v7418_v24, %v2897_v57  ;;  %3663 = vmatpush1.bf16.msra.mxu0 %v6195_v19  ;;  %v2945_v33 = vmax.f32 %v2895_v23, 0.0 }
 0x92d   : > { %v2948_v60 = vmax.f32 %v2906_v26, 0.0  ;;  %3664 = vmatprep.subr.bf16.mxu0 %v6203_v52 }
 0x92e   : > { %v2946_v36 = vmax.f32 %v2898_v27, 0.0 }
 0x92f   : > { %v2960_v37 = vpack.c.bf16 %v2948_v60, %v2947_v30  ;;  %v6233_v60 = vld [vmem:[%s8197_s3 + $0x4c] ss:$28 sps:$4 sm:$0xff]  }
 0x930   : > { %v2959_v3 = vpack.c.bf16 %v2946_v36, %v2945_v33  ;;  %3665 = vmatpush1.bf16.msra.mxu0 %v6201_v28  ;;  %v6228_v28 = vld [vmem:[%s8197_s3 + $0x10] ss:$28 sps:$4 sm:$0xff]   ;;  %v6231_v33 = vld [vmem:[%s8197_s3 + $0x48] ss:$28 sps:$4 sm:$0xff]  }
 0x931   : > { %3666 = vmatprep.subr.bf16.mxu0 %v6209_v31  ;;  %v6244_v31 = vld [vmem:[%s8197_s3 + $0x50] ss:$28 sps:$4 sm:$0xff]   ;;  %v6236_v36 = vld [vmem:[%s8197_s3 + $0x84] ss:$28 sps:$4 sm:$0xff]  }
 0x932   : > { %5997 = vmatprep.mubr.bf16.mxu0 %v2959_v3  ;;  %v6234_v3 = vld [vmem:[%s8197_s3 + $0x80] ss:$28 sps:$4 sm:$0xff]  }
 0x933   : > { %5998 = vmatmul.mubr.bf16.gmra.mrb[132].mxu0 %v2960_v37 }
 0x934   : > { %3667 = vmatpush1.bf16.msra.mxu0 %v6207_v38  ;;  %v6248_v38 = vld [vmem:[%s8197_s3 + $0x88] ss:$28 sps:$4 sm:$0xff]  }
 0x935   : > { %3668 = vmatprep.subr.bf16.mxu0 %v6215_v41 }
 0x938   : > { %v5971_v11 = vpop.f32.mrb[120].mxu1  ;;  %3669 = vmatpush1.bf16.msra.mxu0 %v6213_v6 }
 0x939   : > { %v2919_v35 = vadd.f32 %v5971_v11, %v7418_v24  ;;  %v2910_v43 = vpop.f32.mrb[121].mxu1  ;;  %3670 = vmatprep.subr.bf16.mxu0 %v6221_v5  ;;  %v6239_v11 = vld [vmem:[%s8197_s3 + $0xbc] ss:$28 sps:$4 sm:$0xff]  }
 0x93a   : > { %v2911_v14 = vadd.f32 %v7418_v24, %v2910_v43  ;;  %v5972_v44 = vpop.f32.mrb[122].mxu1  ;;  %v6259_v5 = vld [vmem:[%s8197_s3 + $0x1a0] ss:$28 sps:$4 sm:$0xff]  }
 0x93b   : > { %v2922_v40 = vadd.f32 %v5972_v44, %v7418_v24  ;;  %v2913_v45 = vpop.f32.mrb[123].mxu1  ;;  %v2951_v47 = vmax.f32 %v2919_v35, 0.0 }
 0x93c   : > { %v2914_v46 = vadd.f32 %v7418_v24, %v2913_v45  ;;  %v2949_v51 = vmax.f32 %v2911_v14, 0.0  ;;  %3671 = vmatpush1.bf16.msra.mxu0 %v6219_v7  ;;  %v6249_v14 = vld [vmem:[%s8197_s3 + $0xc0] ss:$28 sps:$4 sm:$0xff]  }
 0x93d   : > { %v2952_v50 = vmax.f32 %v2922_v40, 0.0  ;;  %3672 = vmatprep.subr.bf16.mxu0 %v6227_v9  ;;  %v6255_v9 = vld [vmem:[%s8197_s3 + $0x198] ss:$28 sps:$4 sm:$0xff]  }
 0x93e   : > { %v2950_v54 = vmax.f32 %v2914_v46, 0.0  ;;  %v6237_v46 = vld [vmem:[%s8197_s3 + $0xb8] ss:$28 sps:$4 sm:$0xff]  }
 0x93f   : > { %v2962_v55 = vpack.c.bf16 %v2952_v50, %v2951_v47 }
 0x940   : > { %v2961_v29 = vpack.c.bf16 %v2950_v54, %v2949_v51  ;;  %3673 = vmatpush1.bf16.msra.mxu0 %v6225_v12  ;;  %v6242_v51 = vld [vmem:[%s8197_s3 + $0xf4] ss:$28 sps:$4 sm:$0xff]  }
 0x941   : > { %6009 = vmatprep.subr.bf16.mxu0 %v6243_v15 }
 0x942   : > { %6001 = vmatprep.mubr.bf16.mxu0 %v2961_v29 }
 0x943   : > { %6002 = vmatmul.mubr.bf16.gmra.mrb[136].mxu0 %v2962_v55 }
 0x948   : > { %v5975_v58 = vpop.f32.mrb[124].mxu1 }
 0x949   : > { %v2935_v21 = vadd.f32 %v5975_v58, %v7418_v24  ;;  %v2926_v32 = vpop.f32.mrb[125].mxu1 }
 0x94a   : > { %v2927_v59 = vadd.f32 %v7418_v24, %v2926_v32  ;;  %v5976_v61 = vpop.f32.mrb[126].mxu1  ;;  %v6253_v32 = vld [vmem:[%s8197_s3 + $0xf8] ss:$28 sps:$4 sm:$0xff]  }
 0x94b   : > { %v2938_v48 = vadd.f32 %v5976_v61, %v7418_v24  ;;  %v2929_v53 = vpop.f32.mrb[127].mxu1  ;;  %v2955_v62 = vmax.f32 %v2935_v21, 0.0  ;;  %v6240_v21 = vld [vmem:[%s8197_s3 + $0xf0] ss:$28 sps:$4 sm:$0xff]  }
 0x94c   : > { %v2930_v56 = vadd.f32 %v7418_v24, %v2929_v53  ;;  %v2953_v0 = vmax.f32 %v2927_v59, 0.0  ;;  %v6216_v24 = vld [vmem:[%s8197_s3 + $0x150] ss:$28 sps:$4 sm:$0xff]   ;;  %v6252_v53 = vld [vmem:[%s8197_s3 + $0x164] ss:$28 sps:$4 sm:$0xff]  }
 0x94d   : > { %v2956_v63 = vmax.f32 %v2938_v48, 0.0  ;;  %3558 = vmatpush1.bf16.msra.mxu1 %v6216_v24  ;;  %v6247_v59 = vld [vmem:[%s8197_s3 + $0x12c] ss:$28 sps:$4 sm:$0xff]  }
 0x94e   : > { %v2954_v1 = vmax.f32 %v2930_v56, 0.0  ;;  %3559 = vmatprep.subr.bf16.mxu1 %v6224_v8  ;;  %v6254_v61 = vld [vmem:[%s8197_s3 + $0x130] ss:$28 sps:$4 sm:$0xff]   ;;  %v6245_v48 = vld [vmem:[%s8197_s3 + $0x128] ss:$28 sps:$4 sm:$0xff]  }
 0x94f   : > { %v2964_v34 = vpack.c.bf16 %v2956_v63, %v2955_v62  ;;  %v6250_v62 = vld [vmem:[%s8197_s3 + $0x160] ss:$28 sps:$4 sm:$0xff]   ;;  %v6258_v63 = vld [vmem:[%s8197_s3 + $0x168] ss:$28 sps:$4 sm:$0xff]  }
 0x950   : > { %v2963_v2 = vpack.c.bf16 %v2954_v1, %v2953_v0 }
 0x951   : > { %3560 = vmatpush1.bf16.msra.mxu1 %v6222_v10 }
 0x952   : > { %6005 = vmatprep.mubr.bf16.mxu0 %v2963_v2  ;;  %3771 = vmatprep.subr.bf16.mxu1 %v6230_v13 }
 0x953   : > { %6006 = vmatmul.mubr.bf16.gmra.mrb[140].mxu0 %v2964_v34  ;;  %v6257_v34 = vld [vmem:[%s8197_s3 + $0x19c] ss:$28 sps:$4 sm:$0xff]  }
 0x954   : > { %3690 = vmatprep.mubr.bf16.mxu0 %v6717_v39 }
 0x9f6   : > { %v5995_v42 = vpop.f32.mrb[128].mxu0 }
 0x9f7   : > { %v3078_v17 = vadd.f32 %v5995_v42, %v7504_v16  ;;  %v3069_v18 = vpop.f32.mrb[129].mxu0 }
 0x9f8   : > { %v3070_v49 = vadd.f32 %v7504_v16, %v3069_v18  ;;  %v5996_v19 = vpop.f32.mrb[130].mxu0 }
 0x9f9   : > { %v3081_v20 = vadd.f32 %v5996_v19, %v7504_v16  ;;  %v3072_v22 = vpop.f32.mrb[131].mxu0  ;;  %v3134_v23 = vmax.f32 %v3078_v17, 0.0 }
 0x9fa   : > { %v3073_v52 = vadd.f32 %v7504_v16, %v3072_v22  ;;  %v3132_v26 = vmax.f32 %v3070_v49, 0.0 }
 0x9fb   : > { %v3135_v25 = vmax.f32 %v3081_v20, 0.0 }
 0x9fc   : > { %v3133_v57 = vmax.f32 %v3073_v52, 0.0 }
 0x9fd   : > { %v7510_v27 = vpack.c.bf16 %v3135_v25, %v3134_v23 }
 0x9fe   : > { %v7515_v30 = vpack.c.bf16 %v3133_v57, %v3132_v26 }
 0xa00   : > { %3578 = vmatmul.mubr.bf16.vlgmr.msra.gmra.mrb[128].mxu1 %v7515_v30  ;;  %3691 = vmatmul.mubr.bf16.vlgmr.msra.gmra.mrb[144].mxu0 %v7515_v30 }
 0xa01   : > { %3772 = vmatpush1.bf16.msra.mxu1 %v6228_v28  ;;  %3587 = vmatprep.mubr.bf16.mxu1 %v6717_v39 }
 0xa02   : > { %3700 = vmatprep.mubr.bf16.mxu0 %v6717_v39  ;;  %3773 = vmatprep.subr.bf16.mxu1 %v6233_v60 }
 0xa03   : > { %6010 = vmatpush3.bf16.msra.mxu0 %v6243_v15 }
 0xa04   : > { %6011 = vmatprep.subr.bf16.mxu0 %v6244_v31 }
 0xa05   : > { %3774 = vmatpush1.bf16.msra.mxu1 %v6231_v33 }
 0xa06   : > { %v5999_v37 = vpop.f32.mrb[132].mxu0  ;;  %3775 = vmatprep.subr.bf16.mxu1 %v6236_v36 }
 0xa07   : > { %v3094_v41 = vadd.f32 %v5999_v37, %v7504_v16  ;;  %v3085_v6 = vpop.f32.mrb[133].mxu0  ;;  %6012 = vmatpush3.bf16.msra.mxu0 %v6244_v31  ;;  %v7641_v37 = vld [vmem:[%s8199_s5] sm:$0x7f] }
 0xa08   : > { %v3086_v35 = vadd.f32 %v7504_v16, %v3085_v6  ;;  %v6000_v43 = vpop.f32.mrb[134].mxu0  ;;  %3588 = vmatmul.mubr.bf16.gmra.mrb[132].mxu1 %v7510_v27  ;;  %3701 = vmatmul.mubr.bf16.gmra.mrb[148].mxu0 %v7510_v27 }
 0xa09   : > { %v3097_v44 = vadd.f32 %v6000_v43, %v7504_v16  ;;  %v3088_v40 = vpop.f32.mrb[135].mxu0  ;;  %3597 = vmatprep.mubr.bf16.mxu1 %v6717_v39  ;;  %3710 = vmatprep.mubr.bf16.mxu0 %v6717_v39  ;;  %v3138_v47 = vmax.f32 %v3094_v41, 0.0 }
 0xa0a   : > { %v3089_v45 = vadd.f32 %v7504_v16, %v3088_v40  ;;  %3776 = vmatpush1.bf16.msra.mxu1 %v6234_v3  ;;  %6013 = vmatprep.subr.bf16.mxu0 %v6248_v38  ;;  %v3136_v54 = vmax.f32 %v3086_v35, 0.0 }
 0xa0b   : > { %v3139_v50 = vmax.f32 %v3097_v44, 0.0  ;;  %3777 = vmatprep.subr.bf16.mxu1 %v6239_v11  ;;  %6014 = vmatpush3.bf16.msra.mxu0 %v6248_v38 }
 0xa0c   : > { %v3137_v55 = vmax.f32 %v3089_v45, 0.0  ;;  %6015 = vmatprep.subr.bf16.mxu0 %v6249_v14 }
 0xa0d   : > { %v7559_v29 = vpack.c.bf16 %v3139_v50, %v3138_v47 }
 0xa0e   : > { %v7561_v58 = vpack.c.bf16 %v3137_v55, %v3136_v54  ;;  %3778 = vmatpush1.bf16.msra.mxu1 %v6237_v46 }
 0xa0f   : > { %3779 = vmatprep.subr.bf16.mxu1 %v6242_v51  ;;  %6016 = vmatpush3.bf16.msra.mxu0 %v6249_v14 }
 0xa10   : > { %3598 = vmatmul.mubr.bf16.gmra.mrb[136].mxu1 %v7561_v58  ;;  %3711 = vmatmul.mubr.bf16.gmra.mrb[152].mxu0 %v7561_v58 }
 0xa11   : > { %3607 = vmatprep.mubr.bf16.mxu1 %v6717_v39  ;;  %3720 = vmatprep.mubr.bf16.mxu0 %v6717_v39 }
 0xa12   : > { %3780 = vmatpush1.bf16.msra.mxu1 %v6240_v21  ;;  %6017 = vmatprep.subr.bf16.mxu0 %v6253_v32 }
 0xa13   : > { %3781 = vmatprep.subr.bf16.mxu1 %v6247_v59  ;;  %6018 = vmatpush3.bf16.msra.mxu0 %v6253_v32 }
 0xa14   : > { %6019 = vmatprep.subr.bf16.mxu0 %v6254_v61 }
 0xa16   : > { %v6003_v56 = vpop.f32.mrb[136].mxu0  ;;  %3782 = vmatpush1.bf16.msra.mxu1 %v6245_v48 }
 0xa17   : > { %v3110_v0 = vadd.f32 %v6003_v56, %v7504_v16  ;;  %v3101_v1 = vpop.f32.mrb[137].mxu0  ;;  %3783 = vmatprep.subr.bf16.mxu1 %v6252_v53  ;;  %6020 = vmatpush3.bf16.msra.mxu0 %v6254_v61 }
 0xa18   : > { %v3102_v2 = vadd.f32 %v7504_v16, %v3101_v1  ;;  %v6004_v4 = vpop.f32.mrb[138].mxu0  ;;  %3608 = vmatmul.mubr.bf16.gmra.mrb[140].mxu1 %v7559_v29  ;;  %3721 = vmatmul.mubr.bf16.gmra.mrb[156].mxu0 %v7559_v29 }
 0xa19   : > { %v3113_v24 = vadd.f32 %v6004_v4, %v7504_v16  ;;  %v3104_v7 = vpop.f32.mrb[139].mxu0  ;;  %3617 = vmatprep.mubr.bf16.mxu1 %v6717_v39  ;;  %3730 = vmatprep.mubr.bf16.mxu0 %v6717_v39  ;;  %v3142_v10 = vmax.f32 %v3110_v0, 0.0 }
 0xa1a   : > { %v3105_v8 = vadd.f32 %v7504_v16, %v3104_v7  ;;  %3784 = vmatpush1.bf16.msra.mxu1 %v6250_v62  ;;  %6021 = vmatprep.subr.bf16.mxu0 %v6258_v63  ;;  %v3140_v13 = vmax.f32 %v3102_v2, 0.0 }
 0xa1b   : > { %v3143_v12 = vmax.f32 %v3113_v24, 0.0  ;;  %3785 = vmatprep.subr.bf16.mxu1 %v6257_v34  ;;  %6022 = vmatpush3.bf16.msra.mxu0 %v6258_v63 }
 0xa1c   : > { %v3141_v15 = vmax.f32 %v3105_v8, 0.0  ;;  %6023 = vmatprep.subr.bf16.mxu0 %v6259_v5 }
 0xa1d   : > { %v3153_v42 = vpack.c.bf16 %v3143_v12, %v3142_v10 }
 0xa1e   : > { %v3152_v17 = vpack.c.bf16 %v3141_v15, %v3140_v13  ;;  %3786 = vmatpush1.bf16.msra.mxu1 %v6255_v9 }
 0xa1f   : > { %6024 = vmatpush3.bf16.msra.mxu0 %v6259_v5 }
 0xa20   : > { %3618 = vmatmul.mubr.bf16.gmra.mrb[144].mxu1 %v3152_v17  ;;  %3731 = vmatmul.mubr.bf16.gmra.mrb[160].mxu0 %v3152_v17 }
 0xa21   : > { %3627 = vmatprep.mubr.bf16.mxu1 %v6717_v39  ;;  %3740 = vmatprep.mubr.bf16.mxu0 %v6717_v39 }
 0xa26   : > { %v6007_v18 = vpop.f32.mrb[140].mxu0 }
 0xa27   : > { %v3126_v49 = vadd.f32 %v6007_v18, %v7504_v16  ;;  %v3117_v19 = vpop.f32.mrb[141].mxu0 }
 0xa28   : > { %v3118_v20 = vadd.f32 %v7504_v16, %v3117_v19  ;;  %v6008_v22 = vpop.f32.mrb[142].mxu0  ;;  %3628 = vmatmul.mubr.bf16.gmra.mrb[148].mxu1 %v3153_v42  ;;  %3741 = vmatmul.mubr.bf16.gmra.mrb[164].mxu0 %v3153_v42 }
 0xa29   : > { %v3129_v52 = vadd.f32 %v6008_v22, %v7504_v16  ;;  %v3120_v23 = vpop.f32.mrb[143].mxu0  ;;  %3637 = vmatprep.mubr.bf16.mxu1 %v6717_v39  ;;  %3750 = vmatprep.mubr.bf16.mxu0 %v6717_v39  ;;  %v3146_v26 = vmax.f32 %v3126_v49, 0.0 }
 0xa2a   : > { %v3121_v25 = vadd.f32 %v7504_v16, %v3120_v23  ;;  %v3144_v28 = vmax.f32 %v3118_v20, 0.0  ;;  %v3222_v16 = vlaneseq }
 0xa2b   : > { %v3147_v57 = vmax.f32 %v3129_v52, 0.0 }
 0xa2c   : > { %v3145_v60 = vmax.f32 %v3121_v25, 0.0 }
 0xa2d   : > { %v3155_v31 = vpack.c.bf16 %v3147_v57, %v3146_v26 }
 0xa2e   : > { %v3154_v33 = vpack.c.bf16 %v3145_v60, %v3144_v28 }
 0xa30   : > { %3638 = vmatmul.mubr.bf16.gmra.mrb[152].mxu1 %v3154_v33  ;;  %3751 = vmatmul.mubr.bf16.gmra.mrb[168].mxu0 %v3154_v33 }
 0xa31   : > { %3647 = vmatprep.mubr.bf16.mxu1 %v6717_v39  ;;  %3760 = vmatprep.mubr.bf16.mxu0 %v6717_v39 }
 0xa38   : > { %3648 = vmatmul.mubr.bf16.gmra.mrb[156].mxu1 %v3155_v31  ;;  %3761 = vmatmul.mubr.bf16.gmra.mrb[172].mxu0 %v3155_v31 }
 0xa39   : > { %6025 = vmatprep.mubr.bf16.mxu0 %v7515_v30  ;;  %3803 = vmatprep.mubr.bf16.mxu1 %v6717_v39 }
 0xa40   : > { %3804 = vmatmul.mubr.bf16.vlgmr.msra.gmra.mrb[160].mxu1 %v7515_v30  ;;  %6026 = vmatmul.mubr.bf16.vlgmr.msra.gmra.mrb[176].mxu0 %v7510_v27 }
 0xa41   : > { %6029 = vmatprep.mubr.bf16.mxu0 %v7561_v58  ;;  %3813 = vmatprep.mubr.bf16.mxu1 %v6717_v39 }
 0xa48   : > { %3814 = vmatmul.mubr.bf16.gmra.mrb[164].mxu1 %v7510_v27  ;;  %6030 = vmatmul.mubr.bf16.gmra.mrb[180].mxu0 %v7559_v29  ;;  %v7634_v27 = vshrl.u32 %v3222_v16, 7 }
 0xa49   : > { %6033 = vmatprep.mubr.bf16.mxu0 %v3152_v17  ;;  %3823 = vmatprep.mubr.bf16.mxu1 %v6717_v39 }
 0xa4a   : > { %v3224_v30 = vsub.s32 0, %v7634_v27  ;;  %v3232_v36 = vsub.s32 2, %v7634_v27  ;;  %v3228_v3 = vsub.s32 1, %v7634_v27  ;;  %v3236_v38 = vsub.s32 3, %v7634_v27 }
 0xa4c   : > { %v7646_v41 = vrot.slane %v7641_v37, %v3224_v30  ;;  %v7652_v6 = vrot.slane %v7641_v37, %v3228_v3  ;;  %v7655_v11 = vrot.slane %v7641_v37, %v3236_v38 }
 0xa50   : > { %3824 = vmatmul.mubr.bf16.gmra.mrb[168].mxu1 %v7561_v58  ;;  %6034 = vmatmul.mubr.bf16.gmra.mrb[184].mxu0 %v3153_v42 }
 0xa51   : > { %6037 = vmatprep.mubr.bf16.mxu0 %v3154_v33  ;;  %3833 = vmatprep.mubr.bf16.mxu1 %v6717_v39 }
 0xa58   : > { %3834 = vmatmul.mubr.bf16.gmra.mrb[172].mxu1 %v7559_v29  ;;  %6038 = vmatmul.mubr.bf16.gmra.mrb[188].mxu0 %v3155_v31 }
 0xa59   : > { %3843 = vmatprep.mubr.bf16.mxu1 %v6717_v39 }
 0xa60   : > { %3844 = vmatmul.mubr.bf16.gmra.mrb[176].mxu1 %v3152_v17 }
 0xa61   : > { %3853 = vmatprep.mubr.bf16.mxu1 %v6717_v39 }
 0xa68   : > { %3854 = vmatmul.mubr.bf16.gmra.mrb[180].mxu1 %v3153_v42 }
 0xa69   : > { %3863 = vmatprep.mubr.bf16.mxu1 %v6717_v39 }
 0xa70   : > { %3864 = vmatmul.mubr.bf16.gmra.mrb[184].mxu1 %v3154_v33 }
 0xa71   : > { %3873 = vmatprep.mubr.bf16.mxu1 %v6717_v39  ;;  %v7649_v39 = vrot.slane %v7641_v37, %v3232_v36 }
 0xa78   : > { %3874 = vmatmul.mubr.bf16.gmra.mrb[188].mxu1 %v3155_v31 }
 0xad3   : > { %v3579_v35 = vpop.f32.mrb[128].mxu1  ;;  %v3692_v43 = vpop.f32.mrb[144].mxu0 }
 0xad4   : > { %v3580_v14 = vadd.f32 %v3579_v35, %v7646_v41  ;;  %v3693_v44 = vadd.f32 %v3692_v43, %v7649_v39  ;;  %v3581_v40 = vpop.f32.mrb[129].mxu1  ;;  %v3694_v45 = vpop.f32.mrb[145].mxu0 }
 0xad5   : > { %v3582_v46 = vadd.f32 %v3581_v40, %v7652_v6  ;;  %v3695_v47 = vadd.f32 %v3694_v45, %v7655_v11  ;;  %v3583_v50 = vpop.f32.mrb[130].mxu1  ;;  %v3696_v51 = vpop.f32.mrb[146].mxu0 }
 0xad6   : > { %v5180_v54 = vmul.f32 -1.442695, %v3580_v14  ;;  %v5182_v55 = vmul.f32 -1.442695, %v3693_v44  ;;  %v3584_v29 = vadd.f32 %v3583_v50, %v7646_v41  ;;  %v3697_v58 = vadd.f32 %v3696_v51, %v7649_v39  ;;  %v3585_v21 = vpop.f32.mrb[131].mxu1  ;;  %v3698_v32 = vpop.f32.mrb[147].mxu0 }
 0xad7   : > { %v5181_v59 = vmul.f32 -1.442695, %v3582_v46  ;;  %v5183_v61 = vmul.f32 -1.442695, %v3695_v47  ;;  %v3586_v48 = vadd.f32 %v3585_v21, %v7652_v6  ;;  %v3699_v53 = vadd.f32 %v3698_v32, %v7655_v11 }
 0xad8   : > { %6260 = vpow2.f32 %v5180_v54  ;;  %v5187_v56 = vmul.f32 -1.442695, %v3584_v29  ;;  %v5189_v62 = vmul.f32 -1.442695, %v3697_v58 }
 0xad9   : > { %6262 = vpow2.f32 %v5182_v55  ;;  %v5188_v63 = vmul.f32 -1.442695, %v3586_v48  ;;  %v5190_v0 = vmul.f32 -1.442695, %v3699_v53 }
 0xada   : > { %6264 = vpow2.f32 %v5181_v59 }
 0xadb   : > { %6266 = vpow2.f32 %v5183_v61  ;;  %v3589_v1 = vpop.f32.mrb[132].mxu1  ;;  %v3702_v34 = vpop.f32.mrb[148].mxu0 }
 0xadc   : > { %6268 = vpow2.f32 %v5187_v56  ;;  %v3590_v2 = vadd.f32 %v3589_v1, %v7646_v41  ;;  %v3703_v4 = vadd.f32 %v3702_v34, %v7649_v39  ;;  %v3591_v5 = vpop.f32.mrb[133].mxu1  ;;  %v3704_v24 = vpop.f32.mrb[149].mxu0 }
 0xadd   : > { %6270 = vpow2.f32 %v5189_v62  ;;  %v3592_v7 = vadd.f32 %v3591_v5, %v7652_v6  ;;  %v3705_v8 = vadd.f32 %v3704_v24, %v7655_v11  ;;  %v3593_v9 = vpop.f32.mrb[134].mxu1  ;;  %v3706_v10 = vpop.f32.mrb[150].mxu0 }
 0xade   : > { %6272 = vpow2.f32 %v5188_v63  ;;  %v5194_v12 = vmul.f32 -1.442695, %v3590_v2  ;;  %v5196_v13 = vmul.f32 -1.442695, %v3703_v4  ;;  %v3594_v15 = vadd.f32 %v3593_v9, %v7646_v41  ;;  %v3595_v42 = vpop.f32.mrb[135].mxu1  ;;  %v3708_v17 = vpop.f32.mrb[151].mxu0 }
 0xadf   : > { %6274 = vpow2.f32 %v5190_v0  ;;  %v5195_v18 = vmul.f32 -1.442695, %v3592_v7  ;;  %v5197_v49 = vmul.f32 -1.442695, %v3705_v8  ;;  %v3707_v51 = vadd.f32 %v3706_v10, %v7649_v39 }
 0xae0   : > { %6276 = vpow2.f32 %v5194_v12  ;;  %v5201_v19 = vmul.f32 -1.442695, %v3594_v15  ;;  %v3596_v29 = vadd.f32 %v3595_v42, %v7652_v6  ;;  %v3709_v59 = vadd.f32 %v3708_v17, %v7655_v11 }
 0xae1   : > { %6278 = vpow2.f32 %v5196_v13  ;;  %v5203_v2 = vmul.f32 -1.442695, %v3707_v51 }
 0xae2   : > { %v6261_v20 = vpop.eup %6260  ;;  %6280 = vpow2.f32 %v5195_v18  ;;  %v5202_v9 = vmul.f32 -1.442695, %v3596_v29  ;;  %v5204_v15 = vmul.f32 -1.442695, %v3709_v59 }
 0xae3   : > { %v6263_v22 = vpop.eup %6262  ;;  %v4317_v52 = vadd.f32 1.0, %v6261_v20  ;;  %6282 = vpow2.f32 %v5197_v49  ;;  %v3599_v23 = vpop.f32.mrb[136].mxu1 }
 0xae4   : > { %v3712_v25 = vpop.f32.mrb[152].mxu0  ;;  %v6265_v26 = vpop.eup %6264  ;;  %v4319_v57 = vadd.f32 1.0, %v6263_v22  ;;  %6284 = vpow2.f32 %v5201_v19  ;;  %v3600_v62 = vadd.f32 %v3599_v23, %v7646_v41 }
 0xae5   : > { %v3601_v28 = vpop.f32.mrb[137].mxu1  ;;  %v3714_v60 = vpop.f32.mrb[153].mxu0  ;;  %6286 = vrcp.f32 %v4317_v52  ;;  %v4318_v33 = vadd.f32 1.0, %v6265_v26  ;;  %v3713_v4 = vadd.f32 %v3712_v25, %v7649_v39 }
 0xae6   : > { %v6267_v31 = vpop.eup %6266  ;;  %v3603_v16 = vpop.f32.mrb[138].mxu1  ;;  %6288 = vrcp.f32 %v4319_v57  ;;  %v3602_v10 = vadd.f32 %v3601_v28, %v7652_v6  ;;  %v3715_v42 = vadd.f32 %v3714_v60, %v7655_v11  ;;  %v5208_v18 = vmul.f32 -1.442695, %v3600_v62 }
 0xae7   : > { %v7670_v30 = vpop.f32.mrb[154].mxu0  ;;  %v6269_v36 = vpop.eup %6268  ;;  %v4320_v3 = vadd.f32 1.0, %v6267_v31  ;;  %6290 = vrcp.f32 %v4318_v33  ;;  %v3604_v49 = vadd.f32 %v3603_v16, %v7646_v41  ;;  %v5210_v20 = vmul.f32 -1.442695, %v3713_v4 }
 0xae8   : > { %v7672_v38 = vpop.f32.mrb[139].mxu1  ;;  %v6271_v35 = vpop.eup %6270  ;;  %v4324_v43 = vadd.f32 1.0, %v6269_v36  ;;  %v3717_v22 = vadd.f32 %v7670_v30, %v7649_v39  ;;  %v5209_v23 = vmul.f32 -1.442695, %v3602_v10  ;;  %v5211_v60 = vmul.f32 -1.442695, %v3715_v42 }
 0xae9   : > { %v7674_v14 = vpop.f32.mrb[155].mxu0  ;;  %v6273_v44 = vpop.eup %6272  ;;  %6292 = vrcp.f32 %v4320_v3  ;;  %v4326_v40 = vadd.f32 1.0, %v6271_v35  ;;  %v3606_v25 = vadd.f32 %v7672_v38, %v7652_v6  ;;  %v5215_v36 = vmul.f32 -1.442695, %v3604_v49 }
 0xaea   : > { %v6275_v45 = vpop.eup %6274  ;;  %6294 = vrcp.f32 %v4324_v43  ;;  %v4325_v46 = vadd.f32 1.0, %v6273_v44  ;;  %v3719_v31 = vadd.f32 %v7674_v14, %v7655_v11  ;;  %v5217_v14 = vmul.f32 -1.442695, %v3717_v22 }
 0xaeb   : > { %v6277_v47 = vpop.eup %6276  ;;  %6296 = vrcp.f32 %v4326_v40  ;;  %v4327_v50 = vadd.f32 1.0, %v6275_v45  ;;  %v3609_v58 = vpop.f32.mrb[140].mxu1 }
 0xaec   : > { %v6279_v54 = vpop.eup %6278  ;;  %6298 = vrcp.f32 %v4325_v46  ;;  %v4331_v55 = vadd.f32 1.0, %v6277_v47  ;;  %v3722_v61 = vpop.f32.mrb[156].mxu0  ;;  %v3610_v3 = vadd.f32 %v3609_v58, %v7646_v41  ;;  %v5216_v47 = vmul.f32 -1.442695, %v3606_v25 }
 0xaed   : > { %v6281_v21 = vpop.eup %6280  ;;  %6300 = vrcp.f32 %v4327_v50  ;;  %v4333_v32 = vadd.f32 1.0, %v6279_v54  ;;  %v7679_v48 = vpop.f32.mrb[141].mxu1  ;;  %v3723_v44 = vadd.f32 %v3722_v61, %v7649_v39  ;;  %v5218_v51 = vmul.f32 -1.442695, %v3719_v31 }
 0xaee   : > { %v6283_v53 = vpop.eup %6282  ;;  %6302 = vrcp.f32 %v4331_v55  ;;  %v4332_v56 = vadd.f32 1.0, %v6281_v21  ;;  %v7689_v63 = vpop.f32.mrb[157].mxu0  ;;  %v5222_v29 = vmul.f32 -1.442695, %v3610_v3  ;;  %v3612_v42 = vadd.f32 %v7679_v48, %v7652_v6 }
 0xaef   : > { %v7691_v0 = vpop.f32.mrb[142].mxu1  ;;  %v6285_v1 = vpop.eup %6284  ;;  %6304 = vrcp.f32 %v4333_v32  ;;  %v4334_v34 = vadd.f32 1.0, %v6283_v53  ;;  %v5224_v21 = vmul.f32 -1.442695, %v3723_v44 }
 0xaf0   : > { %v7694_v5 = vpop.f32.mrb[158].mxu0  ;;  %v7696_v24 = vpop.f32.mrb[143].mxu1  ;;  %6306 = vrcp.f32 %v4332_v56  ;;  %v4338_v8 = vadd.f32 1.0, %v6285_v1  ;;  %v3614_v44 = vadd.f32 %v7691_v0, %v7646_v41 }
 0xaf1   : > { %v6287_v7 = vpop.eup %6286  ;;  %v7699_v12 = vpop.f32.mrb[159].mxu0  ;;  %6308 = vrcp.f32 %v4334_v34 }
 0xaf2   : > { %v6289_v13 = vpop.eup %6288  ;;  %4653 = vst [vmem:[%s7686_s23] sm:$0xff] %v6287_v7  ;;  %6310 = vrcp.f32 %v4338_v8 }
 0xaf3   : > { %v6291_v17 = vpop.eup %6290  ;;  %4655 = vst [vmem:[%s7686_s23 + $0x10] sm:$0xff] %v6289_v13  ;;  %6312 = vpow2.f32 %v5203_v2  ;;  %v7711_v26 = vpop.f32.mrb[144].mxu1 }
 0xaf4   : > { %v6293_v19 = vpop.eup %6292  ;;  %4654 = vst [vmem:[%s7686_s23 + $0x8] sm:$0xff] %v6291_v17  ;;  %6314 = vpow2.f32 %v5202_v9  ;;  %v7713_v57 = vpop.f32.mrb[160].mxu0 }
 0xaf5   : > { %v6295_v52 = vpop.eup %6294  ;;  %4656 = vst [vmem:[%s7686_s23 + $0x18] sm:$0xff] %v6293_v19  ;;  %6316 = vpow2.f32 %v5204_v15  ;;  %v7718_v33 = vpop.f32.mrb[145].mxu1  ;;  %v3725_v19 = vadd.f32 %v7689_v63, %v7655_v11 }
 0xaf6   : > { %v6297_v28 = vpop.eup %6296  ;;  %4660 = vst [vmem:[%s7686_s23 + $0x38] sm:$0xff] %v6295_v52  ;;  %v7720_v16 = vpop.f32.mrb[161].mxu0  ;;  %6318 = vpow2.f32 %v5208_v18 }
 0xaf7   : > { %v6299_v30 = vpop.eup %6298  ;;  %4662 = vst [vmem:[%s7686_s23 + $0x48] sm:$0xff] %v6297_v28  ;;  %v7724_v38 = vpop.f32.mrb[146].mxu1  ;;  %6320 = vpow2.f32 %v5210_v20 }
 0xaf8   : > { %v7726_v35 = vpop.f32.mrb[162].mxu0  ;;  %v6301_v43 = vpop.eup %6300  ;;  %4661 = vst [vmem:[%s7686_s23 + $0x40] sm:$0xff] %v6299_v30  ;;  %6322 = vpow2.f32 %v5209_v23 }
 0xaf9   : > { %v7730_v40 = vpop.f32.mrb[147].mxu1  ;;  %v3738_v45 = vpop.f32.mrb[163].mxu0  ;;  %4663 = vst [vmem:[%s7686_s23 + $0x50] sm:$0xff] %v6301_v43  ;;  %6324 = vpow2.f32 %v5211_v60 }
 0xafa   : > { %v6303_v46 = vpop.eup %6302  ;;  %v7735_v54 = vadd.f32 %v3738_v45, %v7655_v11  ;;  %6326 = vpow2.f32 %v5215_v36  ;;  %v5223_v36 = vmul.f32 -1.442695, %v3612_v42 }
 0xafb   : > { %v6305_v50 = vpop.eup %6304  ;;  %4667 = vst [vmem:[%s7686_s23 + $0x70] sm:$0xff] %v6303_v46  ;;  %6328 = vpow2.f32 %v5217_v14  ;;  %v3629_v59 = vpop.f32.mrb[148].mxu1  ;;  %v7769_v14 = vmul.f32 -1.442695, %v3725_v19 }
 0xafc   : > { %v6307_v55 = vpop.eup %6306  ;;  %4669 = vst [vmem:[%s7686_s23 + $0x80] sm:$0xff] %v6305_v50  ;;  %6330 = vpow2.f32 %v5216_v47  ;;  %v3742_v61 = vpop.f32.mrb[164].mxu0  ;;  %v7742_v56 = vadd.f32 %v3629_v59, %v7646_v41  ;;  %v3727_v50 = vadd.f32 %v7694_v5, %v7649_v39  ;;  %v3616_v5 = vadd.f32 %v7696_v24, %v7652_v6 }
 0xafd   : > { %v6309_v58 = vpop.eup %6308  ;;  %4668 = vst [vmem:[%s7686_s23 + $0x78] sm:$0xff] %v6307_v55  ;;  %6332 = vpow2.f32 %v5218_v51  ;;  %v7745_v62 = vadd.f32 %v3742_v61, %v7649_v39  ;;  %v3631_v1 = vpop.f32.mrb[149].mxu1  ;;  %v3620_v24 = vadd.f32 %v7711_v26, %v7646_v41  ;;  %v3733_v26 = vadd.f32 %v7713_v57, %v7649_v39 }
 0xafe   : > { %v6311_v32 = vpop.eup %6310  ;;  %4670 = vst [vmem:[%s7686_s23 + $0x88] sm:$0xff] %v6309_v58  ;;  %v3744_v34 = vpop.f32.mrb[165].mxu0  ;;  %6334 = vpow2.f32 %v5222_v29  ;;  %v7748_v7 = vadd.f32 %v3631_v1, %v7652_v6  ;;  %v3735_v57 = vadd.f32 %v7720_v16, %v7655_v11 }
 0xaff   : > { %v6313_v53 = vpop.eup %6312  ;;  %4674 = vst [vmem:[%s7686_s23 + $0xa8] sm:$0xff] %v6311_v32  ;;  %v7751_v8 = vadd.f32 %v3744_v34, %v7655_v11  ;;  %v3633_v9 = vpop.f32.mrb[150].mxu1  ;;  %6336 = vpow2.f32 %v5224_v21 }
 0xb00   : > { %v6315_v2 = vpop.eup %6314  ;;  %v4340_v4 = vadd.f32 1.0, %v6313_v53  ;;  %v3746_v10 = vpop.f32.mrb[166].mxu0  ;;  %v7758_v23 = vadd.f32 %v3633_v9, %v7646_v41 }
 0xb01   : > { %v6317_v13 = vpop.eup %6316  ;;  %v4339_v15 = vadd.f32 1.0, %v6315_v2  ;;  %v3635_v17 = vpop.f32.mrb[151].mxu1  ;;  %v7761_v25 = vadd.f32 %v3746_v10, %v7649_v39 }
 0xb02   : > { %v6319_v18 = vpop.eup %6318  ;;  %6338 = vrcp.f32 %v4340_v4  ;;  %v4341_v49 = vadd.f32 1.0, %v6317_v13  ;;  %v3748_v20 = vpop.f32.mrb[167].mxu0  ;;  %v7764_v60 = vadd.f32 %v3635_v17, %v7652_v6  ;;  %v5229_v13 = vmul.f32 -1.442695, %v3614_v44 }
 0xb03   : > { %v6321_v22 = vpop.eup %6320  ;;  %6340 = vrcp.f32 %v4339_v15  ;;  %v4345_v52 = vadd.f32 1.0, %v6319_v18  ;;  %v7767_v31 = vadd.f32 %v3748_v20, %v7655_v11  ;;  %v3639_v45 = vpop.f32.mrb[152].mxu1  ;;  %v3729_v15 = vadd.f32 %v7699_v12, %v7655_v11 }
 0xb04   : > { %v6323_v28 = vpop.eup %6322  ;;  %6342 = vrcp.f32 %v4341_v49  ;;  %v4347_v48 = vadd.f32 1.0, %v6321_v22  ;;  %v7776_v51 = vadd.f32 %v3639_v45, %v7646_v41  ;;  %v3752_v55 = vpop.f32.mrb[168].mxu0 }
 0xb05   : > { %v6325_v63 = vpop.eup %6324  ;;  %6344 = vrcp.f32 %v4345_v52  ;;  %v4346_v30 = vadd.f32 1.0, %v6323_v28  ;;  %v3641_v29 = vpop.f32.mrb[153].mxu1  ;;  %v7779_v32 = vadd.f32 %v3752_v55, %v7649_v39  ;;  %v5231_v28 = vmul.f32 -1.442695, %v3727_v50 }
 0xb06   : > { %v6327_v3 = vpop.eup %6326  ;;  %6346 = vrcp.f32 %v4347_v48  ;;  %v4348_v43 = vadd.f32 1.0, %v6325_v63  ;;  %v7782_v0 = vadd.f32 %v3641_v29, %v7652_v6  ;;  %v3754_v59 = vpop.f32.mrb[169].mxu0 }
 0xb07   : > { %v6329_v46 = vpop.eup %6328  ;;  %6348 = vrcp.f32 %v4346_v30  ;;  %v4352_v47 = vadd.f32 1.0, %v6327_v3  ;;  %v3643_v61 = vpop.f32.mrb[154].mxu1  ;;  %v7787_v34 = vadd.f32 %v3754_v59, %v7655_v11  ;;  %v5230_v30 = vmul.f32 -1.442695, %v3616_v5 }
 0xb08   : > { %v6331_v58 = vpop.eup %6330  ;;  %6350 = vrcp.f32 %v4348_v43  ;;  %v4354_v21 = vadd.f32 1.0, %v6329_v46  ;;  %v3756_v2 = vpop.f32.mrb[170].mxu0  ;;  %v7794_v49 = vadd.f32 %v3643_v61, %v7646_v41  ;;  %v5232_v3 = vmul.f32 -1.442695, %v3729_v15 }
 0xb09   : > { %v6333_v53 = vpop.eup %6332  ;;  %6352 = vrcp.f32 %v4352_v47  ;;  %v4353_v1 = vadd.f32 1.0, %v6331_v58  ;;  %v3645_v4 = vpop.f32.mrb[155].mxu1  ;;  %v7797_v22 = vadd.f32 %v3756_v2, %v7649_v39  ;;  %v3622_v43 = vadd.f32 %v7718_v33, %v7652_v6 }
 0xb0a   : > { %v6335_v9 = vpop.eup %6334  ;;  %6354 = vrcp.f32 %v4354_v21  ;;  %v4355_v10 = vadd.f32 1.0, %v6333_v53  ;;  %v3758_v42 = vpop.f32.mrb[171].mxu0  ;;  %v7800_v52 = vadd.f32 %v3645_v4, %v7652_v6  ;;  %v5236_v33 = vmul.f32 -1.442695, %v3620_v24 }
 0xb0b   : > { %v6337_v17 = vpop.eup %6336  ;;  %6356 = vrcp.f32 %v4353_v1  ;;  %v4359_v18 = vadd.f32 1.0, %v6335_v9  ;;  %v7806_v48 = vadd.f32 %v3758_v42, %v7655_v11  ;;  %v3649_v44 = vpop.f32.mrb[156].mxu1  ;;  %v5238_v53 = vmul.f32 -1.442695, %v3733_v26 }
 0xb0c   : > { %v6339_v19 = vpop.eup %6338  ;;  %6358 = vrcp.f32 %v4355_v10  ;;  %v4361_v20 = vadd.f32 1.0, %v6337_v17  ;;  %v3762_v45 = vpop.f32.mrb[172].mxu0  ;;  %v7815_v47 = vadd.f32 %v3649_v44, %v7646_v41  ;;  %v3624_v1 = vadd.f32 %v7724_v38, %v7646_v41 }
 0xb0d   : > { %v6341_v12 = vpop.eup %6340  ;;  %4676 = vst [vmem:[%s7686_s23 + $0xb8] sm:$0xff] %v6339_v19  ;;  %6360 = vrcp.f32 %v4359_v18  ;;  %v7818_v50 = vadd.f32 %v3762_v45, %v7649_v39  ;;  %v3651_v55 = vpop.f32.mrb[157].mxu1  ;;  %v5237_v9 = vmul.f32 -1.442695, %v3622_v43  ;;  %v3737_v10 = vadd.f32 %v7726_v35, %v7649_v39 }
 0xb0e   : > { %v6343_v63 = vpop.eup %6342  ;;  %4675 = vst [vmem:[%s7686_s23 + $0xb0] sm:$0xff] %v6341_v12  ;;  %6362 = vrcp.f32 %v4361_v20  ;;  %v3764_v29 = vpop.f32.mrb[173].mxu0  ;;  %v7823_v21 = vadd.f32 %v3651_v55, %v7652_v6  ;;  %v5239_v35 = vmul.f32 -1.442695, %v3735_v57  ;;  %v5243_v18 = vmul.f32 -1.442695, %v3624_v1 }
 0xb0f   : > { %v6345_v46 = vpop.eup %6344  ;;  %4677 = vst [vmem:[%s7686_s23 + $0xc0] sm:$0xff] %v6343_v63  ;;  %6364 = vpow2.f32 %v5223_v36  ;;  %v7826_v36 = vadd.f32 %v3764_v29, %v7655_v11  ;;  %v3653_v16 = vpop.f32.mrb[158].mxu1 }
 0xb10   : > { %v6347_v58 = vpop.eup %6346  ;;  %4681 = vst [vmem:[%s7686_s23 + $0xe0] sm:$0xff] %v6345_v46  ;;  %6366 = vpow2.f32 %v7769_v14  ;;  %v3766_v59 = vpop.f32.mrb[174].mxu0  ;;  %v7832_v5 = vadd.f32 %v3653_v16, %v7646_v41  ;;  %v3626_v41 = vadd.f32 %v7730_v40, %v7652_v6  ;;  %v5245_v40 = vmul.f32 -1.442695, %v3737_v10 }
 0xb11   : > { %v6349_v61 = vpop.eup %6348  ;;  %4683 = vst [vmem:[%s7686_s23 + $0xf0] sm:$0xff] %v6347_v58  ;;  %6368 = vpow2.f32 %v5229_v13  ;;  %v3655_v14 = vpop.f32.mrb[159].mxu1  ;;  %v7838_v13 = vadd.f32 %v3766_v59, %v7649_v39 }
 0xb12   : > { %v3768_v2 = vpop.f32.mrb[175].mxu0  ;;  %v6351_v4 = vpop.eup %6350  ;;  %4682 = vst [vmem:[%s7686_s23 + $0xe8] sm:$0xff] %v6349_v61  ;;  %6370 = vpow2.f32 %v5231_v28  ;;  %v7844_v38 = vadd.f32 %v3655_v14, %v7652_v6  ;;  %v5244_v20 = vmul.f32 -1.442695, %v3626_v41 }
 0xb13   : > { %v6353_v15 = vpop.eup %6352  ;;  %4684 = vst [vmem:[%s7686_s23 + $0xf8] sm:$0xff] %v6351_v4  ;;  %6372 = vpow2.f32 %v5230_v30  ;;  %v7847_v42 = vadd.f32 %v3768_v2, %v7655_v11  ;;  %v7852_v6 = vpop.f32.mrb[160].mxu1 }
 0xb14   : > { %v6355_v17 = vpop.eup %6354  ;;  %4688 = vst [vmem:[%s7686_s23 + $0x118] sm:$0xff] %v6353_v15  ;;  %6374 = vpow2.f32 %v5232_v3  ;;  %v7854_v19 = vpop.f32.mrb[176].mxu0 }
 0xb15   : > { %v6357_v39 = vpop.eup %6356  ;;  %4690 = vst [vmem:[%s7686_s23 + $0x128] sm:$0xff] %v6355_v17  ;;  %6376 = vpow2.f32 %v5236_v33  ;;  %v7857_v12 = vpop.f32.mrb[161].mxu1 }
 0xb16   : > { %v6359_v24 = vpop.eup %6358  ;;  %4689 = vst [vmem:[%s7686_s23 + $0x120] sm:$0xff] %v6357_v39  ;;  %6378 = vpow2.f32 %v5238_v53  ;;  %v7859_v28 = vpop.f32.mrb[177].mxu0 }
 0xb17   : > { %v6361_v11 = vpop.eup %6360  ;;  %4691 = vst [vmem:[%s7686_s23 + $0x130] sm:$0xff] %v6359_v24  ;;  %6380 = vpow2.f32 %v5237_v9  ;;  %v7862_v63 = vpop.f32.mrb[162].mxu1 }
 0xb18   : > { %v6363_v26 = vpop.eup %6362  ;;  %4695 = vst [vmem:[%s7686_s23 + $0x150] sm:$0xff] %v6361_v11  ;;  %6382 = vpow2.f32 %v5239_v35  ;;  %v7864_v30 = vpop.f32.mrb[178].mxu0 }
 0xb19   : > { %v6365_v3 = vpop.eup %6364  ;;  %4697 = vst [vmem:[%s7686_s23 + $0x160] sm:$0xff] %v6363_v26  ;;  %6384 = vpow2.f32 %v5243_v18  ;;  %v7867_v43 = vpop.f32.mrb[163].mxu1 }
 0xb1a   : > { %v7869_v44 = vpop.f32.mrb[179].mxu0  ;;  %v6367_v45 = vpop.eup %6366  ;;  %v4360_v46 = vadd.f32 1.0, %v6365_v3  ;;  %6386 = vpow2.f32 %v5245_v40 }
 0xb1b   : > { %v6369_v57 = vpop.eup %6368  ;;  %v4362_v55 = vadd.f32 1.0, %v6367_v45  ;;  %6388 = vpow2.f32 %v5244_v20  ;;  %v7871_v53 = vpop.f32.mrb[164].mxu1 }
 0xb1c   : > { %v6371_v29 = vpop.eup %6370  ;;  %6390 = vrcp.f32 %v4360_v46  ;;  %v4366_v58 = vadd.f32 1.0, %v6369_v57  ;;  %v7873_v2 = vpop.f32.mrb[180].mxu0 }
 0xb1d   : > { %v6373_v33 = vpop.eup %6372  ;;  %6392 = vrcp.f32 %v4362_v55  ;;  %v4368_v16 = vadd.f32 1.0, %v6371_v29  ;;  %v7875_v4 = vpop.f32.mrb[165].mxu1  ;;  %v5246_v55 = vmul.f32 -1.442695, %v7735_v54  ;;  %v5251_v54 = vmul.f32 -1.442695, %v7748_v7 }
 0xb1e   : > { %v6375_v59 = vpop.eup %6374  ;;  %6394 = vrcp.f32 %v4366_v58  ;;  %v4367_v61 = vadd.f32 1.0, %v6373_v33  ;;  %v7877_v15 = vpop.f32.mrb[181].mxu0  ;;  %v5250_v33 = vmul.f32 -1.442695, %v7742_v56  ;;  %v5257_v7 = vmul.f32 -1.442695, %v7758_v23 }
 0xb1f   : > { %v6377_v1 = vpop.eup %6376  ;;  %6396 = vrcp.f32 %v4368_v16  ;;  %v4369_v14 = vadd.f32 1.0, %v6375_v59  ;;  %v7879_v41 = vpop.f32.mrb[166].mxu1  ;;  %v5260_v23 = vmul.f32 -1.442695, %v7767_v31 }
 0xb20   : > { %v6379_v9 = vpop.eup %6378  ;;  %6398 = vrcp.f32 %v4367_v61  ;;  %v4373_v10 = vadd.f32 1.0, %v6377_v1  ;;  %v7881_v39 = vpop.f32.mrb[182].mxu0  ;;  %v5252_v61 = vmul.f32 -1.442695, %v7745_v62  ;;  %v5253_v62 = vmul.f32 -1.442695, %v7751_v8 }
 0xb21   : > { %v6381_v17 = vpop.eup %6380  ;;  %6400 = vrcp.f32 %v4369_v14  ;;  %v4375_v35 = vadd.f32 1.0, %v6379_v9  ;;  %v7883_v18 = vpop.f32.mrb[167].mxu1  ;;  %v3240_v8 = vsub.s32 4, %v7634_v27 }
 0xb22   : > { %v6383_v24 = vpop.eup %6382  ;;  %6402 = vrcp.f32 %v4373_v10  ;;  %v4374_v40 = vadd.f32 1.0, %v6381_v17  ;;  %v7885_v11 = vpop.f32.mrb[183].mxu0 }
 0xb23   : > { %v6385_v20 = vpop.eup %6384  ;;  %6404 = vrcp.f32 %v4375_v35  ;;  %v4376_v26 = vadd.f32 1.0, %v6383_v24  ;;  %v7889_v16 = vpop.f32.mrb[168].mxu1 }
 0xb24   : > { %v6387_v3 = vpop.eup %6386  ;;  %6406 = vrcp.f32 %v4374_v40  ;;  %v4380_v45 = vadd.f32 1.0, %v6385_v20  ;;  %v7893_v1 = vpop.f32.mrb[184].mxu0 }
 0xb25   : > { %v6389_v46 = vpop.eup %6388  ;;  %6408 = vrcp.f32 %v4376_v26  ;;  %v4382_v57 = vadd.f32 1.0, %v6387_v3  ;;  %v7895_v14 = vpop.f32.mrb[169].mxu1  ;;  %v5259_v3 = vmul.f32 -1.442695, %v7761_v25 }
 0xb26   : > { %v6391_v29 = vpop.eup %6390  ;;  %6410 = vrcp.f32 %v4380_v45  ;;  %v4381_v58 = vadd.f32 1.0, %v6389_v46  ;;  %v7899_v10 = vpop.f32.mrb[185].mxu0  ;;  %v5258_v46 = vmul.f32 -1.442695, %v7764_v60  ;;  %v5266_v60 = vmul.f32 -1.442695, %v7779_v32 }
 0xb27   : > { %v6393_v59 = vpop.eup %6392  ;;  %4696 = vst [vmem:[%s7686_s23 + $0x158] sm:$0xff] %v6391_v29  ;;  %6412 = vrcp.f32 %v4382_v57  ;;  %v7901_v56 = vpop.f32.mrb[170].mxu1  ;;  %v5264_v29 = vmul.f32 -1.442695, %v7776_v51  ;;  %v5265_v51 = vmul.f32 -1.442695, %v7782_v0 }
 0xb28   : > { %v6395_v9 = vpop.eup %6394  ;;  %4698 = vst [vmem:[%s7686_s23 + $0x168] sm:$0xff] %v6393_v59  ;;  %6414 = vrcp.f32 %v4381_v58  ;;  %v7905_v35 = vpop.f32.mrb[186].mxu0  ;;  %v7929_v59 = vrot.slane %v7641_v37, %v3240_v8  ;;  %v5267_v37 = vmul.f32 -1.442695, %v7787_v34 }
 0xb29   : > { %v6397_v17 = vpop.eup %6396  ;;  %4702 = vst [vmem:[%s7686_s23 + $0x188] sm:$0xff] %v6395_v9  ;;  %6416 = vpow2.f32 %v5246_v55  ;;  %v7907_v24 = vpop.f32.mrb[171].mxu1 }
 0xb2a   : > { %v6399_v40 = vpop.eup %6398  ;;  %4704 = vst [vmem:[%s7686_s23 + $0x198] sm:$0xff] %v6397_v17  ;;  %6418 = vpow2.f32 %v5250_v33  ;;  %v7911_v20 = vpop.f32.mrb[187].mxu0 }
 0xb2b   : > { %v6401_v26 = vpop.eup %6400  ;;  %4703 = vst [vmem:[%s7686_s23 + $0x190] sm:$0xff] %v6399_v40  ;;  %6420 = vpow2.f32 %v5252_v61  ;;  %v7922_v25 = vpop.f32.mrb[172].mxu1 }
 0xb2c   : > { %v6403_v45 = vpop.eup %6402  ;;  %4705 = vst [vmem:[%s7686_s23 + $0x1a0] sm:$0xff] %v6401_v26  ;;  %6422 = vpow2.f32 %v5251_v54  ;;  %v7924_v58 = vpop.f32.mrb[188].mxu0 }
 0xb2d   : > { %v6405_v57 = vpop.eup %6404  ;;  %4709 = vst [vmem:[%s7686_s23 + $0x1c0] sm:$0xff] %v6403_v45  ;;  %6424 = vpow2.f32 %v5253_v62  ;;  %v7931_v61 = vpop.f32.mrb[173].mxu1 }
 0xb2e   : > { %v6407_v55 = vpop.eup %6406  ;;  %4711 = vst [vmem:[%s7686_s23 + $0x1d0] sm:$0xff] %v6405_v57  ;;  %6426 = vpow2.f32 %v5257_v7  ;;  %v7933_v31 = vpop.f32.mrb[189].mxu0 }
 0xb2f   : > { %v6409_v33 = vpop.eup %6408  ;;  %4710 = vst [vmem:[%s7686_s23 + $0x1c8] sm:$0xff] %v6407_v55  ;;  %6428 = vpow2.f32 %v5259_v3  ;;  %v3839_v54 = vpop.f32.mrb[174].mxu1 }
 0xb30   : > { %v6411_v9 = vpop.eup %6410  ;;  %4712 = vst [vmem:[%s7686_s23 + $0x1d8] sm:$0xff] %v6409_v33  ;;  %6430 = vpow2.f32 %v5258_v46  ;;  %v7937_v17 = vpop.f32.mrb[190].mxu0  ;;  %v7942_v32 = vadd.f32 %v3839_v54, %v7929_v59 }
 0xb31   : > { %v6413_v62 = vpop.eup %6412  ;;  %4716 = vst [vmem:[%s7686_s23 + $0x1f8] sm:$0xff] %v6411_v9  ;;  %6432 = vpow2.f32 %v5260_v23  ;;  %v7944_v40 = vpop.f32.mrb[175].mxu1 }
 0xb32   : > { %v7946_v7 = vpop.f32.mrb[191].mxu0  ;;  %v6415_v26 = vpop.eup %6414  ;;  %4718 = vst [vmem:[%s7686_s23 + $0x208] sm:$0xff] %v6413_v62  ;;  %6434 = vpow2.f32 %v5264_v29 }
 0xb33   : > { %v6417_v3 = vpop.eup %6416  ;;  %4717 = vst [vmem:[%s7686_s23 + $0x200] sm:$0xff] %v6415_v26  ;;  %6436 = vpow2.f32 %v5266_v60  ;;  %v3845_v23 = vpop.f32.mrb[176].mxu1 }
 0xb34   : > { %v6419_v0 = vpop.eup %6418  ;;  %v4383_v8 = vadd.f32 1.0, %v6417_v3  ;;  %6438 = vpow2.f32 %v5265_v51  ;;  %v7951_v9 = vadd.f32 %v3845_v23, %v7929_v59  ;;  %v7953_v29 = vpop.f32.mrb[177].mxu1 }
 0xb35   : > { %v6421_v45 = vpop.eup %6420  ;;  %v4387_v46 = vadd.f32 1.0, %v6419_v0  ;;  %6440 = vpow2.f32 %v5267_v37  ;;  %v3849_v62 = vpop.f32.mrb[178].mxu1 }
 0xb36   : > { %v6423_v34 = vpop.eup %6422  ;;  %6442 = vrcp.f32 %v4383_v8  ;;  %v4389_v57 = vadd.f32 1.0, %v6421_v45  ;;  %8201 = vst [vmem:[#allocation2_spill] sm:$0xff] %v7951_v9  ;;  %v7956_v37 = vadd.f32 %v3849_v62, %v7929_v59  ;;  %v7958_v3 = vpop.f32.mrb[179].mxu1 }
 0xb37   : > { %v6425_v55 = vpop.eup %6424  ;;  %6444 = vrcp.f32 %v4387_v46  ;;  %v4388_v33 = vadd.f32 1.0, %v6423_v34 }
 0xb38   : > { %v6427_v54 = vpop.eup %6426  ;;  %6446 = vrcp.f32 %v4389_v57  ;;  %v4390_v60 = vadd.f32 1.0, %v6425_v55  ;;  %8202 = vst [vmem:[#allocation3_spill] sm:$0xff] %v7956_v37  ;;  %v3244_v57 = vsub.s32 5, %v7634_v27 }
 0xb39   : > { %v6429_v51 = vpop.eup %6428  ;;  %6448 = vrcp.f32 %v4388_v33  ;;  %v4394_v26 = vadd.f32 1.0, %v6427_v54 }
 0xb3a   : > { %v6431_v0 = vpop.eup %6430  ;;  %6450 = vrcp.f32 %v4390_v60  ;;  %v4396_v8 = vadd.f32 1.0, %v6429_v51  ;;  %v5271_v51 = vmul.f32 -1.442695, %v7794_v49 }
 0xb3b   : > { %v6433_v45 = vpop.eup %6432  ;;  %6452 = vrcp.f32 %v4394_v26  ;;  %v4395_v46 = vadd.f32 1.0, %v6431_v0  ;;  %v3855_v37 = vpop.f32.mrb[180].mxu1 }
 0xb3c   : > { %v6435_v34 = vpop.eup %6434  ;;  %6454 = vrcp.f32 %v4396_v8  ;;  %v4397_v23 = vadd.f32 1.0, %v6433_v45  ;;  %v7963_v26 = vadd.f32 %v3855_v37, %v7929_v59  ;;  %v7965_v0 = vpop.f32.mrb[181].mxu1 }
 0xb3d   : > { %v6437_v55 = vpop.eup %6436  ;;  %6456 = vrcp.f32 %v4395_v46  ;;  %v4401_v33 = vadd.f32 1.0, %v6435_v34  ;;  %v5273_v46 = vmul.f32 -1.442695, %v7797_v22  ;;  %v7971_v34 = vld [vmem:[%s8199_s5] sm:$0x7f]  ;;  %v3859_v49 = vpop.f32.mrb[182].mxu1 }
 0xb3e   : > { %v6439_v54 = vpop.eup %6438  ;;  %6458 = vrcp.f32 %v4397_v23  ;;  %v4403_v62 = vadd.f32 1.0, %v6437_v55  ;;  %v7974_v23 = vrot.slane %v7971_v34, %v3244_v57  ;;  %v5272_v55 = vmul.f32 -1.442695, %v7800_v52  ;;  %v3861_v22 = vpop.f32.mrb[183].mxu1 }
 0xb3f   : > { %v6441_v9 = vpop.eup %6440  ;;  %6460 = vrcp.f32 %v4401_v33  ;;  %v4402_v60 = vadd.f32 1.0, %v6439_v54  ;;  %v5274_v54 = vmul.f32 -1.442695, %v7806_v48  ;;  %v5278_v52 = vmul.f32 -1.442695, %v7815_v47 }
 0xb40   : > { %v6443_v8 = vpop.eup %6442  ;;  %6462 = vrcp.f32 %v4403_v62  ;;  %v4404_v45 = vadd.f32 1.0, %v6441_v9  ;;  %v7979_v9 = vadd.f32 %v3859_v49, %v7929_v59  ;;  %v7984_v57 = vadd.f32 %v3861_v22, %v7974_v23 }
 0xb41   : > { %v6445_v37 = vpop.eup %6444  ;;  %4719 = vst [vmem:[%s7686_s23 + $0x210] sm:$0xff] %v6443_v8  ;;  %6464 = vrcp.f32 %v4402_v60  ;;  %v5280_v8 = vmul.f32 -1.442695, %v7818_v50  ;;  %v5279_v48 = vmul.f32 -1.442695, %v7823_v21  ;;  %v3806_v50 = vadd.f32 %v7852_v6, %v7929_v59 }
 0xb42   : > { %v6447_v33 = vpop.eup %6446  ;;  %4723 = vst [vmem:[%s7686_s23 + $0x230] sm:$0xff] %v6445_v37  ;;  %6466 = vrcp.f32 %v4404_v45  ;;  %v5281_v37 = vmul.f32 -1.442695, %v7826_v36  ;;  %v5285_v47 = vmul.f32 -1.442695, %v7832_v5 }
 0xb43   : > { %v6449_v62 = vpop.eup %6448  ;;  %4725 = vst [vmem:[%s7686_s23 + $0x240] sm:$0xff] %v6447_v33  ;;  %6468 = vpow2.f32 %v5271_v51  ;;  %v3865_v51 = vpop.f32.mrb[184].mxu1  ;;  %v5287_v36 = vmul.f32 -1.442695, %v7838_v13  ;;  %v5286_v5 = vmul.f32 -1.442695, %v7844_v38 }
 0xb44   : > { %v6451_v60 = vpop.eup %6450  ;;  %4724 = vst [vmem:[%s7686_s23 + $0x238] sm:$0xff] %v6449_v62  ;;  %6470 = vpow2.f32 %v5273_v46  ;;  %v7999_v46 = vadd.f32 %v3865_v51, %v7929_v59  ;;  %v3867_v21 = vpop.f32.mrb[185].mxu1  ;;  %v5288_v13 = vmul.f32 -1.442695, %v7847_v42  ;;  %v3248_v51 = vsub.s32 6, %v7634_v27 }
 0xb45   : > { %v6453_v49 = vpop.eup %6452  ;;  %4726 = vst [vmem:[%s7686_s23 + $0x248] sm:$0xff] %v6451_v60  ;;  %6472 = vpow2.f32 %v5272_v55  ;;  %v8004_v33 = vadd.f32 %v3867_v21, %v7974_v23 }
 0xb46   : > { %v6455_v45 = vpop.eup %6454  ;;  %4730 = vst [vmem:[%s7686_s23 + $0x268] sm:$0xff] %v6453_v49  ;;  %6474 = vpow2.f32 %v5274_v54  ;;  %v3869_v54 = vpop.f32.mrb[186].mxu1 }
 0xb47   : > { %v6457_v22 = vpop.eup %6456  ;;  %4732 = vst [vmem:[%s7686_s23 + $0x278] sm:$0xff] %v6455_v45  ;;  %6476 = vpow2.f32 %v5278_v52  ;;  %v8009_v6 = vadd.f32 %v3869_v54, %v7929_v59  ;;  %v3871_v52 = vpop.f32.mrb[187].mxu1  ;;  %v5184_v45 = vmul.f32 -1.442695, %v3806_v50 }
 0xb48   : > { %v6459_v55 = vpop.eup %6458  ;;  %4731 = vst [vmem:[%s7686_s23 + $0x270] sm:$0xff] %v6457_v22  ;;  %6478 = vpow2.f32 %v5280_v8  ;;  %v8014_v8 = vadd.f32 %v3871_v52, %v7974_v23 }
 0xb49   : > { %v6461_v62 = vpop.eup %6460  ;;  %4733 = vst [vmem:[%s7686_s23 + $0x280] sm:$0xff] %v6459_v55  ;;  %6480 = vpow2.f32 %v5279_v48 }
 0xb4a   : > { %v6463_v60 = vpop.eup %6462  ;;  %4737 = vst [vmem:[%s7686_s23 + $0x2a0] sm:$0xff] %v6461_v62  ;;  %6482 = vpow2.f32 %v5281_v37 }
 0xb4b   : > { %v6465_v49 = vpop.eup %6464  ;;  %4739 = vst [vmem:[%s7686_s23 + $0x2b0] sm:$0xff] %v6463_v60  ;;  %6484 = vpow2.f32 %v5285_v47  ;;  %v3875_v37 = vpop.f32.mrb[188].mxu1  ;;  %v8027_v60 = vrot.slane %v7971_v34, %v3248_v51 }
 0xb4c   : > { %v6467_v48 = vpop.eup %6466  ;;  %4738 = vst [vmem:[%s7686_s23 + $0x2a8] sm:$0xff] %v6465_v49  ;;  %6486 = vpow2.f32 %v5287_v36  ;;  %v8021_v54 = vadd.f32 %v3875_v37, %v7929_v59  ;;  %v3877_v47 = vpop.f32.mrb[189].mxu1 }
 0xb4d   : > { %v6469_v38 = vpop.eup %6468  ;;  %4740 = vst [vmem:[%s7686_s23 + $0x2b8] sm:$0xff] %v6467_v48  ;;  %6488 = vpow2.f32 %v5286_v5  ;;  %v8024_v36 = vadd.f32 %v3877_v47, %v7974_v23  ;;  %v3879_v5 = vpop.f32.mrb[190].mxu1  ;;  %v3927_v51 = vadd.f32 %v7854_v19, %v8027_v60 }
 0xb4e   : > { %v6471_v22 = vpop.eup %6470  ;;  %v4408_v21 = vadd.f32 1.0, %v6469_v38  ;;  %6490 = vpow2.f32 %v5288_v13  ;;  %v8030_v13 = vadd.f32 %v3879_v5, %v7929_v59  ;;  %v3881_v49 = vpop.f32.mrb[191].mxu1 }
 0xb4f   : > { %v6473_v42 = vpop.eup %6472  ;;  %v4410_v55 = vadd.f32 1.0, %v6471_v22  ;;  %6492 = vpow2.f32 %v5184_v45  ;;  %v8033_v38 = vadd.f32 %v3881_v49, %v7974_v23 }
 0xb50   : > { %v6475_v50 = vpop.eup %6474  ;;  %6494 = vrcp.f32 %v4408_v21  ;;  %v4409_v62 = vadd.f32 1.0, %v6473_v42 }
 0xb51   : > { %v6477_v52 = vpop.eup %6476  ;;  %6496 = vrcp.f32 %v4410_v55  ;;  %v4411_v27 = vadd.f32 1.0, %v6475_v50 }
 0xb52   : > { %v6479_v45 = vpop.eup %6478  ;;  %6498 = vrcp.f32 %v4409_v62  ;;  %v4415_v48 = vadd.f32 1.0, %v6477_v52  ;;  %v3808_v62 = vadd.f32 %v7857_v12, %v7974_v23  ;;  %v3930_v12 = vadd.f32 %v7864_v30, %v8027_v60 }
 0xb53   : > { %v6481_v22 = vpop.eup %6480  ;;  %6500 = vrcp.f32 %v4411_v27  ;;  %v4417_v21 = vadd.f32 1.0, %v6479_v45  ;;  %v3919_v27 = vadd.f32 %v7859_v28, %v8027_v60 }
 0xb54   : > { %v6483_v37 = vpop.eup %6482  ;;  %6502 = vrcp.f32 %v4415_v48  ;;  %v4416_v42 = vadd.f32 1.0, %v6481_v22  ;;  %v3810_v48 = vadd.f32 %v7862_v63, %v7929_v59  ;;  %v5185_v28 = vmul.f32 -1.442695, %v3808_v62 }
 0xb55   : > { %v6485_v55 = vpop.eup %6484  ;;  %6504 = vrcp.f32 %v4417_v21  ;;  %v4418_v34 = vadd.f32 1.0, %v6483_v37  ;;  %v5200_v21 = vmul.f32 -1.442695, %v3927_v51  ;;  %v5186_v63 = vmul.f32 -1.442695, %v3919_v27 }
 0xb56   : > { %v6487_v47 = vpop.eup %6486  ;;  %6506 = vrcp.f32 %v4416_v42  ;;  %v4422_v50 = vadd.f32 1.0, %v6485_v55  ;;  %v3812_v55 = vadd.f32 %v7867_v43, %v7974_v23  ;;  %v5191_v30 = vmul.f32 -1.442695, %v3810_v48 }
 0xb57   : > { %v6489_v5 = vpop.eup %6488  ;;  %6508 = vrcp.f32 %v4418_v34  ;;  %v4424_v52 = vadd.f32 1.0, %v6487_v47  ;;  %v3922_v47 = vadd.f32 %v7869_v44, %v8027_v60  ;;  %v5207_v43 = vmul.f32 -1.442695, %v3930_v12 }
 0xb58   : > { %v6491_v49 = vpop.eup %6490  ;;  %6510 = vrcp.f32 %v4422_v50  ;;  %v4423_v45 = vadd.f32 1.0, %v6489_v5  ;;  %v3816_v50 = vadd.f32 %v7871_v53, %v7929_v59  ;;  %v3943_v5 = vadd.f32 %v7873_v2, %v8027_v60 }
 0xb59   : > { %v6493_v19 = vpop.eup %6492  ;;  %6512 = vrcp.f32 %v4424_v52  ;;  %v4425_v22 = vadd.f32 1.0, %v6491_v49  ;;  %v5192_v44 = vmul.f32 -1.442695, %v3812_v55  ;;  %v3818_v27 = vadd.f32 %v7875_v4, %v7974_v23 }
 0xb5a   : > { %v6495_v37 = vpop.eup %6494  ;;  %6514 = vrcp.f32 %v4423_v45  ;;  %v4321_v42 = vadd.f32 1.0, %v6493_v19  ;;  %v5193_v53 = vmul.f32 -1.442695, %v3922_v47  ;;  %v3935_v45 = vadd.f32 %v7877_v15, %v8027_v60 }
 0xb5b   : > { %v6497_v34 = vpop.eup %6496  ;;  %4744 = vst [vmem:[%s7686_s23 + $0x2d8] sm:$0xff] %v6495_v37  ;;  %6516 = vrcp.f32 %v4425_v22  ;;  %v5198_v2 = vmul.f32 -1.442695, %v3816_v50  ;;  %v3820_v19 = vadd.f32 %v7879_v41, %v7929_v59  ;;  %v5228_v4 = vmul.f32 -1.442695, %v3943_v5 }
 0xb5c   : > { %v6499_v51 = vpop.eup %6498  ;;  %4746 = vst [vmem:[%s7686_s23 + $0x2e8] sm:$0xff] %v6497_v34  ;;  %6518 = vrcp.f32 %v4321_v42  ;;  %v5199_v15 = vmul.f32 -1.442695, %v3818_v27  ;;  %v5214_v42 = vmul.f32 -1.442695, %v3935_v45 }
 0xb5d   : > { %v6501_v62 = vpop.eup %6500  ;;  %4745 = vst [vmem:[%s7686_s23 + $0x2e0] sm:$0xff] %v6499_v51  ;;  %6520 = vpow2.f32 %v5200_v21  ;;  %v3946_v21 = vadd.f32 %v7881_v39, %v8027_v60  ;;  %v5205_v41 = vmul.f32 -1.442695, %v3820_v19 }
 0xb5e   : > { %v6503_v52 = vpop.eup %6502  ;;  %4747 = vst [vmem:[%s7686_s23 + $0x2f0] sm:$0xff] %v6501_v62  ;;  %6522 = vpow2.f32 %v5185_v28 }
 0xb5f   : > { %v6505_v49 = vpop.eup %6504  ;;  %4751 = vst [vmem:[%s7686_s23 + $0x310] sm:$0xff] %v6503_v52  ;;  %6524 = vpow2.f32 %v5186_v63  ;;  %v5235_v34 = vmul.f32 -1.442695, %v3946_v21 }
 0xb60   : > { %v6507_v48 = vpop.eup %6506  ;;  %4753 = vst [vmem:[%s7686_s23 + $0x320] sm:$0xff] %v6505_v49  ;;  %6526 = vpow2.f32 %v5191_v30 }
 0xb61   : > { %v6509_v22 = vpop.eup %6508  ;;  %4752 = vst [vmem:[%s7686_s23 + $0x318] sm:$0xff] %v6507_v48  ;;  %6528 = vpow2.f32 %v5207_v43 }
 0xb62   : > { %v6511_v12 = vpop.eup %6510  ;;  %4754 = vst [vmem:[%s7686_s23 + $0x328] sm:$0xff] %v6509_v22  ;;  %6530 = vpow2.f32 %v5192_v44  ;;  %v3822_v22 = vadd.f32 %v7883_v18, %v7974_v23 }
 0xb63   : > { %v6513_v37 = vpop.eup %6512  ;;  %4758 = vst [vmem:[%s7686_s23 + $0x348] sm:$0xff] %v6511_v12  ;;  %6532 = vpow2.f32 %v5193_v53  ;;  %v3938_v12 = vadd.f32 %v7885_v11, %v8027_v60  ;;  %v3828_v11 = vadd.f32 %v7895_v14, %v7974_v23 }
 0xb64   : > { %v6515_v28 = vpop.eup %6514  ;;  %4760 = vst [vmem:[%s7686_s23 + $0x358] sm:$0xff] %v6513_v37  ;;  %6534 = vpow2.f32 %v5198_v2 }
 0xb65   : > { %v6517_v55 = vpop.eup %6516  ;;  %4759 = vst [vmem:[%s7686_s23 + $0x350] sm:$0xff] %v6515_v28  ;;  %6536 = vpow2.f32 %v5228_v4 }
 0xb66   : > { %v6519_v63 = vpop.eup %6518  ;;  %4761 = vst [vmem:[%s7686_s23 + $0x360] sm:$0xff] %v6517_v55  ;;  %6538 = vpow2.f32 %v5199_v15  ;;  %v3959_v55 = vadd.f32 %v7893_v1, %v8027_v60 }
 0xb67   : > { %v6521_v39 = vpop.eup %6520  ;;  %4657 = vst [vmem:[%s7686_s23 + $0x20] sm:$0xff] %v6519_v63  ;;  %6540 = vpow2.f32 %v5214_v42  ;;  %v3826_v42 = vadd.f32 %v7889_v16, %v7929_v59  ;;  %v5206_v63 = vmul.f32 -1.442695, %v3822_v22  ;;  %v5221_v16 = vmul.f32 -1.442695, %v3938_v12 }
 0xb68   : > { %v6523_v47 = vpop.eup %6522  ;;  %v4337_v51 = vadd.f32 1.0, %v6521_v39  ;;  %6542 = vpow2.f32 %v5205_v41  ;;  %v5256_v14 = vmul.f32 -1.442695, %v3959_v55 }
 0xb69   : > { %v6525_v30 = vpop.eup %6524  ;;  %v4322_v50 = vadd.f32 1.0, %v6523_v47  ;;  %6544 = vpow2.f32 %v5235_v34  ;;  %v5212_v1 = vmul.f32 -1.442695, %v3826_v42 }
 0xb6a   : > { %v6527_v62 = vpop.eup %6526  ;;  %6546 = vrcp.f32 %v4337_v51  ;;  %v4323_v43 = vadd.f32 1.0, %v6525_v30  ;;  %v3951_v51 = vadd.f32 %v7899_v10, %v8027_v60  ;;  %v5213_v10 = vmul.f32 -1.442695, %v3828_v11 }
 0xb6b   : > { %v6529_v5 = vpop.eup %6528  ;;  %6548 = vrcp.f32 %v4322_v50  ;;  %v4328_v52 = vadd.f32 1.0, %v6527_v62  ;;  %v3830_v50 = vadd.f32 %v7901_v56, %v7929_v59 }
 0xb6c   : > { %v6531_v44 = vpop.eup %6530  ;;  %6550 = vrcp.f32 %v4323_v43  ;;  %v4344_v27 = vadd.f32 1.0, %v6529_v5  ;;  %v3962_v43 = vadd.f32 %v7905_v35, %v8027_v60  ;;  %v5242_v56 = vmul.f32 -1.442695, %v3951_v51 }
 0xb6d   : > { %v6533_v49 = vpop.eup %6532  ;;  %6552 = vrcp.f32 %v4328_v52  ;;  %v4329_v53 = vadd.f32 1.0, %v6531_v44  ;;  %v3832_v52 = vadd.f32 %v7907_v24, %v7974_v23  ;;  %v5219_v35 = vmul.f32 -1.442695, %v3830_v50 }
 0xb6e   : > { %v6535_v45 = vpop.eup %6534  ;;  %6554 = vrcp.f32 %v4344_v27  ;;  %v4330_v48 = vadd.f32 1.0, %v6533_v49  ;;  %v3954_v27 = vadd.f32 %v7911_v20, %v8027_v60  ;;  %v5263_v24 = vmul.f32 -1.442695, %v3962_v43 }
 0xb6f   : > { %v6537_v2 = vpop.eup %6536  ;;  %6556 = vrcp.f32 %v4329_v53  ;;  %v4335_v19 = vadd.f32 1.0, %v6535_v45  ;;  %v3836_v53 = vadd.f32 %v7922_v25, %v7929_v59  ;;  %v5220_v20 = vmul.f32 -1.442695, %v3832_v52 }
 0xb70   : > { %v6539_v4 = vpop.eup %6538  ;;  %6558 = vrcp.f32 %v4330_v48  ;;  %v4365_v21 = vadd.f32 1.0, %v6537_v2  ;;  %v3975_v48 = vadd.f32 %v7924_v58, %v8027_v60  ;;  %v5249_v25 = vmul.f32 -1.442695, %v3954_v27 }
 0xb71   : > { %v6541_v15 = vpop.eup %6540  ;;  %6560 = vrcp.f32 %v4335_v19  ;;  %v4336_v37 = vadd.f32 1.0, %v6539_v4  ;;  %v3838_v19 = vadd.f32 %v7931_v61, %v7974_v23  ;;  %v5226_v58 = vmul.f32 -1.442695, %v3836_v53 }
 0xb72   : > { %v6543_v28 = vpop.eup %6542  ;;  %6562 = vrcp.f32 %v4365_v21  ;;  %v4351_v41 = vadd.f32 1.0, %v6541_v15  ;;  %v5284_v21 = vmul.f32 -1.442695, %v3975_v48 }
 0xb73   : > { %v6545_v18 = vpop.eup %6544  ;;  %6564 = vrcp.f32 %v4336_v37  ;;  %v4342_v34 = vadd.f32 1.0, %v6543_v28  ;;  %v5227_v61 = vmul.f32 -1.442695, %v3838_v19 }
 0xb74   : > { %v6547_v39 = vpop.eup %6546  ;;  %6566 = vrcp.f32 %v4351_v41  ;;  %v4372_v47 = vadd.f32 1.0, %v6545_v18 }
 0xb75   : > { %v6549_v30 = vpop.eup %6548  ;;  %4673 = vst.msk [vmem:[%s7686_s23 + $0xa0] sm:$0xff] %vm826_vm0, %v6547_v39  ;;  %6568 = vrcp.f32 %v4342_v34 }
 0xb76   : > { %v6551_v62 = vpop.eup %6550  ;;  %4658 = vst [vmem:[%s7686_s23 + $0x28] sm:$0xff] %v6549_v30  ;;  %6570 = vrcp.f32 %v4372_v47 }
 0xb77   : > { %v6553_v5 = vpop.eup %6552  ;;  %4659 = vst.msk [vmem:[%s7686_s23 + $0x30] sm:$0xff] %vm826_vm0, %v6551_v62  ;;  %6572 = vpow2.f32 %v5206_v63 }
 0xb78   : > { %v6555_v44 = vpop.eup %6554  ;;  %4664 = vst [vmem:[%s7686_s23 + $0x58] sm:$0xff] %v6553_v5  ;;  %6574 = vpow2.f32 %v5221_v16 }
 0xb79   : > { %v6557_v49 = vpop.eup %6556  ;;  %4680 = vst.msk [vmem:[%s7686_s23 + $0xd8] sm:$0xff] %vm826_vm0, %v6555_v44  ;;  %6576 = vpow2.f32 %v5212_v1  ;;  %v3978_v44 = vadd.f32 %v7937_v17, %v8027_v60  ;;  %v5233_v17 = vmul.f32 -1.442695, %v7942_v32  ;;  %v3852_v32 = vadd.f32 %v7958_v3, %v7974_v23  ;;  %v8204_v3 = vld [vmem:[#allocation3_spill] sm:$0xff] }
 0xb7a   : > { %v6559_v45 = vpop.eup %6558  ;;  %4665 = vst [vmem:[%s7686_s23 + $0x60] sm:$0xff] %v6557_v49  ;;  %6578 = vpow2.f32 %v5256_v14  ;;  %v3967_v14 = vadd.f32 %v7933_v31, %v8027_v60  ;;  %v3842_v49 = vadd.f32 %v7944_v40, %v7974_v23  ;;  %v3848_v40 = vadd.f32 %v7953_v29, %v7974_v23 }
 0xb7b   : > { %v6561_v2 = vpop.eup %6560  ;;  %4666 = vst.msk [vmem:[%s7686_s23 + $0x68] sm:$0xff] %vm826_vm0, %v6559_v45  ;;  %6580 = vpow2.f32 %v5213_v10  ;;  %v3970_v45 = vadd.f32 %v7946_v7, %v8027_v60 }
 0xb7c   : > { %v6563_v22 = vpop.eup %6562  ;;  %4671 = vst [vmem:[%s7686_s23 + $0x90] sm:$0xff] %v6561_v2  ;;  %6582 = vpow2.f32 %v5242_v56  ;;  %v5270_v53 = vmul.f32 -1.442695, %v3967_v14 }
 0xb7d   : > { %v6565_v59 = vpop.eup %6564  ;;  %4701 = vst.msk [vmem:[%s7686_s23 + $0x180] sm:$0xff] %vm826_vm0, %v6563_v22  ;;  %6584 = vpow2.f32 %v5219_v35  ;;  %v5234_v22 = vmul.f32 -1.442695, %v3842_v49  ;;  %v5277_v60 = vmul.f32 -1.442695, %v3970_v45 }
 0xb7e   : > { %v6567_v4 = vpop.eup %6566  ;;  %4672 = vst [vmem:[%s7686_s23 + $0x98] sm:$0xff] %v6565_v59  ;;  %6586 = vpow2.f32 %v5263_v24  ;;  %v8203_v59 = vld [vmem:[#allocation2_spill] sm:$0xff] }
 0xb7f   : > { %v6569_v12 = vpop.eup %6568  ;;  %4687 = vst.msk [vmem:[%s7686_s23 + $0x110] sm:$0xff] %vm826_vm0, %v6567_v4  ;;  %6588 = vpow2.f32 %v5220_v20  ;;  %v5291_v20 = vmul.f32 -1.442695, %v3978_v44  ;;  %v5240_v29 = vmul.f32 -1.442695, %v8203_v59 }
 0xb80   : > { %v6571_v15 = vpop.eup %6570  ;;  %4678 = vst [vmem:[%s7686_s23 + $0xc8] sm:$0xff] %v6569_v12  ;;  %6590 = vpow2.f32 %v5249_v25  ;;  %v5241_v4 = vmul.f32 -1.442695, %v3848_v40  ;;  %v5275_v40 = vmul.f32 -1.442695, %v8009_v6 }
 0xb81   : > { %v6573_v37 = vpop.eup %6572  ;;  %4708 = vst.msk [vmem:[%s7686_s23 + $0x1b8] sm:$0xff] %vm826_vm0, %v6571_v15  ;;  %6592 = vpow2.f32 %v5226_v58 }
 0xb82   : > { %v6575_v42 = vpop.eup %6574  ;;  %v4343_v28 = vadd.f32 1.0, %v6573_v37  ;;  %6594 = vpow2.f32 %v5284_v21  ;;  %v3858_v21 = vadd.f32 %v7965_v0, %v7974_v23  ;;  %v5248_v37 = vmul.f32 -1.442695, %v3852_v32 }
 0xb83   : > { %v6577_v41 = vpop.eup %6576  ;;  %v4358_v55 = vadd.f32 1.0, %v6575_v42  ;;  %6596 = vpow2.f32 %v5227_v61  ;;  %v5247_v61 = vmul.f32 -1.442695, %v8204_v3 }
 0xb84   : > { %v6579_v18 = vpop.eup %6578  ;;  %6598 = vrcp.f32 %v4343_v28  ;;  %v4349_v34 = vadd.f32 1.0, %v6577_v41  ;;  %v5254_v28 = vmul.f32 -1.442695, %v7963_v26  ;;  %v5255_v23 = vmul.f32 -1.442695, %v3858_v21 }
 0xb85   : > { %v6581_v63 = vpop.eup %6580  ;;  %6600 = vrcp.f32 %v4358_v55  ;;  %v4393_v11 = vadd.f32 1.0, %v6579_v18  ;;  %v5261_v55 = vmul.f32 -1.442695, %v7979_v9 }
 0xb86   : > { %v6583_v39 = vpop.eup %6582  ;;  %6602 = vrcp.f32 %v4349_v34  ;;  %v4350_v47 = vadd.f32 1.0, %v6581_v63  ;;  %v5262_v34 = vmul.f32 -1.442695, %v7984_v57 }
 0xb87   : > { %v6585_v16 = vpop.eup %6584  ;;  %6604 = vrcp.f32 %v4393_v11  ;;  %v4379_v51 = vadd.f32 1.0, %v6583_v39 }
 0xb88   : > { %v6587_v30 = vpop.eup %6586  ;;  %6606 = vrcp.f32 %v4350_v47  ;;  %v4356_v1 = vadd.f32 1.0, %v6585_v16 }
 0xb89   : > { %v6589_v50 = vpop.eup %6588  ;;  %6608 = vrcp.f32 %v4379_v51  ;;  %v4400_v62 = vadd.f32 1.0, %v6587_v30 }
 0xb8a   : > { %v6591_v43 = vpop.eup %6590  ;;  %6610 = vrcp.f32 %v4356_v1  ;;  %v4357_v5 = vadd.f32 1.0, %v6589_v50 }
 0xb8b   : > { %v6593_v10 = vpop.eup %6592  ;;  %6612 = vrcp.f32 %v4400_v62  ;;  %v4386_v52 = vadd.f32 1.0, %v6591_v43 }
 0xb8c   : > { %v6595_v56 = vpop.eup %6594  ;;  %6614 = vrcp.f32 %v4357_v5  ;;  %v4363_v27 = vadd.f32 1.0, %v6593_v10 }
 0xb8d   : > { %v6597_v35 = vpop.eup %6596  ;;  %6616 = vrcp.f32 %v4386_v52  ;;  %v4421_v31 = vadd.f32 1.0, %v6595_v56 }
 0xb8e   : > { %v6599_v24 = vpop.eup %6598  ;;  %6618 = vrcp.f32 %v4363_v27  ;;  %v4364_v48 = vadd.f32 1.0, %v6597_v35 }
 0xb8f   : > { %v6601_v2 = vpop.eup %6600  ;;  %4679 = vst [vmem:[%s7686_s23 + $0xd0] sm:$0xff] %v6599_v24  ;;  %6620 = vrcp.f32 %v4421_v31  ;;  %v5268_v24 = vmul.f32 -1.442695, %v7999_v46 }
 0xb90   : > { %v6603_v19 = vpop.eup %6602  ;;  %4694 = vst.msk [vmem:[%s7686_s23 + $0x148] sm:$0xff] %vm826_vm0, %v6601_v2  ;;  %6622 = vrcp.f32 %v4364_v48  ;;  %v5269_v2 = vmul.f32 -1.442695, %v8004_v33  ;;  %v5282_v33 = vmul.f32 -1.442695, %v8021_v54 }
 0xb91   : > { %v6605_v7 = vpop.eup %6604  ;;  %4685 = vst [vmem:[%s7686_s23 + $0x100] sm:$0xff] %v6603_v19  ;;  %6624 = vpow2.f32 %v5270_v53  ;;  %v5290_v54 = vmul.f32 -1.442695, %v8033_v38 }
 0xb92   : > { %v6607_v25 = vpop.eup %6606  ;;  %4729 = vst.msk [vmem:[%s7686_s23 + $0x260] sm:$0xff] %vm826_vm0, %v6605_v7  ;;  %6626 = vpow2.f32 %v5233_v17 }
 0xb93   : > { %v6609_v58 = vpop.eup %6608  ;;  %4686 = vst [vmem:[%s7686_s23 + $0x108] sm:$0xff] %v6607_v25  ;;  %6628 = vpow2.f32 %v5291_v20 }
 0xb94   : > { %v6611_v12 = vpop.eup %6610  ;;  %4715 = vst.msk [vmem:[%s7686_s23 + $0x1f0] sm:$0xff] %vm826_vm0, %v6609_v58  ;;  %6630 = vpow2.f32 %v5234_v22  ;;  %v5276_v22 = vmul.f32 -1.442695, %v8014_v8  ;;  %v5289_v8 = vmul.f32 -1.442695, %v8030_v13 }
 0xb95   : > { %v6613_v15 = vpop.eup %6612  ;;  %4692 = vst [vmem:[%s7686_s23 + $0x138] sm:$0xff] %v6611_v12  ;;  %6632 = vpow2.f32 %v5277_v60  ;;  %v5283_v60 = vmul.f32 -1.442695, %v8024_v36 }
 0xb96   : > { %v6615_v42 = vpop.eup %6614  ;;  %4736 = vst.msk [vmem:[%s7686_s23 + $0x298] sm:$0xff] %vm826_vm0, %v6613_v15  ;;  %6634 = vpow2.f32 %v5240_v29 }
 0xb97   : > { %v6617_v0 = vpop.eup %6616  ;;  %4693 = vst [vmem:[%s7686_s23 + $0x140] sm:$0xff] %v6615_v42  ;;  %6636 = vpow2.f32 %v5241_v4 }
 0xb98   : > { %v6619_v41 = vpop.eup %6618  ;;  %4722 = vst.msk [vmem:[%s7686_s23 + $0x228] sm:$0xff] %vm826_vm0, %v6617_v0  ;;  %6638 = vpow2.f32 %v5247_v61 }
 0xb99   : > { %v6621_v18 = vpop.eup %6620  ;;  %4699 = vst [vmem:[%s7686_s23 + $0x170] sm:$0xff] %v6619_v41  ;;  %6640 = vpow2.f32 %v5248_v37 }
 0xb9a   : > { %v6623_v63 = vpop.eup %6622  ;;  %4757 = vst.msk [vmem:[%s7686_s23 + $0x340] sm:$0xff] %vm826_vm0, %v6621_v18  ;;  %6642 = vpow2.f32 %v5254_v28 }
 0xb9b   : > { %v6625_v26 = vpop.eup %6624  ;;  %4700 = vst [vmem:[%s7686_s23 + $0x178] sm:$0xff] %v6623_v63  ;;  %6644 = vpow2.f32 %v5255_v23 }
 0xb9c   : > { %v6627_v11 = vpop.eup %6626  ;;  %v4407_v39 = vadd.f32 1.0, %v6625_v26  ;;  %6646 = vpow2.f32 %v5261_v55 }
 0xb9d   : > { %v6629_v47 = vpop.eup %6628  ;;  %v4370_v16 = vadd.f32 1.0, %v6627_v11  ;;  %6648 = vpow2.f32 %v5262_v34 }
 0xb9e   : > { %v6631_v51 = vpop.eup %6630  ;;  %6650 = vrcp.f32 %v4407_v39  ;;  %v4428_v9 = vadd.f32 1.0, %v6629_v47 }
 0xb9f   : > { %v6633_v30 = vpop.eup %6632  ;;  %6652 = vrcp.f32 %v4370_v16  ;;  %v4371_v1 = vadd.f32 1.0, %v6631_v51 }
 0xba0   : > { %v6635_v57 = vpop.eup %6634  ;;  %6654 = vrcp.f32 %v4428_v9  ;;  %v4414_v50 = vadd.f32 1.0, %v6633_v30 }
 0xba1   : > { %v6637_v62 = vpop.eup %6636  ;;  %6656 = vrcp.f32 %v4371_v1  ;;  %v4377_v14 = vadd.f32 1.0, %v6635_v57 }
 0xba2   : > { %v6639_v43 = vpop.eup %6638  ;;  %6658 = vrcp.f32 %v4414_v50  ;;  %v4378_v5 = vadd.f32 1.0, %v6637_v62 }
 0xba3   : > { %v6641_v10 = vpop.eup %6640  ;;  %6660 = vrcp.f32 %v4377_v14  ;;  %v4384_v52 = vadd.f32 1.0, %v6639_v43 }
 0xba4   : > { %v6643_v44 = vpop.eup %6642  ;;  %6662 = vrcp.f32 %v4378_v5  ;;  %v4385_v56 = vadd.f32 1.0, %v6641_v10 }
 0xba5   : > { %v6645_v27 = vpop.eup %6644  ;;  %6664 = vrcp.f32 %v4384_v52  ;;  %v4391_v49 = vadd.f32 1.0, %v6643_v44 }
 0xba6   : > { %v6647_v35 = vpop.eup %6646  ;;  %6666 = vrcp.f32 %v4385_v56  ;;  %v4392_v31 = vadd.f32 1.0, %v6645_v27 }
 0xba7   : > { %v6649_v53 = vpop.eup %6648  ;;  %6668 = vrcp.f32 %v4391_v49  ;;  %v4398_v45 = vadd.f32 1.0, %v6647_v35 }
 0xba8   : > { %v6651_v48 = vpop.eup %6650  ;;  %6670 = vrcp.f32 %v4392_v31  ;;  %v4399_v17 = vadd.f32 1.0, %v6649_v53 }
 0xba9   : > { %v6653_v20 = vpop.eup %6652  ;;  %4743 = vst.msk [vmem:[%s7686_s23 + $0x2d0] sm:$0xff] %vm826_vm0, %v6651_v48  ;;  %6672 = vrcp.f32 %v4398_v45 }
 0xbaa   : > { %v6655_v19 = vpop.eup %6654  ;;  %4706 = vst [vmem:[%s7686_s23 + $0x1a8] sm:$0xff] %v6653_v20  ;;  %6674 = vrcp.f32 %v4399_v17 }
 0xbab   : > { %v6657_v46 = vpop.eup %6656  ;;  %4764 = vst.msk [vmem:[%s7686_s23 + $0x378] sm:$0xff] %vm826_vm0, %v6655_v19  ;;  %6676 = vpow2.f32 %v5268_v24 }
 0xbac   : > { %v6659_v7 = vpop.eup %6658  ;;  %4707 = vst [vmem:[%s7686_s23 + $0x1b0] sm:$0xff] %v6657_v46  ;;  %6678 = vpow2.f32 %v5269_v2 }
 0xbad   : > { %v6661_v6 = vpop.eup %6660  ;;  %4750 = vst.msk [vmem:[%s7686_s23 + $0x308] sm:$0xff] %vm826_vm0, %v6659_v7  ;;  %6680 = vpow2.f32 %v5275_v40 }
 0xbae   : > { %v6663_v32 = vpop.eup %6662  ;;  %4713 = vst [vmem:[%s7686_s23 + $0x1e0] sm:$0xff] %v6661_v6  ;;  %6682 = vpow2.f32 %v5276_v22 }
 0xbaf   : > { %v6665_v25 = vpop.eup %6664  ;;  %4714 = vst [vmem:[%s7686_s23 + $0x1e8] sm:$0xff] %v6663_v32  ;;  %6684 = vpow2.f32 %v5282_v33 }
 0xbb0   : > { %v6667_v36 = vpop.eup %6666  ;;  %4720 = vst [vmem:[%s7686_s23 + $0x218] sm:$0xff] %v6665_v25  ;;  %6686 = vpow2.f32 %v5283_v60 }
 0xbb1   : > { %v6669_v59 = vpop.eup %6668  ;;  %4721 = vst [vmem:[%s7686_s23 + $0x220] sm:$0xff] %v6667_v36  ;;  %6688 = vpow2.f32 %v5289_v8 }
 0xbb2   : > { %v6671_v29 = vpop.eup %6670  ;;  %4727 = vst [vmem:[%s7686_s23 + $0x250] sm:$0xff] %v6669_v59  ;;  %6690 = vpow2.f32 %v5290_v54 }
 0xbb3   : > { %v6673_v13 = vpop.eup %6672  ;;  %4728 = vst [vmem:[%s7686_s23 + $0x258] sm:$0xff] %v6671_v29 }
 0xbb4   : > { %v6675_v58 = vpop.eup %6674  ;;  %4734 = vst [vmem:[%s7686_s23 + $0x288] sm:$0xff] %v6673_v13 }
 0xbb5   : > { %v6677_v4 = vpop.eup %6676  ;;  %4735 = vst [vmem:[%s7686_s23 + $0x290] sm:$0xff] %v6675_v58 }
 0xbb6   : > { %v6679_v38 = vpop.eup %6678  ;;  %v4405_v21 = vadd.f32 1.0, %v6677_v4 }
 0xbb7   : > { %v6681_v12 = vpop.eup %6680  ;;  %v4406_v3 = vadd.f32 1.0, %v6679_v38 }
 0xbb8   : > { %v6683_v61 = vpop.eup %6682  ;;  %6692 = vrcp.f32 %v4405_v21  ;;  %v4412_v15 = vadd.f32 1.0, %v6681_v12 }
 0xbb9   : > { %v6685_v37 = vpop.eup %6684  ;;  %6694 = vrcp.f32 %v4406_v3  ;;  %v4413_v42 = vadd.f32 1.0, %v6683_v61 }
 0xbba   : > { %v6687_v28 = vpop.eup %6686  ;;  %6696 = vrcp.f32 %v4412_v15  ;;  %v4419_v0 = vadd.f32 1.0, %v6685_v37 }
 0xbbb   : > { %v6689_v23 = vpop.eup %6688  ;;  %6698 = vrcp.f32 %v4413_v42  ;;  %v4420_v41 = vadd.f32 1.0, %v6687_v28 }
 0xbbc   : > { %v6691_v55 = vpop.eup %6690  ;;  %6700 = vrcp.f32 %v4419_v0  ;;  %v4426_v18 = vadd.f32 1.0, %v6689_v23 }
 0xbbd   : > { %6702 = vrcp.f32 %v4420_v41  ;;  %v4427_v34 = vadd.f32 1.0, %v6691_v55 }
 0xbbe   : > { %6704 = vrcp.f32 %v4426_v18 }
 0xbbf   : > { %6706 = vrcp.f32 %v4427_v34 }
 0xbc2   : > { %v6693_v63 = vpop.eup %6692 }
 0xbc3   : > { %v6695_v26 = vpop.eup %6694  ;;  %4741 = vst [vmem:[%s7686_s23 + $0x2c0] sm:$0xff] %v6693_v63 }
 0xbc4   : > { %v6697_v11 = vpop.eup %6696  ;;  %4742 = vst [vmem:[%s7686_s23 + $0x2c8] sm:$0xff] %v6695_v26 }
 0xbc5   : > { %v6699_v39 = vpop.eup %6698  ;;  %4748 = vst [vmem:[%s7686_s23 + $0x2f8] sm:$0xff] %v6697_v11 }
 0xbc6   : > { %v6701_v47 = vpop.eup %6700  ;;  %4749 = vst [vmem:[%s7686_s23 + $0x300] sm:$0xff] %v6699_v39 }
 0xbc7   : > { %v6703_v16 = vpop.eup %6702  ;;  %4755 = vst [vmem:[%s7686_s23 + $0x330] sm:$0xff] %v6701_v47 }
 0xbc8   : > { %v6705_v51 = vpop.eup %6704  ;;  %4756 = vst [vmem:[%s7686_s23 + $0x338] sm:$0xff] %v6703_v16 }
 0xbc9   : > { %v6707_v9 = vpop.eup %6706  ;;  %4762 = vst [vmem:[%s7686_s23 + $0x368] sm:$0xff] %v6705_v51 }
 0xbca   : > { %4763 = vst [vmem:[%s7686_s23 + $0x370] sm:$0xff] %v6707_v9 }
 0xbcb PF: > { %s16_s21 = sadd.s32 1, %s6715_s21  }
 0xbcc   : > { %p13_p4 = scmp.ge.s32.totalorder %s16_s21, 4  }
 0xbce   :  { %15 = sbr.rel (!%p13_p4) target bundleno = 1 (0x1), region = 83 }

</bundles_post_ra>
